<compile_context>
chip_gen: v6e
topology: v6e:2x2x1
jax: 0.10.0
libtpu: 0.0.40
codegen_flags: <defaults>
</compile_context>

<pallas_src>
import functools

import jax
import jax.numpy as jnp
from jax import lax
from jax.experimental import pallas as pl
from jax.experimental.pallas import tpu as pltpu


# -----------------------------------------------------------------------------
# Static tap metadata + host-side boundary masks
# -----------------------------------------------------------------------------
def _nonzero_taps(W):
    """(flat lane offset, kernel index kh*3+kw) for the 8 non-centre 3x3 taps."""
    taps = []
    for dh in (-1, 0, 1):
        for dw in (-1, 0, 1):
            if dh == 0 and dw == 0:
                continue
            taps.append((dh * W + dw, (dh + 1) * 3 + (dw + 1)))
    return tuple(taps)


def _tap_masks(H, W, ips):
    """(8, ips*H*W) f32 zero-padding validity masks, one row per non-centre tap.

    Built per image and tiled, so lane rolls never leak across image
    boundaries when several images share one lane block."""
    S = H * W
    col = jnp.arange(S, dtype=jnp.int32)
    hh = col // W
    ww = col % W
    rows = []
    for dh in (-1, 0, 1):
        for dw in (-1, 0, 1):
            if dh == 0 and dw == 0:
                continue
            valid = ((hh + dh >= 0) & (hh + dh < H) &
                     (ww + dw >= 0) & (ww + dw < W))
            rows.append(valid.astype(jnp.float32))
    m = jnp.stack(rows)                      # (8, S)
    return jnp.tile(m, (1, ips))             # (8, ips*S)


# -----------------------------------------------------------------------------
# Pallas kernel: one lane block (ips whole images) per grid step, whole MIRB1.
# -----------------------------------------------------------------------------
def mirb1_kernel(x_ref, m_ref, sa_ref, sb_ref, sl_ref, o_ref, *, C, taps):
    C2 = 2 * C
    L = x_ref.shape[-1]                      # lanes = images_per_step * H*W
    x = x_ref[...]                           # (C, L) f32, lane-dense
    masks = m_ref[...]                       # (8, L)

    def level(lvl, z):
        # slab A layout: [ stacked grouped W1 (C) | stacked depthwise W2 (9) | b1 (1) ]
        sa = sa_ref[lvl]                     # (2C, C+10)
        w1 = sa[:, :C]
        w2 = sa[:, C:C + 9]
        b1 = sa[:, C + 9:C + 10]
        # --- stacked grouped 1x1 conv of the c1/c2 pair (block-diag, dense here)
        g = jnp.dot(w1, z, preferred_element_type=jnp.float32) + b1     # (2C, L)
        # --- stacked depthwise 3x3, pad=1: centre tap init + 8 rolled+masked taps
        acc = w2[:, 4:5] * g
        for j, (d, kidx) in enumerate(taps):
            t = pltpu.roll(g, (-d) % L, 1)   # t[:, s] == g[:, s + d]
            acc = acc + w2[:, kidx:kidx + 1] * (t * masks[j:j + 1, :])
        # --- block-diagonal pointwise 1x1 of the pair (+ folded b2/b3 bias) + lrelu
        sb = sb_ref[lvl]                     # (C, 2C+1) = [ W3 block-diag | bias ]
        y = jnp.dot(sb[:, :C2], acc,
                    preferred_element_type=jnp.float32) + sb[:, C2:C2 + 1]
        return jnp.maximum(y, 0.2 * y)       # LeakyReLU(0.2); rows = cat(c1_x, c2_x)

    cat1 = level(0, x)
    cat2 = level(1, cat1)
    cat3 = level(2, cat2)

    # conv_last 1x1 + residual add.
    sl = sl_ref[...]                         # (C, C+1) = [ WL | bL ]
    out = jnp.dot(sl[:, :C], cat3,
                  preferred_element_type=jnp.float32) + sl[:, C:C + 1] + x
    o_ref[...] = out.astype(o_ref.dtype)


def mirb1_pallas(x_nchw, slab_a, slab_b, slab_l, *, images_per_step=None):
    N, C, H, W = x_nchw.shape
    S = H * W
    if images_per_step is None:
        # Keep >=2 grid steps when possible (v7x: 2 TensorCores split the
        # "parallel" axis); otherwise one wide lane block (best on v5e/v6e).
        images_per_step = N // 2 if (N >= 2 and N % 2 == 0) else 1
    ips = images_per_step
    assert N % ips == 0
    L = ips * S
    grid = (N // ips,)

    # Layout plumbing (outside the kernel): batch onto the lane axis -> (C, N*S).
    x_cl = x_nchw.reshape(N, C, S).transpose(1, 0, 2).reshape(C, N * S)
    masks = _tap_masks(H, W, ips)            # (8, L), resident in VMEM
    taps = _nonzero_taps(W)

    kernel = functools.partial(mirb1_kernel, C=C, taps=taps)
    out = pl.pallas_call(
        kernel,
        out_shape=jax.ShapeDtypeStruct((C, N * S), jnp.float32),
        grid=grid,
        in_specs=[
            pl.BlockSpec((C, L), lambda i: (0, i)),          # lane-dense input block
            pl.BlockSpec(masks.shape, lambda i: (0, 0)),     # tap boundary masks
            pl.BlockSpec(slab_a.shape, lambda i: (0, 0, 0)), # per-level slab A
            pl.BlockSpec(slab_b.shape, lambda i: (0, 0, 0)), # per-level slab B
            pl.BlockSpec(slab_l.shape, lambda i: (0, 0)),    # conv_last slab
        ],
        out_specs=pl.BlockSpec((C, L), lambda i: (0, i)),    # lane-dense output
        compiler_params=pltpu.CompilerParams(
            dimension_semantics=("parallel",)),
    )(x_cl, masks, slab_a, slab_b, slab_l)
    return out.reshape(C, N, S).transpose(1, 0, 2).reshape(N, C, H, W)


# -----------------------------------------------------------------------------
# Deterministic parameters mirroring PyTorch weight_norm(dim=0).
# -----------------------------------------------------------------------------
def weight_norm(v, g):
    norm = jnp.sqrt(jnp.sum(v.reshape(v.shape[0], -1) ** 2, axis=1))
    return v * (g / norm).reshape((-1,) + (1,) * (v.ndim - 1))


def make_convblock_params(key, in_ch, out_ch, groups):
    cpg = in_ch // groups
    ks = jax.random.split(key, 9)
    v1 = jax.random.normal(ks[0], (in_ch, cpg, 1, 1), jnp.float32) * 0.2
    g1 = jax.random.uniform(ks[1], (in_ch,), jnp.float32, 0.5, 1.5)
    b1 = jax.random.normal(ks[2], (in_ch,), jnp.float32) * 0.1
    v2 = jax.random.normal(ks[3], (in_ch, 1, 3, 3), jnp.float32) * 0.2
    g2 = jax.random.uniform(ks[4], (in_ch,), jnp.float32, 0.5, 1.5)
    b2 = jax.random.normal(ks[5], (in_ch,), jnp.float32) * 0.1
    v3 = jax.random.normal(ks[6], (out_ch, in_ch, 1, 1), jnp.float32) * 0.2
    g3 = jax.random.uniform(ks[7], (out_ch,), jnp.float32, 0.5, 1.5)
    b3 = jax.random.normal(ks[8], (out_ch,), jnp.float32) * 0.1
    return (weight_norm(v1, g1), b1, weight_norm(v2, g2), b2,
            weight_norm(v3, g3), b3)


def make_conv1x1_params(key, in_ch, out_ch):
    ks = jax.random.split(key, 3)
    v = jax.random.normal(ks[0], (out_ch, in_ch, 1, 1), jnp.float32) * 0.2
    g = jax.random.uniform(ks[1], (out_ch,), jnp.float32, 0.5, 1.5)
    b = jax.random.normal(ks[2], (out_ch,), jnp.float32) * 0.1
    return weight_norm(v, g), b


# -----------------------------------------------------------------------------
# Host-side weight packing: fuse each c1_x/c2_x pair into stacked slabs.
# -----------------------------------------------------------------------------
def _grouped_to_dense(w1, groups):
    in_ch = w1.shape[0]
    cpg = in_ch // groups
    m = jnp.zeros((in_ch, in_ch), jnp.float32)
    for gi in range(groups):
        m = m.at[gi * cpg:(gi + 1) * cpg, gi * cpg:(gi + 1) * cpg].set(
            w1[gi * cpg:(gi + 1) * cpg, :, 0, 0])
    return m


def pack_level(pa, pb, groups):
    w1a, b1a, w2a, b2a, w3a, b3a = pa
    w1b, b1b, w2b, b2b, w3b, b3b = pb
    C = w1a.shape[0]
    Cout = w3a.shape[0]
    # Stacked grouped 1x1 conv of the pair: (2C, C) block-diag-per-half matrix.
    W1 = jnp.concatenate([_grouped_to_dense(w1a, groups),
                          _grouped_to_dense(w1b, groups)], axis=0)
    B1 = jnp.concatenate([b1a, b1b]).reshape(2 * C, 1)
    # Stacked depthwise 3x3 taps (2C, 9), kernel index = kh*3+kw.
    W2 = jnp.concatenate([w2a[:, 0].reshape(C, 9),
                          w2b[:, 0].reshape(C, 9)], axis=0)
    B2 = jnp.concatenate([b2a, b2b]).reshape(2 * C, 1)
    # Block-diagonal pointwise 1x1 of the pair: output rows are already
    # torch.cat([c1_x, c2_x], dim=channel).
    W3 = jnp.zeros((2 * Cout, 2 * C), jnp.float32)
    W3 = W3.at[:Cout, :C].set(w3a[:, :, 0, 0])
    W3 = W3.at[Cout:, C:].set(w3b[:, :, 0, 0])
    B3 = jnp.concatenate([b3a, b3b]).reshape(2 * Cout, 1)
    BP = W3 @ B2 + B3        # depthwise + pointwise biases folded into (2Cout, 1)
    slab_a = jnp.concatenate([W1, W2, B1], axis=1)   # (2C, C+10)
    slab_b = jnp.concatenate([W3, BP], axis=1)       # (2Cout, 2C+1) = (C, 2C+1)
    return slab_a, slab_b


def pack_mirb1(block_params, wl, bl, groups):
    sa, sb = [], []
    for a, b in ((0, 1), (2, 3), (4, 5)):
        s_a, s_b = pack_level(block_params[a], block_params[b], groups)
        sa.append(s_a)
        sb.append(s_b)
    C = wl.shape[0]
    slab_l = jnp.concatenate([wl[:, :, 0, 0], bl.reshape(C, 1)], axis=1)  # (C, C+1)
    return jnp.stack(sa), jnp.stack(sb), slab_l


# -----------------------------------------------------------------------------
# Pure-JAX (XLA) reference in NCHW, exactly mirroring the PyTorch forward.
# -----------------------------------------------------------------------------
def conv_block_ref(x, params, groups):
    w1, b1, w2, b2, w3, b3 = params
    dn = ("NCHW", "OIHW", "NCHW")
    in_ch = x.shape[1]
    y = lax.conv_general_dilated(x, w1, (1, 1), "VALID", dimension_numbers=dn,
                                 feature_group_count=groups)
    y = y + b1[None, :, None, None]
    y = lax.conv_general_dilated(y, w2, (1, 1), [(1, 1), (1, 1)],
                                 dimension_numbers=dn,
                                 feature_group_count=in_ch)
    y = y + b2[None, :, None, None]
    y = lax.conv_general_dilated(y, w3, (1, 1), "VALID", dimension_numbers=dn)
    y = y + b3[None, :, None, None]
    return y


def lrelu_ref(v):
    return jnp.where(v >= 0, v, 0.2 * v)


def mirb1_ref(x, block_params, wl, bl, groups):
    dn = ("NCHW", "OIHW", "NCHW")
    c1_1 = lrelu_ref(conv_block_ref(x, block_params[0], groups))
    c2_1 = lrelu_ref(conv_block_ref(x, block_params[1], groups))
    cat1 = jnp.concatenate([c1_1, c2_1], axis=1)
    c1_2 = lrelu_ref(conv_block_ref(cat1, block_params[2], groups))
    c2_2 = lrelu_ref(conv_block_ref(cat1, block_params[3], groups))
    cat2 = jnp.concatenate([c1_2, c2_2], axis=1)
    c1_4 = lrelu_ref(conv_block_ref(cat2, block_params[4], groups))
    c2_4 = lrelu_ref(conv_block_ref(cat2, block_params[5], groups))
    cat3 = jnp.concatenate([c1_4, c2_4], axis=1)
    out = lax.conv_general_dilated(cat3, wl, (1, 1), "VALID",
                                   dimension_numbers=dn)
    out = out + bl[None, :, None, None]
    return out + x


if __name__ == "__main__":
    # n_feats must be divisible by groups=3 and by 2 (c_out = n_feats // 2).
    # N=4 exercises the wide-lane path (2 images / grid step) while still
    # keeping 2 "parallel" grid steps for v7x's two TensorCores.
    N, NF, H, W = 4, 12, 16, 16
    GROUPS = 3
    COUT = NF // 2

    key = jax.random.PRNGKey(0)
    k_x, k_p = jax.random.split(key)
    x_nchw = jax.random.normal(k_x, (N, NF, H, W), jnp.float32)

    block_keys = jax.random.split(k_p, 7)
    block_params = [make_convblock_params(block_keys[i], NF, COUT, GROUPS)
                    for i in range(6)]
    wl, bl = make_conv1x1_params(block_keys[6], NF, NF)

    slab_a, slab_b, slab_l = pack_mirb1(block_params, wl, bl, GROUPS)

    out = mirb1_pallas(x_nchw, slab_a, slab_b, slab_l)
    out = jax.block_until_ready(out)

    ref = mirb1_ref(x_nchw, block_params, wl, bl, GROUPS)
    ref = jax.block_until_ready(ref)

    assert out.shape == ref.shape == (N, NF, H, W)
    max_err = float(jnp.max(jnp.abs(out - ref)))
    assert jnp.allclose(out, ref, rtol=5e-4, atol=5e-4), max_err
    print("KERNEL_OK")
</pallas_src>

<mosaic_0001>
module attributes {stable_mosaic.version = 11 : i64} {
  func.func @mirb1_kernel(%arg0: i32, %arg1: memref<12x512xf32, #tpu.memory_space<vmem>>, %arg2: memref<8x512xf32, #tpu.memory_space<vmem>>, %arg3: memref<3x24x22xf32, #tpu.memory_space<vmem>>, %arg4: memref<3x12x25xf32, #tpu.memory_space<vmem>>, %arg5: memref<12x13xf32, #tpu.memory_space<vmem>>, %arg6: memref<12x512xf32, #tpu.memory_space<vmem>>) attributes {dimension_semantics = [#tpu.dimension_semantics<parallel>], iteration_bounds = array<i64: 2>, scalar_prefetch = 0 : i64, scratch_operands = 0 : i64, tpu.core_type = #tpu.core_type<tc>, window_params = [{transform_indices = @transform_0, window_bounds = array<i64: 12, 512>}, {pipeline_mode = #tpu.pipeline_mode<synchronous>, transform_indices = @transform_1, window_bounds = array<i64: 8, 512>}, {pipeline_mode = #tpu.pipeline_mode<synchronous>, transform_indices = @transform_2, window_bounds = array<i64: 3, 24, 22>}, {pipeline_mode = #tpu.pipeline_mode<synchronous>, transform_indices = @transform_3, window_bounds = array<i64: 3, 12, 25>}, {pipeline_mode = #tpu.pipeline_mode<synchronous>, transform_indices = @transform_4, window_bounds = array<i64: 12, 13>}, {transform_indices = @transform_5, window_bounds = array<i64: 12, 512>}]} {
    %c0 = arith.constant 0 : index
    %c0_0 = arith.constant 0 : index
    %0 = vector.load %arg1[%c0, %c0_0] : memref<12x512xf32, #tpu.memory_space<vmem>>, vector<12x512xf32>
    %c0_1 = arith.constant 0 : index
    %c0_2 = arith.constant 0 : index
    %1 = vector.load %arg2[%c0_1, %c0_2] : memref<8x512xf32, #tpu.memory_space<vmem>>, vector<8x512xf32>
    %c0_3 = arith.constant 0 : index
    %c0_4 = arith.constant 0 : index
    %c0_5 = arith.constant 0 : index
    %2 = vector.load %arg3[%c0_3, %c0_4, %c0_5] : memref<3x24x22xf32, #tpu.memory_space<vmem>>, vector<1x24x22xf32>
    %3 = vector.shape_cast %2 : vector<1x24x22xf32> to vector<24x22xf32>
    %4 = vector.extract_strided_slice %3 {offsets = [0, 0], sizes = [24, 12], strides = [1, 1]} : vector<24x22xf32> to vector<24x12xf32>
    %5 = vector.extract_strided_slice %3 {offsets = [0, 12], sizes = [24, 9], strides = [1, 1]} : vector<24x22xf32> to vector<24x9xf32>
    %6 = vector.extract_strided_slice %3 {offsets = [0, 21], sizes = [24, 1], strides = [1, 1]} : vector<24x22xf32> to vector<24x1xf32>
    %cst = arith.constant dense<0.000000e+00> : vector<24x512xf32>
    %7 = tpu.matmul %4, %0, %cst {dimension_numbers = #tpu.dot_dimension_numbers<[1], [0], [0], [1], [0, 0, 1, 1], [], []>} : vector<24x12xf32>, vector<12x512xf32>, vector<24x512xf32> -> vector<24x512xf32>
    %8 = vector.broadcast %6 : vector<24x1xf32> to vector<24x512xf32>
    %9 = arith.addf %7, %8 : vector<24x512xf32>
    %10 = vector.extract_strided_slice %5 {offsets = [0, 4], sizes = [24, 1], strides = [1, 1]} : vector<24x9xf32> to vector<24x1xf32>
    %11 = vector.broadcast %10 : vector<24x1xf32> to vector<24x512xf32>
    %12 = arith.mulf %11, %9 : vector<24x512xf32>
    %c17_i32 = arith.constant 17 : i32
    %13 = tpu.dynamic_rotate %9 by %c17_i32 dim 1 : vector<24x512xf32>, i32 -> vector<24x512xf32>
    %14 = vector.extract_strided_slice %5 {offsets = [0, 0], sizes = [24, 1], strides = [1, 1]} : vector<24x9xf32> to vector<24x1xf32>
    %15 = vector.extract_strided_slice %1 {offsets = [0, 0], sizes = [1, 512], strides = [1, 1]} : vector<8x512xf32> to vector<1x512xf32>
    %16 = vector.broadcast %15 : vector<1x512xf32> to vector<24x512xf32>
    %17 = arith.mulf %13, %16 : vector<24x512xf32>
    %18 = vector.broadcast %14 : vector<24x1xf32> to vector<24x512xf32>
    %19 = arith.mulf %18, %17 : vector<24x512xf32>
    %20 = arith.addf %12, %19 : vector<24x512xf32>
    %c16_i32 = arith.constant 16 : i32
    %21 = tpu.dynamic_rotate %9 by %c16_i32 dim 1 : vector<24x512xf32>, i32 -> vector<24x512xf32>
    %22 = vector.extract_strided_slice %5 {offsets = [0, 1], sizes = [24, 1], strides = [1, 1]} : vector<24x9xf32> to vector<24x1xf32>
    %23 = vector.extract_strided_slice %1 {offsets = [1, 0], sizes = [1, 512], strides = [1, 1]} : vector<8x512xf32> to vector<1x512xf32>
    %24 = vector.broadcast %23 : vector<1x512xf32> to vector<24x512xf32>
    %25 = arith.mulf %21, %24 : vector<24x512xf32>
    %26 = vector.broadcast %22 : vector<24x1xf32> to vector<24x512xf32>
    %27 = arith.mulf %26, %25 : vector<24x512xf32>
    %28 = arith.addf %20, %27 : vector<24x512xf32>
    %c15_i32 = arith.constant 15 : i32
    %29 = tpu.dynamic_rotate %9 by %c15_i32 dim 1 : vector<24x512xf32>, i32 -> vector<24x512xf32>
    %30 = vector.extract_strided_slice %5 {offsets = [0, 2], sizes = [24, 1], strides = [1, 1]} : vector<24x9xf32> to vector<24x1xf32>
    %31 = vector.extract_strided_slice %1 {offsets = [2, 0], sizes = [1, 512], strides = [1, 1]} : vector<8x512xf32> to vector<1x512xf32>
    %32 = vector.broadcast %31 : vector<1x512xf32> to vector<24x512xf32>
    %33 = arith.mulf %29, %32 : vector<24x512xf32>
    %34 = vector.broadcast %30 : vector<24x1xf32> to vector<24x512xf32>
    %35 = arith.mulf %34, %33 : vector<24x512xf32>
    %36 = arith.addf %28, %35 : vector<24x512xf32>
    %c1_i32 = arith.constant 1 : i32
    %37 = tpu.dynamic_rotate %9 by %c1_i32 dim 1 : vector<24x512xf32>, i32 -> vector<24x512xf32>
    %38 = vector.extract_strided_slice %5 {offsets = [0, 3], sizes = [24, 1], strides = [1, 1]} : vector<24x9xf32> to vector<24x1xf32>
    %39 = vector.extract_strided_slice %1 {offsets = [3, 0], sizes = [1, 512], strides = [1, 1]} : vector<8x512xf32> to vector<1x512xf32>
    %40 = vector.broadcast %39 : vector<1x512xf32> to vector<24x512xf32>
    %41 = arith.mulf %37, %40 : vector<24x512xf32>
    %42 = vector.broadcast %38 : vector<24x1xf32> to vector<24x512xf32>
    %43 = arith.mulf %42, %41 : vector<24x512xf32>
    %44 = arith.addf %36, %43 : vector<24x512xf32>
    %c511_i32 = arith.constant 511 : i32
    %45 = tpu.dynamic_rotate %9 by %c511_i32 dim 1 : vector<24x512xf32>, i32 -> vector<24x512xf32>
    %46 = vector.extract_strided_slice %5 {offsets = [0, 5], sizes = [24, 1], strides = [1, 1]} : vector<24x9xf32> to vector<24x1xf32>
    %47 = vector.extract_strided_slice %1 {offsets = [4, 0], sizes = [1, 512], strides = [1, 1]} : vector<8x512xf32> to vector<1x512xf32>
    %48 = vector.broadcast %47 : vector<1x512xf32> to vector<24x512xf32>
    %49 = arith.mulf %45, %48 : vector<24x512xf32>
    %50 = vector.broadcast %46 : vector<24x1xf32> to vector<24x512xf32>
    %51 = arith.mulf %50, %49 : vector<24x512xf32>
    %52 = arith.addf %44, %51 : vector<24x512xf32>
    %c497_i32 = arith.constant 497 : i32
    %53 = tpu.dynamic_rotate %9 by %c497_i32 dim 1 : vector<24x512xf32>, i32 -> vector<24x512xf32>
    %54 = vector.extract_strided_slice %5 {offsets = [0, 6], sizes = [24, 1], strides = [1, 1]} : vector<24x9xf32> to vector<24x1xf32>
    %55 = vector.extract_strided_slice %1 {offsets = [5, 0], sizes = [1, 512], strides = [1, 1]} : vector<8x512xf32> to vector<1x512xf32>
    %56 = vector.broadcast %55 : vector<1x512xf32> to vector<24x512xf32>
    %57 = arith.mulf %53, %56 : vector<24x512xf32>
    %58 = vector.broadcast %54 : vector<24x1xf32> to vector<24x512xf32>
    %59 = arith.mulf %58, %57 : vector<24x512xf32>
    %60 = arith.addf %52, %59 : vector<24x512xf32>
    %c496_i32 = arith.constant 496 : i32
    %61 = tpu.dynamic_rotate %9 by %c496_i32 dim 1 : vector<24x512xf32>, i32 -> vector<24x512xf32>
    %62 = vector.extract_strided_slice %5 {offsets = [0, 7], sizes = [24, 1], strides = [1, 1]} : vector<24x9xf32> to vector<24x1xf32>
    %63 = vector.extract_strided_slice %1 {offsets = [6, 0], sizes = [1, 512], strides = [1, 1]} : vector<8x512xf32> to vector<1x512xf32>
    %64 = vector.broadcast %63 : vector<1x512xf32> to vector<24x512xf32>
    %65 = arith.mulf %61, %64 : vector<24x512xf32>
    %66 = vector.broadcast %62 : vector<24x1xf32> to vector<24x512xf32>
    %67 = arith.mulf %66, %65 : vector<24x512xf32>
    %68 = arith.addf %60, %67 : vector<24x512xf32>
    %c495_i32 = arith.constant 495 : i32
    %69 = tpu.dynamic_rotate %9 by %c495_i32 dim 1 : vector<24x512xf32>, i32 -> vector<24x512xf32>
    %70 = vector.extract_strided_slice %5 {offsets = [0, 8], sizes = [24, 1], strides = [1, 1]} : vector<24x9xf32> to vector<24x1xf32>
    %71 = vector.extract_strided_slice %1 {offsets = [7, 0], sizes = [1, 512], strides = [1, 1]} : vector<8x512xf32> to vector<1x512xf32>
    %72 = vector.broadcast %71 : vector<1x512xf32> to vector<24x512xf32>
    %73 = arith.mulf %69, %72 : vector<24x512xf32>
    %74 = vector.broadcast %70 : vector<24x1xf32> to vector<24x512xf32>
    %75 = arith.mulf %74, %73 : vector<24x512xf32>
    %76 = arith.addf %68, %75 : vector<24x512xf32>
    %c0_6 = arith.constant 0 : index
    %c0_7 = arith.constant 0 : index
    %c0_8 = arith.constant 0 : index
    %77 = vector.load %arg4[%c0_6, %c0_7, %c0_8] : memref<3x12x25xf32, #tpu.memory_space<vmem>>, vector<1x12x25xf32>
    %78 = vector.shape_cast %77 : vector<1x12x25xf32> to vector<12x25xf32>
    %79 = vector.extract_strided_slice %78 {offsets = [0, 0], sizes = [12, 24], strides = [1, 1]} : vector<12x25xf32> to vector<12x24xf32>
    %cst_9 = arith.constant dense<0.000000e+00> : vector<12x512xf32>
    %80 = tpu.matmul %79, %76, %cst_9 {dimension_numbers = #tpu.dot_dimension_numbers<[1], [0], [0], [1], [0, 0, 1, 1], [], []>} : vector<12x24xf32>, vector<24x512xf32>, vector<12x512xf32> -> vector<12x512xf32>
    %81 = vector.extract_strided_slice %78 {offsets = [0, 24], sizes = [12, 1], strides = [1, 1]} : vector<12x25xf32> to vector<12x1xf32>
    %82 = vector.broadcast %81 : vector<12x1xf32> to vector<12x512xf32>
    %83 = arith.addf %80, %82 : vector<12x512xf32>
    %cst_10 = arith.constant 2.000000e-01 : f32
    %84 = vector.broadcast %cst_10 : f32 to vector<12x512xf32>
    %85 = arith.mulf %84, %83 : vector<12x512xf32>
    %86 = arith.maximumf %83, %85 : vector<12x512xf32>
    %c1 = arith.constant 1 : index
    %c0_11 = arith.constant 0 : index
    %c0_12 = arith.constant 0 : index
    %87 = vector.load %arg3[%c1, %c0_11, %c0_12] : memref<3x24x22xf32, #tpu.memory_space<vmem>>, vector<1x24x22xf32>
    %88 = vector.shape_cast %87 : vector<1x24x22xf32> to vector<24x22xf32>
    %89 = vector.extract_strided_slice %88 {offsets = [0, 0], sizes = [24, 12], strides = [1, 1]} : vector<24x22xf32> to vector<24x12xf32>
    %90 = vector.extract_strided_slice %88 {offsets = [0, 12], sizes = [24, 9], strides = [1, 1]} : vector<24x22xf32> to vector<24x9xf32>
    %91 = vector.extract_strided_slice %88 {offsets = [0, 21], sizes = [24, 1], strides = [1, 1]} : vector<24x22xf32> to vector<24x1xf32>
    %cst_13 = arith.constant dense<0.000000e+00> : vector<24x512xf32>
    %92 = tpu.matmul %89, %86, %cst_13 {dimension_numbers = #tpu.dot_dimension_numbers<[1], [0], [0], [1], [0, 0, 1, 1], [], []>} : vector<24x12xf32>, vector<12x512xf32>, vector<24x512xf32> -> vector<24x512xf32>
    %93 = vector.broadcast %91 : vector<24x1xf32> to vector<24x512xf32>
    %94 = arith.addf %92, %93 : vector<24x512xf32>
    %95 = vector.extract_strided_slice %90 {offsets = [0, 4], sizes = [24, 1], strides = [1, 1]} : vector<24x9xf32> to vector<24x1xf32>
    %96 = vector.broadcast %95 : vector<24x1xf32> to vector<24x512xf32>
    %97 = arith.mulf %96, %94 : vector<24x512xf32>
    %c17_i32_14 = arith.constant 17 : i32
    %98 = tpu.dynamic_rotate %94 by %c17_i32_14 dim 1 : vector<24x512xf32>, i32 -> vector<24x512xf32>
    %99 = vector.extract_strided_slice %90 {offsets = [0, 0], sizes = [24, 1], strides = [1, 1]} : vector<24x9xf32> to vector<24x1xf32>
    %100 = vector.extract_strided_slice %1 {offsets = [0, 0], sizes = [1, 512], strides = [1, 1]} : vector<8x512xf32> to vector<1x512xf32>
    %101 = vector.broadcast %100 : vector<1x512xf32> to vector<24x512xf32>
    %102 = arith.mulf %98, %101 : vector<24x512xf32>
    %103 = vector.broadcast %99 : vector<24x1xf32> to vector<24x512xf32>
    %104 = arith.mulf %103, %102 : vector<24x512xf32>
    %105 = arith.addf %97, %104 : vector<24x512xf32>
    %c16_i32_15 = arith.constant 16 : i32
    %106 = tpu.dynamic_rotate %94 by %c16_i32_15 dim 1 : vector<24x512xf32>, i32 -> vector<24x512xf32>
    %107 = vector.extract_strided_slice %90 {offsets = [0, 1], sizes = [24, 1], strides = [1, 1]} : vector<24x9xf32> to vector<24x1xf32>
    %108 = vector.extract_strided_slice %1 {offsets = [1, 0], sizes = [1, 512], strides = [1, 1]} : vector<8x512xf32> to vector<1x512xf32>
    %109 = vector.broadcast %108 : vector<1x512xf32> to vector<24x512xf32>
    %110 = arith.mulf %106, %109 : vector<24x512xf32>
    %111 = vector.broadcast %107 : vector<24x1xf32> to vector<24x512xf32>
    %112 = arith.mulf %111, %110 : vector<24x512xf32>
    %113 = arith.addf %105, %112 : vector<24x512xf32>
    %c15_i32_16 = arith.constant 15 : i32
    %114 = tpu.dynamic_rotate %94 by %c15_i32_16 dim 1 : vector<24x512xf32>, i32 -> vector<24x512xf32>
    %115 = vector.extract_strided_slice %90 {offsets = [0, 2], sizes = [24, 1], strides = [1, 1]} : vector<24x9xf32> to vector<24x1xf32>
    %116 = vector.extract_strided_slice %1 {offsets = [2, 0], sizes = [1, 512], strides = [1, 1]} : vector<8x512xf32> to vector<1x512xf32>
    %117 = vector.broadcast %116 : vector<1x512xf32> to vector<24x512xf32>
    %118 = arith.mulf %114, %117 : vector<24x512xf32>
    %119 = vector.broadcast %115 : vector<24x1xf32> to vector<24x512xf32>
    %120 = arith.mulf %119, %118 : vector<24x512xf32>
    %121 = arith.addf %113, %120 : vector<24x512xf32>
    %c1_i32_17 = arith.constant 1 : i32
    %122 = tpu.dynamic_rotate %94 by %c1_i32_17 dim 1 : vector<24x512xf32>, i32 -> vector<24x512xf32>
    %123 = vector.extract_strided_slice %90 {offsets = [0, 3], sizes = [24, 1], strides = [1, 1]} : vector<24x9xf32> to vector<24x1xf32>
    %124 = vector.extract_strided_slice %1 {offsets = [3, 0], sizes = [1, 512], strides = [1, 1]} : vector<8x512xf32> to vector<1x512xf32>
    %125 = vector.broadcast %124 : vector<1x512xf32> to vector<24x512xf32>
    %126 = arith.mulf %122, %125 : vector<24x512xf32>
    %127 = vector.broadcast %123 : vector<24x1xf32> to vector<24x512xf32>
    %128 = arith.mulf %127, %126 : vector<24x512xf32>
    %129 = arith.addf %121, %128 : vector<24x512xf32>
    %c511_i32_18 = arith.constant 511 : i32
    %130 = tpu.dynamic_rotate %94 by %c511_i32_18 dim 1 : vector<24x512xf32>, i32 -> vector<24x512xf32>
    %131 = vector.extract_strided_slice %90 {offsets = [0, 5], sizes = [24, 1], strides = [1, 1]} : vector<24x9xf32> to vector<24x1xf32>
    %132 = vector.extract_strided_slice %1 {offsets = [4, 0], sizes = [1, 512], strides = [1, 1]} : vector<8x512xf32> to vector<1x512xf32>
    %133 = vector.broadcast %132 : vector<1x512xf32> to vector<24x512xf32>
    %134 = arith.mulf %130, %133 : vector<24x512xf32>
    %135 = vector.broadcast %131 : vector<24x1xf32> to vector<24x512xf32>
    %136 = arith.mulf %135, %134 : vector<24x512xf32>
    %137 = arith.addf %129, %136 : vector<24x512xf32>
    %c497_i32_19 = arith.constant 497 : i32
    %138 = tpu.dynamic_rotate %94 by %c497_i32_19 dim 1 : vector<24x512xf32>, i32 -> vector<24x512xf32>
    %139 = vector.extract_strided_slice %90 {offsets = [0, 6], sizes = [24, 1], strides = [1, 1]} : vector<24x9xf32> to vector<24x1xf32>
    %140 = vector.extract_strided_slice %1 {offsets = [5, 0], sizes = [1, 512], strides = [1, 1]} : vector<8x512xf32> to vector<1x512xf32>
    %141 = vector.broadcast %140 : vector<1x512xf32> to vector<24x512xf32>
    %142 = arith.mulf %138, %141 : vector<24x512xf32>
    %143 = vector.broadcast %139 : vector<24x1xf32> to vector<24x512xf32>
    %144 = arith.mulf %143, %142 : vector<24x512xf32>
    %145 = arith.addf %137, %144 : vector<24x512xf32>
    %c496_i32_20 = arith.constant 496 : i32
    %146 = tpu.dynamic_rotate %94 by %c496_i32_20 dim 1 : vector<24x512xf32>, i32 -> vector<24x512xf32>
    %147 = vector.extract_strided_slice %90 {offsets = [0, 7], sizes = [24, 1], strides = [1, 1]} : vector<24x9xf32> to vector<24x1xf32>
    %148 = vector.extract_strided_slice %1 {offsets = [6, 0], sizes = [1, 512], strides = [1, 1]} : vector<8x512xf32> to vector<1x512xf32>
    %149 = vector.broadcast %148 : vector<1x512xf32> to vector<24x512xf32>
    %150 = arith.mulf %146, %149 : vector<24x512xf32>
    %151 = vector.broadcast %147 : vector<24x1xf32> to vector<24x512xf32>
    %152 = arith.mulf %151, %150 : vector<24x512xf32>
    %153 = arith.addf %145, %152 : vector<24x512xf32>
    %c495_i32_21 = arith.constant 495 : i32
    %154 = tpu.dynamic_rotate %94 by %c495_i32_21 dim 1 : vector<24x512xf32>, i32 -> vector<24x512xf32>
    %155 = vector.extract_strided_slice %90 {offsets = [0, 8], sizes = [24, 1], strides = [1, 1]} : vector<24x9xf32> to vector<24x1xf32>
    %156 = vector.extract_strided_slice %1 {offsets = [7, 0], sizes = [1, 512], strides = [1, 1]} : vector<8x512xf32> to vector<1x512xf32>
    %157 = vector.broadcast %156 : vector<1x512xf32> to vector<24x512xf32>
    %158 = arith.mulf %154, %157 : vector<24x512xf32>
    %159 = vector.broadcast %155 : vector<24x1xf32> to vector<24x512xf32>
    %160 = arith.mulf %159, %158 : vector<24x512xf32>
    %161 = arith.addf %153, %160 : vector<24x512xf32>
    %c1_22 = arith.constant 1 : index
    %c0_23 = arith.constant 0 : index
    %c0_24 = arith.constant 0 : index
    %162 = vector.load %arg4[%c1_22, %c0_23, %c0_24] : memref<3x12x25xf32, #tpu.memory_space<vmem>>, vector<1x12x25xf32>
    %163 = vector.shape_cast %162 : vector<1x12x25xf32> to vector<12x25xf32>
    %164 = vector.extract_strided_slice %163 {offsets = [0, 0], sizes = [12, 24], strides = [1, 1]} : vector<12x25xf32> to vector<12x24xf32>
    %cst_25 = arith.constant dense<0.000000e+00> : vector<12x512xf32>
    %165 = tpu.matmul %164, %161, %cst_25 {dimension_numbers = #tpu.dot_dimension_numbers<[1], [0], [0], [1], [0, 0, 1, 1], [], []>} : vector<12x24xf32>, vector<24x512xf32>, vector<12x512xf32> -> vector<12x512xf32>
    %166 = vector.extract_strided_slice %163 {offsets = [0, 24], sizes = [12, 1], strides = [1, 1]} : vector<12x25xf32> to vector<12x1xf32>
    %167 = vector.broadcast %166 : vector<12x1xf32> to vector<12x512xf32>
    %168 = arith.addf %165, %167 : vector<12x512xf32>
    %cst_26 = arith.constant 2.000000e-01 : f32
    %169 = vector.broadcast %cst_26 : f32 to vector<12x512xf32>
    %170 = arith.mulf %169, %168 : vector<12x512xf32>
    %171 = arith.maximumf %168, %170 : vector<12x512xf32>
    %c2 = arith.constant 2 : index
    %c0_27 = arith.constant 0 : index
    %c0_28 = arith.constant 0 : index
    %172 = vector.load %arg3[%c2, %c0_27, %c0_28] : memref<3x24x22xf32, #tpu.memory_space<vmem>>, vector<1x24x22xf32>
    %173 = vector.shape_cast %172 : vector<1x24x22xf32> to vector<24x22xf32>
    %174 = vector.extract_strided_slice %173 {offsets = [0, 0], sizes = [24, 12], strides = [1, 1]} : vector<24x22xf32> to vector<24x12xf32>
    %175 = vector.extract_strided_slice %173 {offsets = [0, 12], sizes = [24, 9], strides = [1, 1]} : vector<24x22xf32> to vector<24x9xf32>
    %176 = vector.extract_strided_slice %173 {offsets = [0, 21], sizes = [24, 1], strides = [1, 1]} : vector<24x22xf32> to vector<24x1xf32>
    %cst_29 = arith.constant dense<0.000000e+00> : vector<24x512xf32>
    %177 = tpu.matmul %174, %171, %cst_29 {dimension_numbers = #tpu.dot_dimension_numbers<[1], [0], [0], [1], [0, 0, 1, 1], [], []>} : vector<24x12xf32>, vector<12x512xf32>, vector<24x512xf32> -> vector<24x512xf32>
    %178 = vector.broadcast %176 : vector<24x1xf32> to vector<24x512xf32>
    %179 = arith.addf %177, %178 : vector<24x512xf32>
    %180 = vector.extract_strided_slice %175 {offsets = [0, 4], sizes = [24, 1], strides = [1, 1]} : vector<24x9xf32> to vector<24x1xf32>
    %181 = vector.broadcast %180 : vector<24x1xf32> to vector<24x512xf32>
    %182 = arith.mulf %181, %179 : vector<24x512xf32>
    %c17_i32_30 = arith.constant 17 : i32
    %183 = tpu.dynamic_rotate %179 by %c17_i32_30 dim 1 : vector<24x512xf32>, i32 -> vector<24x512xf32>
    %184 = vector.extract_strided_slice %175 {offsets = [0, 0], sizes = [24, 1], strides = [1, 1]} : vector<24x9xf32> to vector<24x1xf32>
    %185 = vector.extract_strided_slice %1 {offsets = [0, 0], sizes = [1, 512], strides = [1, 1]} : vector<8x512xf32> to vector<1x512xf32>
    %186 = vector.broadcast %185 : vector<1x512xf32> to vector<24x512xf32>
    %187 = arith.mulf %183, %186 : vector<24x512xf32>
    %188 = vector.broadcast %184 : vector<24x1xf32> to vector<24x512xf32>
    %189 = arith.mulf %188, %187 : vector<24x512xf32>
    %190 = arith.addf %182, %189 : vector<24x512xf32>
    %c16_i32_31 = arith.constant 16 : i32
    %191 = tpu.dynamic_rotate %179 by %c16_i32_31 dim 1 : vector<24x512xf32>, i32 -> vector<24x512xf32>
    %192 = vector.extract_strided_slice %175 {offsets = [0, 1], sizes = [24, 1], strides = [1, 1]} : vector<24x9xf32> to vector<24x1xf32>
    %193 = vector.extract_strided_slice %1 {offsets = [1, 0], sizes = [1, 512], strides = [1, 1]} : vector<8x512xf32> to vector<1x512xf32>
    %194 = vector.broadcast %193 : vector<1x512xf32> to vector<24x512xf32>
    %195 = arith.mulf %191, %194 : vector<24x512xf32>
    %196 = vector.broadcast %192 : vector<24x1xf32> to vector<24x512xf32>
    %197 = arith.mulf %196, %195 : vector<24x512xf32>
    %198 = arith.addf %190, %197 : vector<24x512xf32>
    %c15_i32_32 = arith.constant 15 : i32
    %199 = tpu.dynamic_rotate %179 by %c15_i32_32 dim 1 : vector<24x512xf32>, i32 -> vector<24x512xf32>
    %200 = vector.extract_strided_slice %175 {offsets = [0, 2], sizes = [24, 1], strides = [1, 1]} : vector<24x9xf32> to vector<24x1xf32>
    %201 = vector.extract_strided_slice %1 {offsets = [2, 0], sizes = [1, 512], strides = [1, 1]} : vector<8x512xf32> to vector<1x512xf32>
    %202 = vector.broadcast %201 : vector<1x512xf32> to vector<24x512xf32>
    %203 = arith.mulf %199, %202 : vector<24x512xf32>
    %204 = vector.broadcast %200 : vector<24x1xf32> to vector<24x512xf32>
    %205 = arith.mulf %204, %203 : vector<24x512xf32>
    %206 = arith.addf %198, %205 : vector<24x512xf32>
    %c1_i32_33 = arith.constant 1 : i32
    %207 = tpu.dynamic_rotate %179 by %c1_i32_33 dim 1 : vector<24x512xf32>, i32 -> vector<24x512xf32>
    %208 = vector.extract_strided_slice %175 {offsets = [0, 3], sizes = [24, 1], strides = [1, 1]} : vector<24x9xf32> to vector<24x1xf32>
    %209 = vector.extract_strided_slice %1 {offsets = [3, 0], sizes = [1, 512], strides = [1, 1]} : vector<8x512xf32> to vector<1x512xf32>
    %210 = vector.broadcast %209 : vector<1x512xf32> to vector<24x512xf32>
    %211 = arith.mulf %207, %210 : vector<24x512xf32>
    %212 = vector.broadcast %208 : vector<24x1xf32> to vector<24x512xf32>
    %213 = arith.mulf %212, %211 : vector<24x512xf32>
    %214 = arith.addf %206, %213 : vector<24x512xf32>
    %c511_i32_34 = arith.constant 511 : i32
    %215 = tpu.dynamic_rotate %179 by %c511_i32_34 dim 1 : vector<24x512xf32>, i32 -> vector<24x512xf32>
    %216 = vector.extract_strided_slice %175 {offsets = [0, 5], sizes = [24, 1], strides = [1, 1]} : vector<24x9xf32> to vector<24x1xf32>
    %217 = vector.extract_strided_slice %1 {offsets = [4, 0], sizes = [1, 512], strides = [1, 1]} : vector<8x512xf32> to vector<1x512xf32>
    %218 = vector.broadcast %217 : vector<1x512xf32> to vector<24x512xf32>
    %219 = arith.mulf %215, %218 : vector<24x512xf32>
    %220 = vector.broadcast %216 : vector<24x1xf32> to vector<24x512xf32>
    %221 = arith.mulf %220, %219 : vector<24x512xf32>
    %222 = arith.addf %214, %221 : vector<24x512xf32>
    %c497_i32_35 = arith.constant 497 : i32
    %223 = tpu.dynamic_rotate %179 by %c497_i32_35 dim 1 : vector<24x512xf32>, i32 -> vector<24x512xf32>
    %224 = vector.extract_strided_slice %175 {offsets = [0, 6], sizes = [24, 1], strides = [1, 1]} : vector<24x9xf32> to vector<24x1xf32>
    %225 = vector.extract_strided_slice %1 {offsets = [5, 0], sizes = [1, 512], strides = [1, 1]} : vector<8x512xf32> to vector<1x512xf32>
    %226 = vector.broadcast %225 : vector<1x512xf32> to vector<24x512xf32>
    %227 = arith.mulf %223, %226 : vector<24x512xf32>
    %228 = vector.broadcast %224 : vector<24x1xf32> to vector<24x512xf32>
    %229 = arith.mulf %228, %227 : vector<24x512xf32>
    %230 = arith.addf %222, %229 : vector<24x512xf32>
    %c496_i32_36 = arith.constant 496 : i32
    %231 = tpu.dynamic_rotate %179 by %c496_i32_36 dim 1 : vector<24x512xf32>, i32 -> vector<24x512xf32>
    %232 = vector.extract_strided_slice %175 {offsets = [0, 7], sizes = [24, 1], strides = [1, 1]} : vector<24x9xf32> to vector<24x1xf32>
    %233 = vector.extract_strided_slice %1 {offsets = [6, 0], sizes = [1, 512], strides = [1, 1]} : vector<8x512xf32> to vector<1x512xf32>
    %234 = vector.broadcast %233 : vector<1x512xf32> to vector<24x512xf32>
    %235 = arith.mulf %231, %234 : vector<24x512xf32>
    %236 = vector.broadcast %232 : vector<24x1xf32> to vector<24x512xf32>
    %237 = arith.mulf %236, %235 : vector<24x512xf32>
    %238 = arith.addf %230, %237 : vector<24x512xf32>
    %c495_i32_37 = arith.constant 495 : i32
    %239 = tpu.dynamic_rotate %179 by %c495_i32_37 dim 1 : vector<24x512xf32>, i32 -> vector<24x512xf32>
    %240 = vector.extract_strided_slice %175 {offsets = [0, 8], sizes = [24, 1], strides = [1, 1]} : vector<24x9xf32> to vector<24x1xf32>
    %241 = vector.extract_strided_slice %1 {offsets = [7, 0], sizes = [1, 512], strides = [1, 1]} : vector<8x512xf32> to vector<1x512xf32>
    %242 = vector.broadcast %241 : vector<1x512xf32> to vector<24x512xf32>
    %243 = arith.mulf %239, %242 : vector<24x512xf32>
    %244 = vector.broadcast %240 : vector<24x1xf32> to vector<24x512xf32>
    %245 = arith.mulf %244, %243 : vector<24x512xf32>
    %246 = arith.addf %238, %245 : vector<24x512xf32>
    %c2_38 = arith.constant 2 : index
    %c0_39 = arith.constant 0 : index
    %c0_40 = arith.constant 0 : index
    %247 = vector.load %arg4[%c2_38, %c0_39, %c0_40] : memref<3x12x25xf32, #tpu.memory_space<vmem>>, vector<1x12x25xf32>
    %248 = vector.shape_cast %247 : vector<1x12x25xf32> to vector<12x25xf32>
    %249 = vector.extract_strided_slice %248 {offsets = [0, 0], sizes = [12, 24], strides = [1, 1]} : vector<12x25xf32> to vector<12x24xf32>
    %cst_41 = arith.constant dense<0.000000e+00> : vector<12x512xf32>
    %250 = tpu.matmul %249, %246, %cst_41 {dimension_numbers = #tpu.dot_dimension_numbers<[1], [0], [0], [1], [0, 0, 1, 1], [], []>} : vector<12x24xf32>, vector<24x512xf32>, vector<12x512xf32> -> vector<12x512xf32>
    %251 = vector.extract_strided_slice %248 {offsets = [0, 24], sizes = [12, 1], strides = [1, 1]} : vector<12x25xf32> to vector<12x1xf32>
    %252 = vector.broadcast %251 : vector<12x1xf32> to vector<12x512xf32>
    %253 = arith.addf %250, %252 : vector<12x512xf32>
    %cst_42 = arith.constant 2.000000e-01 : f32
    %254 = vector.broadcast %cst_42 : f32 to vector<12x512xf32>
    %255 = arith.mulf %254, %253 : vector<12x512xf32>
    %256 = arith.maximumf %253, %255 : vector<12x512xf32>
    %c0_43 = arith.constant 0 : index
    %c0_44 = arith.constant 0 : index
    %257 = vector.load %arg5[%c0_43, %c0_44] : memref<12x13xf32, #tpu.memory_space<vmem>>, vector<12x13xf32>
    %258 = vector.extract_strided_slice %257 {offsets = [0, 0], sizes = [12, 12], strides = [1, 1]} : vector<12x13xf32> to vector<12x12xf32>
    %cst_45 = arith.constant dense<0.000000e+00> : vector<12x512xf32>
    %259 = tpu.matmul %258, %256, %cst_45 {dimension_numbers = #tpu.dot_dimension_numbers<[1], [0], [0], [1], [0, 0, 1, 1], [], []>} : vector<12x12xf32>, vector<12x512xf32>, vector<12x512xf32> -> vector<12x512xf32>
    %260 = vector.extract_strided_slice %257 {offsets = [0, 12], sizes = [12, 1], strides = [1, 1]} : vector<12x13xf32> to vector<12x1xf32>
    %261 = vector.broadcast %260 : vector<12x1xf32> to vector<12x512xf32>
    %262 = arith.addf %259, %261 : vector<12x512xf32>
    %263 = arith.addf %262, %0 : vector<12x512xf32>
    %c0_46 = arith.constant 0 : index
    %c0_47 = arith.constant 0 : index
    %264 = vector.load %arg6[%c0_46, %c0_47] : memref<12x512xf32, #tpu.memory_space<vmem>>, vector<12x512xf32>
    tpu.vector_store %arg6[%c0_46, %c0_47], %263 {strides = array<i32>} : memref<12x512xf32, #tpu.memory_space<vmem>>, vector<12x512xf32>,
    return
  }
  func.func @transform_0(%arg0: i32) -> (i32, i32) {
    %c0_i32 = arith.constant 0 : i32
    %c0_i32_0 = arith.constant 0 : i32
    return %c0_i32, %arg0 : i32, i32
  }
  func.func @transform_1(%arg0: i32) -> (i32, i32) {
    %c0_i32 = arith.constant 0 : i32
    %c0_i32_0 = arith.constant 0 : i32
    %c0_i32_1 = arith.constant 0 : i32
    return %c0_i32, %c0_i32_0 : i32, i32
  }
  func.func @transform_2(%arg0: i32) -> (i32, i32, i32) {
    %c0_i32 = arith.constant 0 : i32
    %c0_i32_0 = arith.constant 0 : i32
    %c0_i32_1 = arith.constant 0 : i32
    %c0_i32_2 = arith.constant 0 : i32
    return %c0_i32, %c0_i32_0, %c0_i32_1 : i32, i32, i32
  }
  func.func @transform_3(%arg0: i32) -> (i32, i32, i32) {
    %c0_i32 = arith.constant 0 : i32
    %c0_i32_0 = arith.constant 0 : i32
    %c0_i32_1 = arith.constant 0 : i32
    %c0_i32_2 = arith.constant 0 : i32
    return %c0_i32, %c0_i32_0, %c0_i32_1 : i32, i32, i32
  }
  func.func @transform_4(%arg0: i32) -> (i32, i32) {
    %c0_i32 = arith.constant 0 : i32
    %c0_i32_0 = arith.constant 0 : i32
    %c0_i32_1 = arith.constant 0 : i32
    return %c0_i32, %c0_i32_0 : i32, i32
  }
  func.func @transform_5(%arg0: i32) -> (i32, i32) {
    %c0_i32 = arith.constant 0 : i32
    %c0_i32_0 = arith.constant 0 : i32
    return %c0_i32, %arg0 : i32, i32
  }
}

</mosaic_0001>

<bundles_post_ra>
// kernel: tpu_custom_call.1
= control target key start
LH: loop header
LB: loop body
LE: loop exit
PB: predicated region body
PF: predicated region fallthrough
CT: control target
= control target key end

     0   :  { %10 = vsyncpa [#allocation3], 0  ;;  %s8409_s0 = inlined_call_operand.hbm [shape: f32[12,1024], index: 0, kind: input, shape index: {}]   ;;  %s8410_s1 = inlined_call_operand.hbm [shape: f32[8,512], index: 1, kind: input, shape index: {}]   ;;  %s8411_s2 = inlined_call_operand.hbm [shape: f32[3,24,22], index: 2, kind: input, shape index: {}]   ;;  %s8412_s3 = inlined_call_operand.hbm [shape: f32[3,12,25], index: 3, kind: input, shape index: {}]   ;;  %s8413_s4 = inlined_call_operand.hbm [shape: f32[12,13], index: 4, kind: input, shape index: {}]   ;;  %s8414_s5 = inlined_call_operand.hbm [shape: f32[12,1024], index: 5, kind: output, shape index: {}]  }
   0x1   :  { %12 = vsyncpa [#allocation3 + $0x1], 0 }
   0x2   :  { %13 = vsyncpa [#allocation6], 0 }
   0x3   :  { %14 = vsyncpa [#allocation9], 0 }
   0x4   :  { %15 = vsyncpa [#allocation4], 0 }
   0x5   :  { %17 = vsyncpa [#allocation4 + $0x1], 0  ;;  %s4585_s18 = smov 0   ;;  %s4587_s19 = smov 0  }
   0x6   :  { %s4589_s20 = smov 0   ;;  %s4591_s21 = smov 0  }
   0x7 LB: > { %s4606_s22 = sadd.s32 4294967295, %s4519_s21   ;;  %s4033_s23 = sadd.s32 4294967294, %s4519_s21   ;;  %s4519_s21 = sphi %s4591_s21, %s9324_s21   ;;  %s4515_s20 = sphi %s4589_s20, %s9323_s20   ;;  %s4511_s19 = sphi %s4587_s19, %s9322_s19   ;;  %s4507_s18 = sphi %s4585_s18, %s9321_s18  }
   0x8   : > { %p43_p0 = scmp.ne.s32.totalorder %s4511_s19, %s4507_s18  ;;  %p8415_p1 = scmp.eq.s32.totalorder %s4606_s22, 0 }
   0x9   : > { %p157_p3 = scmp.eq.s32.totalorder %s4033_s23, 1  ;;  %p4034_p5 = scmp.ge.s32.totalorder %s4519_s21, 1 }
   0xa   : > { %p4615_p4 = por %p8415_p1, %p43_p0  ;;  %p164_p7 = scmp.lt.s32.totalorder %s4519_s21, 3 }
   0xb   : > { %p4620_p6 = por %p157_p3, %p43_p0  ;;  %s4521_s27 = smov [#allocation5]  }
   0xc   : > { %s8721_s24 = scalar_select %p4615_p4, 1, 0 }
   0xd   : > { %s8722_s25 = scalar_select %p4620_p6, 1, 0 }
   0xe   : > { %p4625_p8 = pnand %p4034_p5, %p164_p7  ;;  %s177_s28 = sshll.u32 %s4521_s27, 4  ;;  %s178_s28 = int_to_ptr.vmem [resolvable:$true] %s177_s28 }
   0xf   : > { %s4522_s30 = smov [#allocation8]   ;;  %s4523_s7 = smov [#allocation7]  }
  0x10   : > { %s8723_s26 = scalar_select %p4625_p8, 1, 0 }
  0x11   : > { %p4127_p10 = pneg %p4625_p8  ;;  %s200_s6 = sshll.u32 %s4522_s30, 4  ;;  %s201_s6 = int_to_ptr.vmem [resolvable:$true] %s200_s6 }
  0x12   : > { %s187_s8 = sshll.u32 %s4523_s7, 4  ;;  %s4326_s9 = scalar_lea.vmem %s178_s28, 512  ;;  %s188_s8 = int_to_ptr.vmem [resolvable:$true] %s187_s8 }
  0x13   : > { %p4634_p11 = pnand %p4127_p10, %p8415_p1  ;;  %p4327_p13 = scmp.ne.s32.totalorder %s178_s28, %s4326_s9 }
  0x14   : > { %p4334_p5 = scmp.lt.s32.totalorder %s178_s28, %s178_s28  ;;  %p4335_p7 = scmp.lt.s32.totalorder %s4326_s9, %s4326_s9 }
  0x15   : > { %p4317_p12 = pneg %p4634_p11 }
  0x16   : > { %p4336_p10 = por %p4335_p7, %p4334_p5 }
  0x17   : > { %p4329_p0 = pnand %p4327_p13, %p4317_p12 }
  0x19   : > { %p4330_p3 = pneg %p4329_p0 }
  0x1b   : > { %p4337_p9 = pnand %p4336_p10, %p4330_p3 }
  0x1d   : > { %4340 = shalt.err (!%p4337_p9)
}
  0x1e   : > { %4130 = dma.hbm_to_vmem [thread:$0]  (!%p4634_p11), %s8410_s1, 512, %s178_s28, [#allocation6]  }
  0x1f   : > { %s4352_s12 = scalar_lea.vmem %s201_s6, 768  ;;  %p4360_p13 = scmp.lt.s32.totalorder %s201_s6, %s201_s6 }
  0x20   : > { %p4353_p1 = scmp.ne.s32.totalorder %s201_s6, %s4352_s12  ;;  %p4361_p0 = scmp.lt.s32.totalorder %s4352_s12, %s4352_s12 }
  0x22   : > { %p4355_p2 = pnand %p4353_p1, %p4317_p12  ;;  %p4362_p4 = por %p4361_p0, %p4360_p13 }
  0x24   : > { %p4356_p6 = pneg %p4355_p2 }
  0x26   : > { %p4363_p8 = pnand %p4362_p4, %p4356_p6 }
  0x28   : > { %4366 = shalt.err (!%p4363_p8)
}
  0x29   : > { %s4524_s13 = smov 128   ;;  %s4525_s14 = smov 8  }
  0x2a   : > { %4136 = dma.hbm_to_vmem [thread:$0]  (!%p4634_p11), %s8412_s3, 768, %s201_s6, [#allocation9], %s4524_s13, %s4524_s13, %s4525_s14  }
  0x2b   : > { %s4378_s17 = scalar_lea.vmem %s188_s8, 1152  ;;  %p4386_p3 = scmp.lt.s32.totalorder %s188_s8, %s188_s8 }
  0x2c   : > { %p4379_p9 = scmp.ne.s32.totalorder %s188_s8, %s4378_s17  ;;  %p4387_p5 = scmp.lt.s32.totalorder %s4378_s17, %s4378_s17 }
  0x2e   : > { %p4381_p1 = pnand %p4379_p9, %p4317_p12  ;;  %p4388_p4 = por %p4387_p5, %p4386_p3 }
  0x30   : > { %p4382_p2 = pneg %p4381_p1 }
  0x32   : > { %p4389_p6 = pnand %p4388_p4, %p4382_p2 }
  0x34   : > { %4392 = shalt.err (!%p4389_p6)
}
  0x35   : > { %4133 = dma.hbm_to_vmem [thread:$0]  (!%p4634_p11), %s8411_s2, 1152, %s188_s8, [#allocation6], %s4524_s13, %s4524_s13, %s4525_s14  }
  0x36   : > { %s4526_s28 = smov [#allocation10]  }
  0x37   : > { %s213_s30 = sshll.u32 %s4526_s28, 4  ;;  %s214_s30 = int_to_ptr.vmem [resolvable:$true] %s213_s30 }
  0x38   : > { %s4404_s6 = scalar_lea.vmem %s214_s30, 256  ;;  %p4412_p13 = scmp.lt.s32.totalorder %s214_s30, %s214_s30 }
  0x39   : > { %p4405_p8 = scmp.ne.s32.totalorder %s214_s30, %s4404_s6  ;;  %p4413_p0 = scmp.lt.s32.totalorder %s4404_s6, %s4404_s6 }
  0x3b   : > { %p4407_p7 = pnand %p4405_p8, %p4317_p12  ;;  %p4414_p9 = por %p4413_p0, %p4412_p13 }
  0x3d   : > { %p4408_p10 = pneg %p4407_p7 }
  0x3f   : > { %p4415_p1 = pnand %p4414_p9, %p4408_p10 }
  0x41   : > { %4418 = shalt.err (!%p4415_p1)
}
  0x42   : > { %4139 = dma.hbm_to_vmem [thread:$0]  (!%p4634_p11), %s8413_s4, 256, %s214_s30, [#allocation9], %s4524_s13, %s4524_s13, %s4525_s14  }
  0x43   : > { %s4673_s8 = sadd.s32 1, %s4519_s21   ;;  %s30_s10 = sadd.s32 1, %s4515_s20 }
  0x44   : > { %s27_s29 = ssub.s32 %s4519_s21, %s4673_s8  ;;  %p37_p12 = scmp.ne.s32.totalorder %s4515_s20, %s4511_s19 }
  0x45   : > { %p28_p2 = scmp.eq.s32.totalorder %s27_s29, 0  ;;  %p38_p3 = scmp.eq.s32.totalorder %s4519_s21, 0 }
  0x46   : > { %p8725_p5 = scmp.eq.s32.totalorder %s4606_s22, 1  ;;  %p4152_p6 = scmp.lt.s32.totalorder %s4519_s21, 2 }
  0x47   : > { %s4689_s12 = scalar_select %p28_p2, %s4515_s20, %s30_s10  }
  0x48   : > { %p4683_p4 = por %p8725_p5, %p37_p12  ;;  %p39_p8 = por %p38_p3, %p37_p12 }
  0x49   : > { %s227_s15 = sand.u32 1, %s4515_s20   ;;  %s4105_s13 = sshll.u32 %s4519_s21, 9 }
  0x4a   : > { %s8726_s11 = scalar_select %p4683_p4, 1, 0 }
  0x4b   : > { %s4040_s16 = sshll.u32 %s227_s15, 6  ;;  %s4696_s23 = scalar_lea.hbm %s8409_s0, %s4105_s13 }
  0x4c   : > { %s231_s27 = scalar_lea.vmem [#allocation2], %s4040_s16  ;;  %p4700_p11 = pnand %p4152_p6, %p39_p8 }
  0x4d   : > { %s238_s28 = sshll.u32 %s231_s27, 4  ;;  %s4704_s6 = scalar_lea.sflag [#allocation3], %s227_s15  ;;  %s4698_s28 = int_to_ptr.vmem [resolvable:$true] %s238_s28 }
  0x4e   : > { %s4419_s7 = scalar_lea.hbm %s4696_s23, 1024  ;;  %p4421_p10 = pneg %p4700_p11 }
  0x4f   : > { %p4420_p7 = scmp.ne.s32.totalorder %s4696_s23, %s4419_s7  ;;  %s4424_s29 = scalar_lea.hbm %s8409_s0, 2048 }
  0x50   : > { %p4425_p9 = scmp.lt.s32.totalorder %s4696_s23, %s8409_s0  ;;  %p4426_p1 = scmp.lt.s32.totalorder %s4424_s29, %s4419_s7 }
  0x51   : > { %p4422_p13 = pnand %p4421_p10, %p4420_p7 }
  0x52   : > { %p4427_p12 = por %p4426_p1, %p4425_p9 }
  0x53   : > { %p4423_p0 = pneg %p4422_p13 }
  0x55   : > { %p4428_p2 = pnand %p4427_p12, %p4423_p0 }
  0x57   : > { %4431 = shalt.err (!%p4428_p2)
}
  0x58   : > { %s4432_s15 = scalar_lea.vmem %s4698_s28, 1024  ;;  %s4527_s14 = smov [#allocation2]  }
  0x59   : > { %p4433_p3 = scmp.ne.s32.totalorder %s4698_s28, %s4432_s15  ;;  %s4437_s17 = sshll.u32 %s4527_s14, 4  ;;  %s4438_s17 = int_to_ptr.vmem [resolvable:$false] %s4437_s17 }
  0x5a   : > { %s4439_s27 = scalar_lea.vmem %s4438_s17, 2048  ;;  %p4440_p8 = scmp.lt.s32.totalorder %s4698_s28, %s4438_s17 }
  0x5b   : > { %p4435_p5 = pnand %p4433_p3, %p4421_p10  ;;  %p4441_p7 = scmp.lt.s32.totalorder %s4439_s27, %s4432_s15 }
  0x5d   : > { %p4436_p6 = pneg %p4435_p5  ;;  %p4442_p13 = por %p4441_p7, %p4440_p8 }
  0x5f   : > { %p4443_p4 = pnand %p4442_p13, %p4436_p6 }
  0x61   : > { %4446 = shalt.err (!%p4443_p4)
}
  0x62   : > { %s4528_s7 = smov 1024   ;;  %s4529_s9 = smov 512  }
  0x63   : > { %s4530_s10 = smov 32   ;;  %p8728_p10 = scmp.ne.s32.totalorder %s8723_s26, 0 }
  0x64   : > { %4143 = dma.hbm_to_vmem [thread:$0]  (!%p4700_p11), %s4696_s23, 1024, %s4698_s28, %s4704_s6, %s4528_s7, %s4529_s9, %s4530_s10  }
  0x65   : > { %250 = sbr.rel (%p8728_p10) target bundleno = 2548 (0x9f4), region = 40 }
  0x6a   : > { %s4728_s29 = sand.u32 1, %s4511_s19   ;;  %p8729_p4 = scmp.ne.s32.totalorder %s8721_s24, 0 }
  0x6b   : > { %s4044_s16 = sshll.u32 %s4728_s29, 6  ;;  %s253_s13 = scalar_lea.sflag [#allocation3], %s4728_s29 }
  0x6c   : > { %s4734_s15 = scalar_lea.vmem [#allocation2], %s4044_s16 }
  0x6d   : > { %4490 = dma.done.wait (%p8729_p4), %s253_s13, 1024  }
  0x6e   : > { %4492 = vsyncadd (%p8729_p4), %s253_s13, 4294966272  ;;  %p8730_p11 = scmp.eq.s32.totalorder %s4606_s22, 0 }
  0x70   : > { %4494 = dma.done.wait (%p8730_p11), [#allocation6], 1664   ;;  %p8731_p0 = pmov %p8730_p11 }
  0x72   : > { %4496 = vsyncadd (%p8731_p0), [#allocation6], 4294965632  ;;  %p8732_p9 = pmov %p8731_p0 }
  0x73   : > { %p8733_p1 = pmov %p8731_p0 }
  0x74   : > { %4498 = dma.done.wait (%p8732_p9), [#allocation9], 1024  }
  0x75   : > { %4500 = vsyncadd (%p8733_p1), [#allocation9], 4294966272  ;;  %v8437_v0 = vmov 0.0   ;;  %v8439_v1 = vmov 21   ;;  %vm338_vm0 = vcmask 1043456   ;;  %v302_v6 = vld [vmem:[%s4734_s15 + $0x8] sm:$0xff] }
  0x76   : > { %415 = vmatprep.mubr.f32.mxu0 %v8437_v0  ;;  %498 = vmatprep.mubr.f32.mxu1 %v8437_v0  ;;  %v306_v2 = vld [vmem:[%s4734_s15 + $0x28] sm:$0xf]  ;;  %v308_v3 = vld [vmem:[%s4734_s15 + $0x38] sm:$0xf]  ;;  %v305_v4 = vld [vmem:[%s4734_s15 + $0x20] sm:$0xf] }
  0x77   : > { %4223 = vset.pattern.permute.xlu1 %v8439_v1  ;;  %4222 = vset.pattern.permute.xlu0 %v8439_v1  ;;  %v307_v5 = vld [vmem:[%s4734_s15 + $0x30] sm:$0xf]  ;;  %v304_v7 = vld [vmem:[%s4734_s15 + $0x18] sm:$0xff]  ;;  %v301_v8 = vld [vmem:[%s4734_s15] sm:$0xff]  ;;  %vm331_vm1 = vcmask 97280   ;;  %v8435_v13 = vmov 16  }
  0x78   : > { %4050 = vmatprep.subr.msk.mxu0 %vm338_vm0, %v306_v2  ;;  %4055 = vmatprep.subr.msk.mxu1 %vm338_vm0, %v308_v3  ;;  %v303_v9 = vld [vmem:[%s4734_s15 + $0x10] sm:$0xff]  ;;  %v4764_v10 = vld [vmem:[#allocation7] sm:$0xff]  ;;  %v4771_v11 = vld [vmem:[#allocation7 + $0x8] sm:$0xff]  ;;  %v8433_v14 = vmov 12   ;;  %v8431_v15 = vmov 13   ;;  %v8429_v16 = vmov 14  }
  0x79   : > { %4051 = vmatpush1.msk.msra.mxu0 %vm338_vm0, %v305_v4  ;;  %4056 = vmatpush1.msk.msra.mxu1 %vm338_vm0, %v307_v5  ;;  %v4774_v12 = vld [vmem:[#allocation7 + $0x10] sm:$0xff]  ;;  %v8427_v17 = vmov 15   ;;  %v8425_v18 = vmov 17   ;;  %v8423_v19 = vmov 18   ;;  %v8421_v20 = vmov 19   ;;  %s4542_s24 = smov 16  }
  0x7a   : > { %381 = vmatprep.subr.mxu0 %v302_v6  ;;  %464 = vmatprep.subr.mxu1 %v304_v7  ;;  %v8419_v21 = vmov 20   ;;  %s4543_s26 = smov 17   ;;  %s4544_s23 = smov 15   ;;  %vm1363_vm10 = vcmask 195584  }
  0x7b   : > { %382 = vmatpush1.msra.mxu0 %v301_v8  ;;  %465 = vmatpush1.msra.mxu1 %v303_v9  ;;  %s4545_s28 = smov 1   ;;  %s4546_s30 = smov 127  }
  0x7c   : > { %4052 = vmatmul.mubr.msk.f32.vlgmr.msra.gmra.mxu0 %vm331_vm1, %v4764_v10  ;;  %4057 = vmatmul.mubr.msk.f32.vlgmr.msra.gmra.mxu1 %vm331_vm1, %v4764_v10  ;;  %s4547_s6 = smov 113   ;;  %s4548_s14 = smov 112  }
  0x7d   : > { %421 = vmatprep.mubr.f32.mxu0 %v8437_v0  ;;  %504 = vmatprep.mubr.f32.mxu1 %v8437_v0  ;;  %s4549_s17 = smov 111   ;;  %s8343_s27 = scalar_lea.vmem [#allocation11], %s4044_s16 }
  0x7e   : > { %318 = vperm.xlu1 %4223, %v4764_v10   ;;  %328 = vperm.xlu0 %4222, %v4774_v12   ;;  %s3922_s7 = sshll.u32 %s8343_s27, 4  ;;  %s4106_s9 = sshll.u32 %s4606_s22, 9  ;;  %s8351_s7 = int_to_ptr.vmem [resolvable:$true] %s3922_s7 }
  0x7f   : > { %s8360_s16 = scalar_lea.hbm %s8414_s5, %s4106_s9  ;;  %s3909_s13 = scalar_lea.sflag [#allocation4], %s4728_s29 }
  0x80   : > { %4053 = vmatmul.mubr.msk.f32.gmra.mxu0 %vm331_vm1, %v4771_v11  ;;  %4058 = vmatmul.mubr.msk.f32.gmra.mxu1 %vm331_vm1, %v4771_v11  ;;  %p9318_p2 = scmp.ne.s32.totalorder %s8726_s11, 0 }
  0x81   : > { %427 = vmatprep.mubr.f32.mxu0 %v8437_v0  ;;  %510 = vmatprep.mubr.f32.mxu1 %v8437_v0 }
  0x82   : > { %4224 = vset.pattern.permute.xlu1 %v8435_v13  ;;  %323 = vperm.xlu0 %4222, %v4771_v11  }
  0x83   : > { %526 = vperm.xlu1 %4224, %v4774_v12  }
  0x84   : > { %4054 = vmatmul.mubr.msk.f32.gmra.mxu0 %vm331_vm1, %v4774_v12  ;;  %4059 = vmatmul.mubr.msk.f32.gmra.mxu1 %vm331_vm1, %v4774_v12 }
  0x85   : > { %1509 = vmatprep.mubr.f32.mxu1 %v8437_v0  ;;  %1432 = vmatprep.mubr.f32.mxu0 %v8437_v0 }
  0x86   : > { %4225 = vset.pattern.permute.xlu0 %v8433_v14 }
  0x87   : > { %522 = vperm.xlu1 %4224, %v4771_v11   ;;  %617 = vperm.xlu0 %4225, %v4774_v12  }
  0x8b   : > { %4226 = vset.pattern.permute.xlu1 %v8433_v14  ;;  %4227 = vset.pattern.permute.xlu0 %v8431_v15 }
  0x8c   : > { %613 = vperm.xlu1 %4226, %v4771_v11   ;;  %718 = vperm.xlu0 %4227, %v4774_v12  }
  0x90   : > { %4228 = vset.pattern.permute.xlu1 %v8435_v13  ;;  %714 = vperm.xlu0 %4227, %v4771_v11  }
  0x91   : > { %518 = vperm.xlu1 %4228, %v4764_v10  }
  0x94   : > { %710 = vperm.xlu0 %4227, %v4764_v10  }
  0x95   : > { %4229 = vset.pattern.permute.xlu1 %v8433_v14 }
  0x96   : > { %609 = vperm.xlu1 %4229, %v4764_v10  }
  0x98   : > { %4231 = vset.pattern.permute.xlu0 %v8429_v16 }
  0x99   : > { %811 = vperm.xlu0 %4231, %v4764_v10  }
  0x9a   : > { %4230 = vset.pattern.permute.xlu1 %v8429_v16 }
  0x9b   : > { %819 = vperm.xlu1 %4230, %v4774_v12  }
  0x9d   : > { %4232 = vset.pattern.permute.xlu0 %v8427_v17 }
  0x9e   : > { %920 = vperm.xlu0 %4232, %v4774_v12  }
  0x9f   : > { %815 = vperm.xlu1 %4230, %v4771_v11  }
  0xa2   : > { %916 = vperm.xlu0 %4232, %v4771_v11  }
  0xa3   : > { %4233 = vset.pattern.permute.xlu1 %v8425_v18 }
  0xa4   : > { %1021 = vperm.xlu1 %4233, %v4774_v12  }
  0xa6   : > { %4235 = vset.pattern.permute.xlu0 %v8425_v18 }
  0xa7   : > { %1017 = vperm.xlu0 %4235, %v4771_v11  }
  0xa8   : > { %4234 = vset.pattern.permute.xlu1 %v8427_v17 }
  0xa9   : > { %912 = vperm.xlu1 %4234, %v4764_v10  }
  0xab   : > { %4238 = vset.pattern.permute.xlu0 %v8423_v19 }
  0xac   : > { %1118 = vperm.xlu0 %4238, %v4771_v11  }
  0xad   : > { %4236 = vset.pattern.permute.xlu1 %v8423_v19 }
  0xae   : > { %1122 = vperm.xlu1 %4236, %v4774_v12  }
  0xb0   : > { %4241 = vset.pattern.permute.xlu0 %v8421_v20 }
  0xb1   : > { %1219 = vperm.xlu0 %4241, %v4771_v11  }
  0xb2   : > { %4237 = vset.pattern.permute.xlu1 %v8425_v18 }
  0xb3   : > { %1013 = vperm.xlu1 %4237, %v4764_v10  }
  0xb5   : > { %4244 = vset.pattern.permute.xlu0 %v8419_v21 }
  0xb7   : > { %4239 = vset.pattern.permute.xlu1 %v8421_v20 }
  0xb8   : > { %1223 = vperm.xlu1 %4239, %v4774_v12  }
  0xbc   : > { %4240 = vset.pattern.permute.xlu1 %v8423_v19 }
  0xbd   : > { %1114 = vperm.xlu1 %4240, %v4764_v10  }
  0xc1   : > { %4242 = vset.pattern.permute.xlu1 %v8419_v21 }
  0xc2   : > { %1324 = vperm.xlu1 %4242, %v4774_v12  }
  0xc6   : > { %4243 = vset.pattern.permute.xlu1 %v8421_v20 }
  0xf9   : > { %v319_v22 = vpop.permute.xlu1 %318  ;;  %v4872_v31 = vpop.permute.xlu0 %328 }
  0xfd   : > { %v324_v32 = vpop.permute.xlu0 %323 }
  0xfe   : > { %v4882_v33 = vpop.permute.xlu1 %526 }
 0x102   : > { %v4890_v36 = vpop.permute.xlu1 %522  ;;  %v4916_v43 = vpop.permute.xlu0 %617 }
 0x103   : > { %8735 = vst [vmem:[#allocation17_spill] sm:$0xff] %v4916_v43 }
 0x107   : > { %v4902_v39 = vpop.permute.xlu1 %613  ;;  %v4930_v47 = vpop.permute.xlu0 %718 }
 0x108   : > { %8734 = vst [vmem:[#allocation16_spill] sm:$0xff] %v4902_v39  ;;  %8736 = vst [vmem:[#allocation18_spill] sm:$0xff] %v4930_v47 }
 0x10b   : > { %v4938_v49 = vpop.permute.xlu0 %714 }
 0x10c   : > { %v4908_v40 = vpop.permute.xlu1 %518  ;;  %8738 = vst [vmem:[#allocation20_spill] sm:$0xff] %v4938_v49 }
 0x10f   : > { %v4952_v52 = vpop.permute.xlu0 %710 }
 0x111   : > { %v4920_v44 = vpop.permute.xlu1 %609 }
 0x114   : > { %v4960_v54 = vpop.permute.xlu0 %811 }
 0x116   : > { %v4932_v48 = vpop.permute.xlu1 %819 }
 0x117   : > { %8737 = vst [vmem:[#allocation19_spill] sm:$0xff] %v4932_v48 }
 0x119   : > { %v4972_v56 = vpop.permute.xlu0 %920 }
 0x11a   : > { %v4942_v50 = vpop.permute.xlu1 %815  ;;  %8742 = vst [vmem:[#allocation24_spill] sm:$0xff] %v4972_v56 }
 0x11b   : > { %8739 = vst [vmem:[#allocation21_spill] sm:$0xff] %v4942_v50 }
 0x11d   : > { %v4986_v62 = vpop.permute.xlu0 %916 }
 0x11e   : > { %8743 = vst [vmem:[#allocation25_spill] sm:$0xff] %v4986_v62 }
 0x11f   : > { %v4948_v51 = vpop.permute.xlu1 %1021 }
 0x120   : > { %8740 = vst [vmem:[#allocation22_spill] sm:$0xff] %v4948_v51 }
 0x122   : > { %v4998_v2 = vpop.permute.xlu0 %1017 }
 0x123   : > { %8745 = vst [vmem:[#allocation27_spill] sm:$0xff] %v4998_v2 }
 0x124   : > { %v4958_v53 = vpop.permute.xlu1 %912 }
 0x127   : > { %v5006_v4 = vpop.permute.xlu0 %1118 }
 0x128   : > { %8747 = vst [vmem:[#allocation29_spill] sm:$0xff] %v5006_v4 }
 0x129   : > { %v4968_v55 = vpop.permute.xlu1 %1122 }
 0x12a   : > { %8741 = vst [vmem:[#allocation23_spill] sm:$0xff] %v4968_v55 }
 0x12c   : > { %v5018_v6 = vpop.permute.xlu0 %1219 }
 0x12d   : > { %8749 = vst [vmem:[#allocation31_spill] sm:$0xff] %v5018_v6 }
 0x12e   : > { %v4981_v60 = vpop.permute.xlu1 %1013 }
 0x133   : > { %v4994_v63 = vpop.permute.xlu1 %1223 }
 0x134   : > { %8744 = vst [vmem:[#allocation26_spill] sm:$0xff] %v4994_v63 }
 0x138   : > { %v5004_v3 = vpop.permute.xlu1 %1114 }
 0x139   : > { %8746 = vst [vmem:[#allocation28_spill] sm:$0xff] %v5004_v3 }
 0x13c   : > { %v417_v23 = vpop.f32.mrf.mxu0  ;;  %v500_v25 = vpop.f32.mrf.mxu1 }
 0x13d   : > { %v4836_v24 = vadd.f32 %v417_v23, %v319_v22  ;;  %v4842_v26 = vadd.f32 %v500_v25, %v319_v22  ;;  %v5014_v5 = vpop.permute.xlu1 %1324 }
 0x13e   : > { %v419_v27 = vpop.f32.mrf.mxu0  ;;  %v502_v29 = vpop.f32.mrf.mxu1  ;;  %8748 = vst [vmem:[#allocation30_spill] sm:$0xff] %v5014_v5 }
 0x13f   : > { %644 = vrot.lane.b32.xlu1 %v4836_v24, %s4542_s24  ;;  %541 = vrot.lane.b32.xlu0 %v4836_v24, %s4543_s26  ;;  %v4852_v28 = vadd.f32 %v419_v27, %v319_v22  ;;  %v4858_v30 = vadd.f32 %v502_v29, %v319_v22 }
 0x140   : > { %v423_v34 = vpop.f32.mrf.mxu0  ;;  %v506_v37 = vpop.f32.mrf.mxu1 }
 0x141   : > { %v4888_v35 = vadd.f32 %v423_v34, %v324_v32  ;;  %v4894_v38 = vadd.f32 %v506_v37, %v324_v32 }
 0x142   : > { %v425_v41 = vpop.f32.mrf.mxu0  ;;  %v508_v45 = vpop.f32.mrf.mxu1 }
 0x143   : > { %745 = vrot.lane.b32.xlu1 %v4836_v24, %s4544_s23  ;;  %553 = vrot.lane.b32.xlu0 %v4842_v26, %s4543_s26  ;;  %v4914_v42 = vadd.f32 %v425_v41, %v324_v32  ;;  %v4924_v46 = vadd.f32 %v508_v45, %v324_v32  ;;  %v5278_v3 = vmul.f32 %v4890_v36, %v4888_v35 }
 0x144   : > { %v429_v57 = vpop.f32.mrf.mxu0  ;;  %v512_v59 = vpop.f32.mrf.mxu1 }
 0x145   : > { %v4975_v58 = vadd.f32 %v429_v57, %v4872_v31  ;;  %v4984_v61 = vadd.f32 %v512_v59, %v4872_v31  ;;  %8792 = vst [vmem:[#allocation73_spill] sm:$0xff] %v5278_v3 }
 0x146   : > { %v431_v8 = vpop.f32.mrf.mxu0  ;;  %v514_v23 = vpop.f32.mrf.mxu1 }
 0x147   : > { %757 = vrot.lane.b32.xlu1 %v4842_v26, %s4544_s23  ;;  %656 = vrot.lane.b32.xlu0 %v4842_v26, %s4542_s24  ;;  %v5033_v12 = vadd.f32 %v431_v8, %v4872_v31  ;;  %v5044_v27 = vadd.f32 %v514_v23, %v4872_v31 }
 0x14b   : > { %846 = vrot.lane.b32.xlu1 %v4836_v24, %s4545_s28  ;;  %751 = vrot.lane.b32.xlu0 %v4852_v28, %s4544_s23 }
 0x14f   : > { %858 = vrot.lane.b32.xlu1 %v4842_v26, %s4545_s28  ;;  %763 = vrot.lane.b32.xlu0 %v4858_v30, %s4544_s23 }
 0x153   : > { %947 = vrot.lane.b32.xlu1 %v4836_v24, %s4546_s30  ;;  %852 = vrot.lane.b32.xlu0 %v4852_v28, %s4545_s28 }
 0x157   : > { %959 = vrot.lane.b32.xlu1 %v4842_v26, %s4546_s30  ;;  %864 = vrot.lane.b32.xlu0 %v4858_v30, %s4545_s28 }
 0x15b   : > { %1048 = vrot.lane.b32.xlu1 %v4836_v24, %s4547_s6  ;;  %953 = vrot.lane.b32.xlu0 %v4852_v28, %s4546_s30 }
 0x15f   : > { %1060 = vrot.lane.b32.xlu1 %v4842_v26, %s4547_s6  ;;  %965 = vrot.lane.b32.xlu0 %v4858_v30, %s4546_s30 }
 0x163   : > { %547 = vrot.lane.b32.xlu1 %v4852_v28, %s4543_s26  ;;  %1054 = vrot.lane.b32.xlu0 %v4852_v28, %s4547_s6 }
 0x167   : > { %559 = vrot.lane.b32.xlu1 %v4858_v30, %s4543_s26  ;;  %646 = vrot.lane.b32.xlu0 %v4888_v35, %s4542_s24 }
 0x16b   : > { %650 = vrot.lane.b32.xlu1 %v4852_v28, %s4542_s24  ;;  %658 = vrot.lane.b32.xlu0 %v4894_v38, %s4542_s24 }
 0x16f   : > { %662 = vrot.lane.b32.xlu1 %v4858_v30, %s4542_s24  ;;  %747 = vrot.lane.b32.xlu0 %v4888_v35, %s4544_s23 }
 0x173   : > { %543 = vrot.lane.b32.xlu1 %v4888_v35, %s4543_s26  ;;  %759 = vrot.lane.b32.xlu0 %v4894_v38, %s4544_s23 }
 0x177   : > { %555 = vrot.lane.b32.xlu1 %v4894_v38, %s4543_s26  ;;  %549 = vrot.lane.b32.xlu0 %v4914_v42, %s4543_s26 }
 0x17b   : > { %848 = vrot.lane.b32.xlu1 %v4888_v35, %s4545_s28  ;;  %561 = vrot.lane.b32.xlu0 %v4924_v46, %s4543_s26 }
 0x17f   : > { %860 = vrot.lane.b32.xlu1 %v4894_v38, %s4545_s28  ;;  %854 = vrot.lane.b32.xlu0 %v4914_v42, %s4545_s28 }
 0x183   : > { %949 = vrot.lane.b32.xlu1 %v4888_v35, %s4546_s30  ;;  %866 = vrot.lane.b32.xlu0 %v4924_v46, %s4545_s28 }
 0x187   : > { %961 = vrot.lane.b32.xlu1 %v4894_v38, %s4546_s30  ;;  %955 = vrot.lane.b32.xlu0 %v4914_v42, %s4546_s30 }
 0x18b   : > { %1050 = vrot.lane.b32.xlu1 %v4888_v35, %s4547_s6  ;;  %967 = vrot.lane.b32.xlu0 %v4924_v46, %s4546_s30 }
 0x18f   : > { %1062 = vrot.lane.b32.xlu1 %v4894_v38, %s4547_s6  ;;  %1056 = vrot.lane.b32.xlu0 %v4914_v42, %s4547_s6 }
 0x193   : > { %652 = vrot.lane.b32.xlu1 %v4914_v42, %s4542_s24  ;;  %1068 = vrot.lane.b32.xlu0 %v4924_v46, %s4547_s6 }
 0x197   : > { %664 = vrot.lane.b32.xlu1 %v4924_v46, %s4542_s24  ;;  %648 = vrot.lane.b32.xlu0 %v4975_v58, %s4542_s24 }
 0x19b   : > { %753 = vrot.lane.b32.xlu1 %v4914_v42, %s4544_s23  ;;  %660 = vrot.lane.b32.xlu0 %v4984_v61, %s4542_s24 }
 0x19f   : > { %765 = vrot.lane.b32.xlu1 %v4924_v46, %s4544_s23  ;;  %862 = vrot.lane.b32.xlu0 %v4984_v61, %s4545_s28 }
 0x1a3   : > { %545 = vrot.lane.b32.xlu1 %v4975_v58, %s4543_s26  ;;  %951 = vrot.lane.b32.xlu0 %v4975_v58, %s4546_s30 }
 0x1a7   : > { %557 = vrot.lane.b32.xlu1 %v4984_v61, %s4543_s26  ;;  %963 = vrot.lane.b32.xlu0 %v4984_v61, %s4546_s30 }
 0x1ab   : > { %749 = vrot.lane.b32.xlu1 %v4975_v58, %s4544_s23  ;;  %1052 = vrot.lane.b32.xlu0 %v4975_v58, %s4547_s6 }
 0x1af   : > { %761 = vrot.lane.b32.xlu1 %v4984_v61, %s4544_s23  ;;  %1064 = vrot.lane.b32.xlu0 %v4984_v61, %s4547_s6 }
 0x1b1   : > { %v5024_v7 = vpop.permute.xlu1 %644  ;;  %v5026_v9 = vpop.permute.xlu0 %541 }
 0x1b3   : > { %850 = vrot.lane.b32.xlu1 %v4975_v58, %s4545_s28  ;;  %1153 = vrot.lane.b32.xlu0 %v4975_v58, %s4548_s14 }
 0x1b5   : > { %v5035_v22 = vpop.permute.xlu1 %745  ;;  %v5037_v25 = vpop.permute.xlu0 %553 }
 0x1b7   : > { %654 = vrot.lane.b32.xlu1 %v5033_v12, %s4542_s24  ;;  %1165 = vrot.lane.b32.xlu0 %v4984_v61, %s4548_s14 }
 0x1b9   : > { %v5046_v29 = vpop.permute.xlu1 %757  ;;  %v5048_v32 = vpop.permute.xlu0 %656 }
 0x1bb   : > { %666 = vrot.lane.b32.xlu1 %v5044_v27, %s4542_s24  ;;  %551 = vrot.lane.b32.xlu0 %v5033_v12, %s4543_s26 }
 0x1bd   : > { %v5054_v34 = vpop.permute.xlu1 %846  ;;  %v5056_v37 = vpop.permute.xlu0 %751 }
 0x1bf   : > { %856 = vrot.lane.b32.xlu1 %v5033_v12, %s4545_s28  ;;  %563 = vrot.lane.b32.xlu0 %v5044_v27, %s4543_s26 }
 0x1c1   : > { %v5062_v31 = vpop.permute.xlu1 %858  ;;  %v5064_v41 = vpop.permute.xlu0 %763 }
 0x1c3   : > { %868 = vrot.lane.b32.xlu1 %v5044_v27, %s4545_s28  ;;  %755 = vrot.lane.b32.xlu0 %v5033_v12, %s4544_s23 }
 0x1c5   : > { %v5070_v45 = vpop.permute.xlu1 %947  ;;  %v5072_v57 = vpop.permute.xlu0 %852 }
 0x1c7   : > { %957 = vrot.lane.b32.xlu1 %v5033_v12, %s4546_s30  ;;  %767 = vrot.lane.b32.xlu0 %v5044_v27, %s4544_s23 }
 0x1c9   : > { %v5078_v59 = vpop.permute.xlu1 %959  ;;  %v5080_v8 = vpop.permute.xlu0 %864 }
 0x1cb   : > { %969 = vrot.lane.b32.xlu1 %v5044_v27, %s4546_s30  ;;  %1066 = vrot.lane.b32.xlu0 %v4858_v30, %s4547_s6 }
 0x1cd   : > { %v5086_v23 = vpop.permute.xlu1 %1048  ;;  %v5088_v21 = vpop.permute.xlu0 %953 }
 0x1ce   : > { %8750 = vst [vmem:[#allocation32_spill] sm:$0xff] %v5086_v23 }
 0x1cf   : > { %1058 = vrot.lane.b32.xlu1 %v5033_v12, %s4547_s6  ;;  %1157 = vrot.lane.b32.xlu0 %v4914_v42, %s4548_s14 }
 0x1d1   : > { %v5094_v20 = vpop.permute.xlu1 %1060  ;;  %v5096_v19 = vpop.permute.xlu0 %965 }
 0x1d2   : > { %8751 = vst [vmem:[#allocation33_spill] sm:$0xff] %v5094_v20 }
 0x1d3   : > { %1070 = vrot.lane.b32.xlu1 %v5044_v27, %s4547_s6  ;;  %1169 = vrot.lane.b32.xlu0 %v4924_v46, %s4548_s14 }
 0x1d5   : > { %v5102_v18 = vpop.permute.xlu1 %547  ;;  %v5104_v17 = vpop.permute.xlu0 %1054 }
 0x1d7   : > { %1159 = vrot.lane.b32.xlu1 %v5033_v12, %s4548_s14  ;;  %1254 = vrot.lane.b32.xlu0 %v4975_v58, %s4549_s17 }
 0x1d9   : > { %v5110_v16 = vpop.permute.xlu1 %559  ;;  %v5112_v15 = vpop.permute.xlu0 %646 }
 0x1da   : > { %8752 = vst [vmem:[#allocation34_spill] sm:$0xff] %v5112_v15  ;;  %v8477_v15 = vmov 24  }
 0x1db   : > { %1171 = vrot.lane.b32.xlu1 %v5044_v27, %s4548_s14  ;;  %1266 = vrot.lane.b32.xlu0 %v4984_v61, %s4549_s17 }
 0x1dd   : > { %v5118_v14 = vpop.permute.xlu1 %650  ;;  %v5120_v13 = vpop.permute.xlu0 %658 }
 0x1de   : > { %8753 = vst [vmem:[#allocation35_spill] sm:$0xff] %v5120_v13  ;;  %v5225_v13 = vld [vmem:[#allocation5 + $0x8] sm:$0xff] }
 0x1df   : > { %1151 = vrot.lane.b32.xlu1 %v4888_v35, %s4548_s14  ;;  %1320 = vperm.xlu0 %4244, %v4771_v11  }
 0x1e1   : > { %v5125_v0 = vpop.permute.xlu1 %662  ;;  %v5127_v1 = vpop.permute.xlu0 %747 }
 0x1e2   : > { %8754 = vst [vmem:[#allocation36_spill] sm:$0xff] %v5127_v1 }
 0x1e3   : > { %1163 = vrot.lane.b32.xlu1 %v4894_v38, %s4548_s14  ;;  %1161 = vrot.lane.b32.xlu0 %v4842_v26, %s4548_s14 }
 0x1e5   : > { %v5133_v6 = vpop.permute.xlu1 %543  ;;  %v5135_v4 = vpop.permute.xlu0 %759 }
 0x1e6   : > { %8755 = vst [vmem:[#allocation37_spill] sm:$0xff] %v5135_v4  ;;  %v565_v4 = vlaneseq }
 0x1e7   : > { %1215 = vperm.xlu1 %4243, %v4764_v10   ;;  %1252 = vrot.lane.b32.xlu0 %v4888_v35, %s4549_s17 }
 0x1e9   : > { %v5140_v11 = vpop.permute.xlu1 %555  ;;  %v5142_v2 = vpop.permute.xlu0 %549 }
 0x1ea   : > { %8756 = vst [vmem:[#allocation38_spill] sm:$0xff] %v5140_v11 }
 0x1eb   : > { %1260 = vrot.lane.b32.xlu1 %v5033_v12, %s4549_s17  ;;  %1264 = vrot.lane.b32.xlu0 %v4894_v38, %s4549_s17 }
 0x1ec   : > { %4245 = vset.pattern.permute.xlu1 %v8477_v15 }
 0x1ed   : > { %v5148_v5 = vpop.permute.xlu1 %848  ;;  %v5150_v63 = vpop.permute.xlu0 %561 }
 0x1ee   : > { %8757 = vst [vmem:[#allocation39_spill] sm:$0xff] %v5148_v5  ;;  %8758 = vst [vmem:[#allocation40_spill] sm:$0xff] %v5150_v63  ;;  %v5252_v5 = vmul.f32 %v4908_v40, %v4842_v26 }
 0x1ef   : > { %1272 = vrot.lane.b32.xlu1 %v5044_v27, %s4549_s17  ;;  %1316 = vperm.xlu0 %4244, %v4764_v10  }
 0x1f1   : > { %v5155_v55 = vpop.permute.xlu1 %860  ;;  %v5157_v51 = vpop.permute.xlu0 %854 }
 0x1f2   : > { %8759 = vst [vmem:[#allocation41_spill] sm:$0xff] %v5155_v55  ;;  %8760 = vst [vmem:[#allocation42_spill] sm:$0xff] %v5157_v51  ;;  %v5227_v55 = vld [vmem:[#allocation5 + $0x10] sm:$0xff]  ;;  %v5263_v51 = vmul.f32 %v4908_v40, %v4858_v30 }
 0x1f3   : > { %1149 = vrot.lane.b32.xlu1 %v4836_v24, %s4548_s14  ;;  %1256 = vrot.lane.b32.xlu0 %v4852_v28, %s4549_s17 }
 0x1f4   : > { %4246 = vset.pattern.permute.xlu0 %v8477_v15  ;;  %v5239_v15 = vmul.f32 %v4908_v40, %v4836_v24  ;;  %8788 = vst [vmem:[#allocation69_spill] sm:$0xff] %v5263_v51 }
 0x1f5   : > { %v5163_v56 = vpop.permute.xlu1 %949  ;;  %v5165_v48 = vpop.permute.xlu0 %866 }
 0x1f6   : > { %8761 = vst [vmem:[#allocation43_spill] sm:$0xff] %v5163_v56  ;;  %8762 = vst [vmem:[#allocation44_spill] sm:$0xff] %v5165_v48  ;;  %v1351_v48 = vld [vmem:[#allocation8] sm:$0xff] }
 0x1f7   : > { %1155 = vrot.lane.b32.xlu1 %v4852_v28, %s4548_s14  ;;  %1268 = vrot.lane.b32.xlu0 %v4858_v30, %s4549_s17  ;;  %8783 = vst [vmem:[#allocation64_spill] sm:$0xff] %v5239_v15 }
 0x1f9   : > { %v5171_v10 = vpop.permute.xlu1 %961  ;;  %v5173_v47 = vpop.permute.xlu0 %955 }
 0x1fa   : > { %8763 = vst [vmem:[#allocation45_spill] sm:$0xff] %v5171_v10  ;;  %8764 = vst [vmem:[#allocation46_spill] sm:$0xff] %v5173_v47 }
 0x1fb   : > { %1167 = vrot.lane.b32.xlu1 %v4858_v30, %s4548_s14  ;;  %1355 = vperm.xlu0 %4246, %v1351_v48   ;;  %v5230_v48 = vld [vmem:[#allocation5] sm:$0xff]  ;;  %v5285_v30 = vmul.f32 %v4890_v36, %v4924_v46 }
 0x1fd   : > { %v5177_v43 = vpop.permute.xlu1 %1050  ;;  %v5179_v50 = vpop.permute.xlu0 %967  ;;  %8793 = vst [vmem:[#allocation74_spill] sm:$0xff] %v5285_v30 }
 0x1fe   : > { %8765 = vst [vmem:[#allocation47_spill] sm:$0xff] %v5177_v43  ;;  %8766 = vst [vmem:[#allocation48_spill] sm:$0xff] %v5179_v50 }
 0x1ff   : > { %1258 = vrot.lane.b32.xlu1 %v4914_v42, %s4549_s17 }
 0x201   : > { %v5183_v49 = vpop.permute.xlu1 %1062  ;;  %v5185_v56 = vpop.permute.xlu0 %1056 }
 0x202   : > { %8767 = vst [vmem:[#allocation49_spill] sm:$0xff] %v5183_v49  ;;  %8768 = vst [vmem:[#allocation50_spill] sm:$0xff] %v5185_v56 }
 0x203   : > { %1270 = vrot.lane.b32.xlu1 %v4924_v46, %s4549_s17  ;;  %v5306_v46 = vmul.f32 %v4882_v33, %v4984_v61 }
 0x205   : > { %v5189_v10 = vpop.permute.xlu1 %652  ;;  %v5191_v47 = vpop.permute.xlu0 %1068  ;;  %8799 = vst [vmem:[#allocation80_spill] sm:$0xff] %v5306_v46 }
 0x206   : > { %8769 = vst [vmem:[#allocation51_spill] sm:$0xff] %v5189_v10  ;;  %8770 = vst [vmem:[#allocation52_spill] sm:$0xff] %v5191_v47  ;;  %v1352_v10 = vld [vmem:[#allocation8 + $0x8] sm:$0xf] }
 0x207   : > { %1250 = vrot.lane.b32.xlu1 %v4836_v24, %s4549_s17  ;;  %v5259_v24 = vmul.f32 %v4908_v40, %v4852_v28 }
 0x209   : > { %v5195_v43 = vpop.permute.xlu1 %664  ;;  %v5197_v50 = vpop.permute.xlu0 %648 }
 0x20a   : > { %8771 = vst [vmem:[#allocation53_spill] sm:$0xff] %v5195_v43  ;;  %8772 = vst [vmem:[#allocation54_spill] sm:$0xff] %v5197_v50  ;;  %v5212_v43 = vshrl.u32 %v565_v4, 7 }
 0x20b   : > { %1262 = vrot.lane.b32.xlu1 %v4842_v26, %s4549_s17  ;;  %v5274_v26 = vmul.f32 %v4890_v36, %v4894_v38 }
 0x20c   : > { %v986_v28 = vsub.s32 4, %v5212_v43  ;;  %v1087_v3 = vsub.s32 5, %v5212_v43 }
 0x20d   : > { %v5201_v49 = vpop.permute.xlu1 %753  ;;  %v5203_v56 = vpop.permute.xlu0 %660  ;;  %8791 = vst [vmem:[#allocation72_spill] sm:$0xff] %v5274_v26 }
 0x20e   : > { %8773 = vst [vmem:[#allocation55_spill] sm:$0xff] %v5201_v49  ;;  %8774 = vst [vmem:[#allocation56_spill] sm:$0xff] %v5203_v56  ;;  %v5217_v56 = vand.u32 127, %v565_v4  ;;  %v8781_v49 = vmov 21   ;;  %v5233_v4 = vld [vmem:[#allocation5 + $0x18] sm:$0xff]  ;;  %v5325_v61 = vrot.slane %v5230_v48, %v986_v28  ;;  %v5331_v46 = vrot.slane %v5227_v55, %v986_v28 }
 0x20f   : > { %1360 = vperm.xlu1 %4245, %v1352_v10   ;;  %4248 = vset.pattern.permute.xlu0 %v8781_v49  ;;  %v5362_v51 = vrot.slane %v5225_v13, %v1087_v3 }
 0x210   : > { %vm769_vm2 = vcmp.lt.s32.totalorder %v5217_v56, 15  ;;  %vm567_vm3 = vcmp.lt.s32.totalorder %v5217_v56, 17  ;;  %vm668_vm4 = vcmp.lt.s32.totalorder %v5217_v56, 16  ;;  %vm870_vm5 = vcmp.lt.s32.totalorder %v5217_v56, 1  ;;  %8804 = vst [vmem:[#allocation85_spill] sm:$0xff] %v5325_v61  ;;  %8806 = vst [vmem:[#allocation87_spill] sm:$0xff] %v5331_v46 }
 0x211   : > { %v5205_v1 = vpop.permute.xlu1 %765  ;;  %v5207_v62 = vpop.permute.xlu0 %862  ;;  %vm971_vm6 = vcmp.lt.s32.totalorder %v5217_v56, 127  ;;  %8813 = vst [vmem:[#allocation94_spill] sm:$0xff] %v5362_v51  ;;  %v770_v63 = vsel %vm769_vm2, %v5046_v29, %v5064_v41  ;;  %v874_v15 = vsel %vm870_vm5, %v5072_v57, %v5062_v31  ;;  %vm1072_vm7 = vcmp.lt.s32.totalorder %v5217_v56, 113 }
 0x212   : > { %8775 = vst [vmem:[#allocation57_spill] sm:$0xff] %v5205_v1  ;;  %8776 = vst [vmem:[#allocation58_spill] sm:$0xff] %v5207_v62  ;;  %v784_v62 = vsub.s32 2, %v5212_v43  ;;  %vm1173_vm8 = vcmp.lt.s32.totalorder %v5217_v56, 112  ;;  %vm1274_vm9 = vcmp.lt.s32.totalorder %v5217_v56, 111 }
 0x213   : > { %4247 = vset.pattern.permute.xlu1 %v8781_v49  ;;  %v885_v49 = vsub.s32 3, %v5212_v43 }
 0x214   : > { %v5266_v39 = vrot.slane %v5233_v4, %v784_v62 }
 0x215   : > { %v5209_v47 = vpop.permute.xlu1 %545  ;;  %v5214_v50 = vpop.permute.xlu0 %951  ;;  %v5291_v38 = vrot.slane %v5225_v13, %v885_v49  ;;  %v5294_v35 = vrot.slane %v5227_v55, %v885_v49  ;;  %v5313_v30 = vrot.slane %v5230_v48, %v885_v49  ;;  %v5316_v26 = vrot.slane %v5233_v4, %v885_v49 }
 0x216   : > { %8777 = vst [vmem:[#allocation59_spill] sm:$0xff] %v5209_v47  ;;  %8778 = vst [vmem:[#allocation60_spill] sm:$0xff] %v5214_v50  ;;  %v5242_v50 = vrot.slane %v5225_v13, %v784_v62  ;;  %v5334_v49 = vrot.slane %v5233_v4, %v986_v28 }
 0x217   : > { %8789 = vst [vmem:[#allocation70_spill] sm:$0xff] %v5266_v39  ;;  %8795 = vst [vmem:[#allocation76_spill] sm:$0xff] %v5291_v38 }
 0x218   : > { %8784 = vst [vmem:[#allocation65_spill] sm:$0xff] %v5242_v50  ;;  %8796 = vst [vmem:[#allocation77_spill] sm:$0xff] %v5294_v35 }
 0x219   : > { %v5219_v1 = vpop.permute.xlu1 %557  ;;  %v5222_v47 = vpop.permute.xlu0 %963  ;;  %8801 = vst [vmem:[#allocation82_spill] sm:$0xff] %v5313_v30  ;;  %8802 = vst [vmem:[#allocation83_spill] sm:$0xff] %v5316_v26 }
 0x21a   : > { %8779 = vst [vmem:[#allocation61_spill] sm:$0xff] %v5219_v1  ;;  %8780 = vst [vmem:[#allocation62_spill] sm:$0xff] %v5222_v47  ;;  %v5245_v47 = vrot.slane %v5227_v55, %v784_v62 }
 0x21b   : > { %8807 = vst [vmem:[#allocation88_spill] sm:$0xff] %v5334_v49 }
 0x21c   : > { %8785 = vst [vmem:[#allocation66_spill] sm:$0xff] %v5245_v47 }
 0x21d   : > { %v5235_v10 = vpop.permute.xlu1 %749  ;;  %v5248_v1 = vpop.permute.xlu0 %1052 }
 0x21e   : > { %8782 = vst [vmem:[#allocation63_spill] sm:$0xff] %v5235_v10  ;;  %8786 = vst [vmem:[#allocation67_spill] sm:$0xff] %v5248_v1  ;;  %v5255_v10 = vrot.slane %v5230_v48, %v784_v62  ;;  %v5270_v1 = vmul.f32 %v4890_v36, %v4914_v42  ;;  %v582_v42 = vsub.s32 0, %v5212_v43  ;;  %v5302_v36 = vmul.f32 %v4882_v33, %v5033_v12 }
 0x21f   : > { %v5321_v12 = vmul.f32 %v4882_v33, %v5044_v27  ;;  %v776_v27 = vsel %vm769_vm2, %v5035_v22, %v5056_v37 }
 0x220   : > { %8787 = vst [vmem:[#allocation68_spill] sm:$0xff] %v5255_v10  ;;  %8790 = vst [vmem:[#allocation71_spill] sm:$0xff] %v5270_v1  ;;  %v5359_v1 = vrot.slane %v5230_v48, %v1087_v3  ;;  %v799_v11 = vmul.f32 %v5242_v50, %v776_v27  ;;  %v574_v27 = vsel %vm567_vm3, %v5026_v9, %v5102_v18 }
 0x221   : > { %v5287_v40 = vpop.permute.xlu1 %761  ;;  %v5297_v62 = vpop.permute.xlu0 %1064  ;;  %8798 = vst [vmem:[#allocation79_spill] sm:$0xff] %v5302_v36  ;;  %8803 = vst [vmem:[#allocation84_spill] sm:$0xff] %v5321_v12  ;;  %v5347_v12 = vrot.slane %v5225_v13, %v582_v42  ;;  %v5350_v36 = vrot.slane %v5227_v55, %v582_v42 }
 0x222   : > { %8794 = vst [vmem:[#allocation75_spill] sm:$0xff] %v5287_v40  ;;  %8797 = vst [vmem:[#allocation78_spill] sm:$0xff] %v5297_v62  ;;  %v5310_v40 = vmul.f32 %v4882_v33, %v4975_v58  ;;  %v683_v62 = vsub.s32 1, %v5212_v43  ;;  %v5328_v58 = vrot.slane %v5225_v13, %v986_v28  ;;  %v773_v33 = vsel %vm769_vm2, %v5056_v37, %v5046_v29 }
 0x223   : > { %8809 = vst [vmem:[#allocation90_spill] sm:$0xff] %v5347_v12  ;;  %8810 = vst [vmem:[#allocation91_spill] sm:$0xff] %v5350_v36  ;;  %v5365_v37 = vrot.slane %v5230_v48, %v582_v42  ;;  %v800_v51 = vmul.f32 %v5245_v47, %v773_v33  ;;  %v877_v29 = vsel %vm870_vm5, %v5054_v34, %v5072_v57 }
 0x224   : > { %8800 = vst [vmem:[#allocation81_spill] sm:$0xff] %v5310_v40  ;;  %8805 = vst [vmem:[#allocation86_spill] sm:$0xff] %v5328_v58  ;;  %v5375_v20 = vrot.slane %v5225_v13, %v683_v62  ;;  %v5398_v33 = vrot.slane %v5230_v48, %v683_v62  ;;  %v5401_v47 = vrot.slane %v5233_v4, %v683_v62 }
 0x225   : > { %v5336_v40 = vpop.permute.xlu1 %850  ;;  %v5352_v28 = vpop.permute.xlu0 %1153  ;;  %8812 = vst [vmem:[#allocation93_spill] sm:$0xff] %v5359_v1  ;;  %8814 = vst [vmem:[#allocation95_spill] sm:$0xff] %v5365_v37  ;;  %v801_v1 = vmul.f32 %v5266_v39, %v770_v63  ;;  %v571_v57 = vsel %vm567_vm3, %v5102_v18, %v5037_v25  ;;  %v880_v63 = vsel %vm870_vm5, %v5080_v8, %v5054_v34 }
 0x226   : > { %8808 = vst [vmem:[#allocation89_spill] sm:$0xff] %v5336_v40  ;;  %8811 = vst [vmem:[#allocation92_spill] sm:$0xff] %v5352_v28  ;;  %v779_v40 = vsel %vm769_vm2, %v5064_v41, %v5035_v22  ;;  %v5372_v28 = vrot.slane %v5233_v4, %v582_v42  ;;  %v5378_v22 = vrot.slane %v5227_v55, %v683_v62 }
 0x227   : > { %8816 = vst [vmem:[#allocation97_spill] sm:$0xff] %v5375_v20  ;;  %v798_v42 = vmul.f32 %v5255_v10, %v779_v40  ;;  %8819 = vst [vmem:[#allocation100_spill] sm:$0xff] %v5398_v33  ;;  %v5411_v40 = vrot.slane %v5227_v55, %v1087_v3  ;;  %v5414_v10 = vrot.slane %v5233_v4, %v1087_v3 }
 0x228   : > { %8815 = vst [vmem:[#allocation96_spill] sm:$0xff] %v5372_v28  ;;  %8817 = vst [vmem:[#allocation98_spill] sm:$0xff] %v5378_v22  ;;  %v900_v62 = vmul.f32 %v5291_v38, %v877_v29  ;;  %v675_v18 = vsel %vm668_vm4, %v5024_v7, %v5118_v14  ;;  %v5431_v3 = vmul.f32 %v4960_v54, %v800_v51 }
 0x229   : > { %v5390_v41 = vpop.permute.xlu1 %654  ;;  %8820 = vst [vmem:[#allocation101_spill] sm:$0xff] %v5401_v47  ;;  %v5403_v50 = vpop.permute.xlu0 %1165  ;;  %8822 = vst [vmem:[#allocation103_spill] sm:$0xff] %v5411_v40  ;;  %v5428_v40 = vmul.f32 %v4960_v54, %v799_v11  ;;  %v597_v29 = vmul.f32 %v5347_v12, %v574_v27  ;;  %v5441_v34 = vmul.f32 %v4960_v54, %v798_v42  ;;  %v1188_v27 = vsub.s32 6, %v5212_v43 }
 0x22a   : > { %8818 = vst [vmem:[#allocation99_spill] sm:$0xff] %v5390_v41  ;;  %8821 = vst [vmem:[#allocation102_spill] sm:$0xff] %v5403_v50  ;;  %v901_v41 = vmul.f32 %v5294_v35, %v874_v15  ;;  %v672_v15 = vsel %vm668_vm4, %v5118_v14, %v5048_v32  ;;  %v871_v11 = vsel %vm870_vm5, %v5062_v31, %v5080_v8 }
 0x22b   : > { %8823 = vst [vmem:[#allocation104_spill] sm:$0xff] %v5414_v10  ;;  %v598_v51 = vmul.f32 %v5350_v36, %v571_v57  ;;  %v5452_v39 = vmul.f32 %v4960_v54, %v801_v1  ;;  %v899_v14 = vmul.f32 %v5313_v30, %v880_v63  ;;  %v577_v42 = vsel %vm567_vm3, %v5110_v16, %v5026_v9 }
 0x22c   : > { %v5461_v31 = vmul.f32 %v4958_v53, %v900_v62  ;;  %v5464_v8 = vmul.f32 %v4958_v53, %v901_v41  ;;  %v978_v1 = vsel %vm971_vm6, %v5070_v45, %v5088_v21  ;;  %v699_v54 = vmul.f32 %v5378_v22, %v672_v15 }
 0x22d   : > { %v5438_v10 = vpop.permute.xlu1 %666  ;;  %v5448_v50 = vpop.permute.xlu0 %551  ;;  %v902_v57 = vmul.f32 %v5316_v26, %v871_v11  ;;  %v975_v9 = vsel %vm971_vm6, %v5088_v21, %v5078_v59  ;;  %v621_v62 = vmul.f32 %v4920_v44, %v597_v29  ;;  %v678_v41 = vsel %vm668_vm4, %v5125_v0, %v5024_v7 }
 0x22e   : > { %8824 = vst [vmem:[#allocation105_spill] sm:$0xff] %v5438_v10  ;;  %8825 = vst [vmem:[#allocation106_spill] sm:$0xff] %v5448_v50  ;;  %v698_v10 = vmul.f32 %v5375_v20, %v675_v18  ;;  %v622_v18 = vmul.f32 %v4920_v44, %v598_v51  ;;  %v568_v15 = vsel %vm567_vm3, %v5037_v25, %v5110_v16 }
 0x22f   : > { %v596_v11 = vmul.f32 %v5365_v37, %v577_v42  ;;  %v5492_v21 = vrot.slane %v5230_v48, %v1188_v27  ;;  %v5495_v29 = vmul.f32 %v4958_v53, %v899_v14  ;;  %v1000_v7 = vmul.f32 %v5325_v61, %v978_v1 }
 0x230   : > { %v5500_v51 = vrot.slane %v5225_v13, %v1188_v27  ;;  %v1001_v26 = vmul.f32 %v5328_v58, %v975_v9  ;;  %v723_v16 = vmul.f32 %v4952_v52, %v699_v54  ;;  %v669_v25 = vsel %vm668_vm4, %v5048_v32, %v5125_v0 }
 0x231   : > { %v5481_v63 = vpop.permute.xlu1 %856  ;;  %v5489_v50 = vpop.permute.xlu0 %563  ;;  %8827 = vst [vmem:[#allocation108_spill] sm:$0xff] %v5492_v21  ;;  %8828 = vst [vmem:[#allocation109_spill] sm:$0xff] %v5495_v29  ;;  %v697_v42 = vmul.f32 %v5398_v33, %v678_v41  ;;  %v5510_v14 = vmul.f32 %v4958_v53, %v902_v57  ;;  %v633_v1 = vadd.f32 %v621_v62, %v5259_v24 }
 0x232   : > { %8826 = vst [vmem:[#allocation107_spill] sm:$0xff] %v5481_v63  ;;  %v722_v63 = vmul.f32 %v4952_v52, %v698_v10  ;;  %8829 = vst [vmem:[#allocation110_spill] sm:$0xff] %v5500_v51  ;;  %v599_v10 = vmul.f32 %v5372_v28, %v568_v15  ;;  %v5517_v9 = vrot.slane %v5227_v55, %v1188_v27 }
 0x233   : > { %8830 = vst [vmem:[#allocation111_spill] sm:$0xff] %v5510_v14  ;;  %v972_v54 = vsel %vm971_vm6, %v5078_v59, %v5096_v19  ;;  %v981_v0 = vsel %vm971_vm6, %v5096_v19, %v5070_v45  ;;  %v634_v53 = vadd.f32 %v622_v18, %v5252_v5  ;;  %v620_v32 = vmul.f32 %v4920_v44, %v596_v11 }
 0x234   : > { %8831 = vst [vmem:[#allocation112_spill] sm:$0xff] %v5517_v9  ;;  %v1079_v57 = vsel %vm1072_vm7, %v5086_v23, %v5104_v17  ;;  %v734_v62 = vadd.f32 %v722_v63, %v633_v1  ;;  %v700_v41 = vmul.f32 %v5401_v47, %v669_v25  ;;  %v5537_v59 = vrot.slane %v5233_v4, %v1188_v27  ;;  %v8835_v1 = vld [vmem:[#allocation64_spill] sm:$0xff] }
 0x235   : > { %v5514_v29 = vpop.permute.xlu1 %868  ;;  %v5529_v24 = vpop.permute.xlu0 %755  ;;  %v5540_v15 = vmul.f32 %v4981_v60, %v1000_v7  ;;  %v1025_v19 = vmul.f32 %v4981_v60, %v1001_v26  ;;  %v735_v5 = vadd.f32 %v723_v16, %v634_v53  ;;  %v721_v45 = vmul.f32 %v4952_v52, %v697_v42  ;;  %v8834_v7 = vld [vmem:[#allocation93_spill] sm:$0xff]  ;;  %v8836_v16 = vld [vmem:[#allocation38_spill] sm:$0xff] }
 0x236   : > { %8832 = vst [vmem:[#allocation113_spill] sm:$0xff] %v5537_v59  ;;  %v1002_v18 = vmul.f32 %v5331_v46, %v972_v54  ;;  %v1003_v11 = vmul.f32 %v5334_v49, %v981_v0  ;;  %v623_v14 = vmul.f32 %v4920_v44, %v599_v10  ;;  %v575_v27 = vsel %vm567_vm3, %v5133_v6, %v5142_v2  ;;  %v8837_v0 = vld [vmem:[#allocation33_spill] sm:$0xff] }
 0x237   : > { %8833 = vst [vmem:[#allocation114_spill] sm:$0xff] %v5540_v15  ;;  %v1101_v25 = vmul.f32 %v8834_v7, %v1079_v57  ;;  %v632_v26 = vadd.f32 %v620_v32, %v8835_v1  ;;  %v572_v42 = vsel %vm567_vm3, %v5142_v2, %v8836_v16  ;;  %v1289_v54 = vsub.s32 7, %v5212_v43  ;;  %v8838_v57 = vld [vmem:[#allocation40_spill] sm:$0xff] }
 0x238   : > { %v1076_v44 = vsel %vm1072_vm7, %v5104_v17, %v8837_v0  ;;  %v835_v10 = vadd.f32 %v5428_v40, %v734_v62  ;;  %v724_v53 = vmul.f32 %v4952_v52, %v700_v41  ;;  %v578_v32 = vsel %vm567_vm3, %v8838_v57, %v5133_v6  ;;  %v8841_v62 = vld [vmem:[#allocation69_spill] sm:$0xff] }
 0x239   : > { %v5551_v63 = vpop.permute.xlu1 %957  ;;  %v836_v1 = vadd.f32 %v5431_v3, %v735_v5  ;;  %v733_v15 = vadd.f32 %v721_v45, %v632_v26  ;;  %v601_v2 = vmul.f32 %v5347_v12, %v575_v27  ;;  %v569_v43 = vsel %vm567_vm3, %v8836_v16, %v8838_v57  ;;  %v5576_v17 = vpop.permute.xlu0 %767  ;;  %v8842_v5 = vld [vmem:[#allocation94_spill] sm:$0xff]  ;;  %v8844_v27 = vld [vmem:[#allocation28_spill] sm:$0xff] }
 0x23a   : > { %v5579_v40 = vmul.f32 %v4981_v60, %v1002_v18  ;;  %v5582_v52 = vmul.f32 %v4981_v60, %v1003_v11  ;;  %v635_v6 = vadd.f32 %v623_v14, %v8841_v62  ;;  %v602_v3 = vmul.f32 %v5350_v36, %v572_v42 }
 0x23b   : > { %v5589_v45 = vmul.f32 %v8842_v5, %v1076_v44  ;;  %v5592_v26 = vmul.f32 %v8844_v27, %v1101_v25  ;;  %v600_v16 = vmul.f32 %v5365_v37, %v578_v32  ;;  %v5596_v18 = vrot.slane %v5230_v48, %v1289_v54  ;;  %v8849_v44 = vld [vmem:[#allocation16_spill] sm:$0xff]  ;;  %v8850_v25 = vld [vmem:[#allocation42_spill] sm:$0xff] }
 0x23c   : > { %8839 = vst [vmem:[#allocation64_spill] sm:$0xff] %v5579_v40  ;;  %8840 = vst [vmem:[#allocation38_spill] sm:$0xff] %v5582_v52  ;;  %v736_v57 = vadd.f32 %v724_v53, %v635_v6  ;;  %v603_v60 = vmul.f32 %v5372_v28, %v569_v43  ;;  %v5600_v14 = vrot.slane %v5225_v13, %v1289_v54  ;;  %v8853_v43 = vld [vmem:[#allocation41_spill] sm:$0xff] }
 0x23d   : > { %v5586_v41 = vpop.permute.xlu1 %969  ;;  %8843 = vst [vmem:[#allocation40_spill] sm:$0xff] %v5589_v45  ;;  %8845 = vst [vmem:[#allocation69_spill] sm:$0xff] %v5592_v26  ;;  %v936_v11 = vadd.f32 %v5461_v31, %v835_v10  ;;  %v5604_v42 = vadd.f32 %v5441_v34, %v733_v15  ;;  %v625_v62 = vmul.f32 %v8849_v44, %v601_v2  ;;  %v8851_v26 = vld [vmem:[#allocation39_spill] sm:$0xff]  ;;  %v8856_v10 = vld [vmem:[#allocation34_spill] sm:$0xff] }
 0x23e   : > { %8846 = vst [vmem:[#allocation115_spill] sm:$0xff] %v5596_v18  ;;  %8847 = vst [vmem:[#allocation116_spill] sm:$0xff] %v5600_v14  ;;  %v878_v32 = vsel %vm870_vm5, %v8851_v26, %v8850_v25  ;;  %v5612_v48 = vadd.f32 %v5464_v8, %v836_v1  ;;  %v626_v53 = vmul.f32 %v8849_v44, %v602_v3  ;;  %v8854_v31 = vld [vmem:[#allocation35_spill] sm:$0xff]  ;;  %v8857_v1 = vld [vmem:[#allocation44_spill] sm:$0xff] }
 0x23f   : > { %8848 = vst [vmem:[#allocation117_spill] sm:$0xff] %v5604_v42  ;;  %v875_v13 = vsel %vm870_vm5, %v8850_v25, %v8853_v43  ;;  %v8855_v34 = vld [vmem:[#allocation51_spill] sm:$0xff]  ;;  %v624_v8 = vmul.f32 %v8849_v44, %v600_v16  ;;  %v872_v3 = vsel %vm870_vm5, %v8853_v43, %v8857_v1  ;;  %v881_v25 = vsel %vm870_vm5, %v8857_v1, %v8851_v26  ;;  %v8858_v40 = vld [vmem:[#allocation53_spill] sm:$0xff] }
 0x240   : > { %8852 = vst [vmem:[#allocation16_spill] sm:$0xff] %v5612_v48  ;;  %v673_v15 = vsel %vm668_vm4, %v8855_v34, %v8854_v31  ;;  %v676_v2 = vsel %vm668_vm4, %v8856_v10, %v8855_v34  ;;  %v679_v48 = vsel %vm668_vm4, %v8858_v40, %v8856_v10  ;;  %v5642_v34 = vpop.permute.xlu0 %1066  ;;  %v5645_v45 = vadd.f32 %v5452_v39, %v736_v57  ;;  %v8863_v42 = vld [vmem:[#allocation83_spill] sm:$0xff] }
 0x241   : > { %v5627_v6 = vpop.permute.xlu1 %1058  ;;  %8859 = vst [vmem:[#allocation42_spill] sm:$0xff] %v5642_v34  ;;  %v627_v16 = vmul.f32 %v8849_v44, %v603_v60  ;;  %v904_v52 = vmul.f32 %v5291_v38, %v878_v32  ;;  %v5649_v43 = vadd.f32 %v1025_v19, %v936_v11  ;;  %v905_v27 = vmul.f32 %v5294_v35, %v875_v13  ;;  %v8864_v60 = vld [vmem:[#allocation71_spill] sm:$0xff]  ;;  %v8865_v44 = vld [vmem:[#allocation72_spill] sm:$0xff]  ;;  %v8866_v13 = vld [vmem:[#allocation73_spill] sm:$0xff] }
 0x242   : > { %8860 = vst [vmem:[#allocation39_spill] sm:$0xff] %v5645_v45  ;;  %v702_v26 = vmul.f32 %v5375_v20, %v676_v2  ;;  %v703_v1 = vmul.f32 %v5378_v22, %v673_v15  ;;  %v5655_v0 = vrot.slane %v5227_v55, %v1289_v54  ;;  %v903_v10 = vmul.f32 %v5313_v30, %v881_v25  ;;  %v8868_v25 = vld [vmem:[#allocation74_spill] sm:$0xff] }
 0x243   : > { %8861 = vst [vmem:[#allocation41_spill] sm:$0xff] %v5649_v43  ;;  %v906_v39 = vmul.f32 %v8863_v42, %v872_v3  ;;  %v670_v57 = vsel %vm668_vm4, %v8854_v31, %v8858_v40  ;;  %v701_v19 = vmul.f32 %v5398_v33, %v679_v48  ;;  %v637_v11 = vadd.f32 %v625_v62, %v8864_v60  ;;  %v8870_v43 = vld [vmem:[#allocation25_spill] sm:$0xff]  ;;  %v8873_v31 = vld [vmem:[#allocation55_spill] sm:$0xff]  ;;  %v8874_v48 = vld [vmem:[#allocation36_spill] sm:$0xff] }
 0x244   : > { %8862 = vst [vmem:[#allocation35_spill] sm:$0xff] %v5655_v0  ;;  %v638_v32 = vadd.f32 %v626_v53, %v8865_v44  ;;  %v636_v15 = vadd.f32 %v624_v8, %v8866_v13  ;;  %v5670_v55 = vrot.slane %v5233_v4, %v1289_v54  ;;  %v5673_v3 = vadd.f32 %v627_v16, %v8868_v25  ;;  %v8872_v40 = vld [vmem:[#allocation37_spill] sm:$0xff]  ;;  %v8875_v8 = vld [vmem:[#allocation46_spill] sm:$0xff]  ;;  %v8876_v60 = vld [vmem:[#allocation43_spill] sm:$0xff]  ;;  %v5693_v13 = vpop.permute.xlu0 %1157 }
 0x245   : > { %v5667_v2 = vpop.permute.xlu1 %1070  ;;  %v5676_v45 = vmul.f32 %v8870_v43, %v904_v52  ;;  %v774_v62 = vsel %vm769_vm2, %v8873_v31, %v8872_v40  ;;  %v777_v53 = vsel %vm769_vm2, %v8874_v48, %v8873_v31  ;;  %v979_v4 = vsel %vm971_vm6, %v8876_v60, %v8875_v8  ;;  %v8877_v54 = vld [vmem:[#allocation20_spill] sm:$0xff]  ;;  %8878 = vst [vmem:[#allocation53_spill] sm:$0xff] %v5693_v13  ;;  %v8885_v13 = vld [vmem:[#allocation66_spill] sm:$0xff] }
 0x246   : > { %8867 = vst [vmem:[#allocation51_spill] sm:$0xff] %v5670_v55  ;;  %8869 = vst [vmem:[#allocation34_spill] sm:$0xff] %v5673_v3  ;;  %v726_v16 = vmul.f32 %v8877_v54, %v702_v26  ;;  %v727_v52 = vmul.f32 %v8877_v54, %v703_v1  ;;  %v704_v44 = vmul.f32 %v5401_v47, %v670_v57  ;;  %v8884_v1 = vld [vmem:[#allocation65_spill] sm:$0xff] }
 0x247   : > { %8871 = vst [vmem:[#allocation44_spill] sm:$0xff] %v5676_v45  ;;  %v5696_v25 = vmul.f32 %v8870_v43, %v905_v27  ;;  %v5699_v34 = vmul.f32 %v8870_v43, %v903_v10  ;;  %v5702_v31 = vmul.f32 %v8870_v43, %v906_v39  ;;  %v725_v23 = vmul.f32 %v8877_v54, %v701_v19  ;;  %v8882_v45 = vld [vmem:[#allocation45_spill] sm:$0xff]  ;;  %v8886_v27 = vld [vmem:[#allocation106_spill] sm:$0xff]  ;;  %v8889_v39 = vld [vmem:[#allocation48_spill] sm:$0xff] }
 0x248   : > { %v5709_v26 = vsel %vm971_vm6, %v8875_v8, %v8882_v45  ;;  %v803_v57 = vmul.f32 %v8884_v1, %v777_v53  ;;  %v804_v3 = vmul.f32 %v8885_v13, %v774_v62  ;;  %v5718_v43 = vmul.f32 %v5325_v61, %v979_v4 }
 0x249   : > { %8879 = vst [vmem:[#allocation71_spill] sm:$0xff] %v5696_v25  ;;  %8880 = vst [vmem:[#allocation72_spill] sm:$0xff] %v5699_v34  ;;  %v8887_v25 = vld [vmem:[#allocation59_spill] sm:$0xff]  ;;  %v5724_v19 = vsel %vm971_vm6, %v8882_v45, %v8889_v39  ;;  %v5730_v53 = vsel %vm971_vm6, %v8889_v39, %v8876_v60  ;;  %v5736_v8 = vadd.f32 %v726_v16, %v637_v11  ;;  %v8894_v45 = vld [vmem:[#allocation61_spill] sm:$0xff] }
 0x24a   : > { %8881 = vst [vmem:[#allocation73_spill] sm:$0xff] %v5702_v31  ;;  %8883 = vst [vmem:[#allocation74_spill] sm:$0xff] %v5709_v26  ;;  %v576_v10 = vsel %vm567_vm3, %v8887_v25, %v8886_v27  ;;  %v579_v62 = vsel %vm567_vm3, %v5489_v50, %v8887_v25  ;;  %v5738_v4 = vadd.f32 %v727_v52, %v638_v32  ;;  %v8896_v39 = vld [vmem:[#allocation57_spill] sm:$0xff]  ;;  %v8897_v16 = vld [vmem:[#allocation99_spill] sm:$0xff] }
 0x24b   : > { %8888 = vst [vmem:[#allocation25_spill] sm:$0xff] %v5718_v43  ;;  %8890 = vst [vmem:[#allocation37_spill] sm:$0xff] %v5724_v19  ;;  %v5741_v31 = vmul.f32 %v8877_v54, %v704_v44  ;;  %v573_v34 = vsel %vm567_vm3, %v8886_v27, %v8894_v45  ;;  %v5747_v43 = vpop.permute.xlu1 %1159  ;;  %v5749_v60 = vadd.f32 %v725_v23, %v636_v15  ;;  %v8898_v32 = vld [vmem:[#allocation54_spill] sm:$0xff]  ;;  %v8899_v44 = vld [vmem:[#allocation21_spill] sm:$0xff] }
 0x24c   : > { %8891 = vst [vmem:[#allocation55_spill] sm:$0xff] %v5730_v53  ;;  %8892 = vst [vmem:[#allocation36_spill] sm:$0xff] %v5736_v8  ;;  %v780_v11 = vsel %vm769_vm2, %v8896_v39, %v8874_v48  ;;  %v677_v54 = vsel %vm668_vm4, %v8898_v32, %v8897_v16  ;;  %v605_v52 = vmul.f32 %v5347_v12, %v576_v10  ;;  %v8902_v23 = vld [vmem:[#allocation56_spill] sm:$0xff]  ;;  %v5771_v53 = vpop.permute.xlu0 %1169 }
 0x24d   : > { %8893 = vst [vmem:[#allocation46_spill] sm:$0xff] %v5738_v4  ;;  %8895 = vst [vmem:[#allocation43_spill] sm:$0xff] %v5749_v60  ;;  %v5761_v25 = vmul.f32 %v8899_v44, %v803_v57  ;;  %v5764_v27 = vmul.f32 %v8899_v44, %v804_v3  ;;  %v674_v15 = vsel %vm668_vm4, %v8897_v16, %v8902_v23  ;;  %v8904_v57 = vld [vmem:[#allocation105_spill] sm:$0xff] }
 0x24e   : > { %v604_v48 = vmul.f32 %v5365_v37, %v579_v62  ;;  %8903 = vst [vmem:[#allocation106_spill] sm:$0xff] %v5771_v53  ;;  %v771_v10 = vsel %vm769_vm2, %v8872_v40, %v8896_v39  ;;  %v680_v3 = vsel %vm668_vm4, %v8904_v57, %v8898_v32  ;;  %v606_v12 = vmul.f32 %v5350_v36, %v573_v34  ;;  %v8905_v62 = vld [vmem:[#allocation68_spill] sm:$0xff]  ;;  %v8906_v39 = vld [vmem:[#allocation63_spill] sm:$0xff]  ;;  %v8907_v36 = vld [vmem:[#allocation17_spill] sm:$0xff] }
 0x24f   : > { %8900 = vst [vmem:[#allocation20_spill] sm:$0xff] %v5761_v25  ;;  %8901 = vst [vmem:[#allocation45_spill] sm:$0xff] %v5764_v27  ;;  %v570_v16 = vsel %vm567_vm3, %v8894_v45, %v5489_v50  ;;  %v5787_v37 = vmul.f32 %v8905_v62, %v780_v11  ;;  %v706_v53 = vmul.f32 %v5375_v20, %v677_v54  ;;  %v8908_v50 = vld [vmem:[#allocation107_spill] sm:$0xff]  ;;  %v8909_v45 = vld [vmem:[#allocation89_spill] sm:$0xff] }
 0x250   : > { %v671_v40 = vsel %vm668_vm4, %v8902_v23, %v8904_v57  ;;  %v778_v34 = vsel %vm769_vm2, %v8906_v39, %v5529_v24  ;;  %v707_v32 = vmul.f32 %v5378_v22, %v674_v15  ;;  %v629_v19 = vmul.f32 %v8907_v36, %v605_v52  ;;  %v8910_v57 = vld [vmem:[#allocation58_spill] sm:$0xff]  ;;  %v5815_v22 = vpop.permute.xlu1 %1171  ;;  %v5831_v25 = vpop.permute.xlu0 %1254 }
 0x251   : > { %v879_v11 = vsel %vm870_vm5, %v8909_v45, %v8908_v50  ;;  %v781_v54 = vsel %vm769_vm2, %v5576_v17, %v8906_v39  ;;  %v705_v23 = vmul.f32 %v5398_v33, %v680_v3  ;;  %v876_v20 = vsel %vm870_vm5, %v8908_v50, %v8910_v57  ;;  %v8911_v39 = vld [vmem:[#allocation75_spill] sm:$0xff]  ;;  %v8912_v50 = vld [vmem:[#allocation70_spill] sm:$0xff] }
 0x252   : > { %v607_v15 = vmul.f32 %v5372_v28, %v570_v16  ;;  %v628_v52 = vmul.f32 %v8907_v36, %v604_v48  ;;  %v708_v26 = vmul.f32 %v5401_v47, %v671_v40  ;;  %v630_v60 = vmul.f32 %v8907_v36, %v606_v12  ;;  %v8913_v16 = vld [vmem:[#allocation18_spill] sm:$0xff]  ;;  %v8914_v40 = vld [vmem:[#allocation79_spill] sm:$0xff] }
 0x253   : > { %v775_v3 = vsel %vm769_vm2, %v5529_v24, %v8911_v39  ;;  %v807_v33 = vmul.f32 %v8884_v1, %v778_v34  ;;  %v5826_v27 = vmul.f32 %v8912_v50, %v771_v10  ;;  %v730_v48 = vmul.f32 %v8913_v16, %v706_v53  ;;  %v8915_v53 = vld [vmem:[#allocation81_spill] sm:$0xff] }
 0x254   : > { %v908_v28 = vmul.f32 %v5291_v38, %v879_v11  ;;  %v806_v4 = vmul.f32 %v8905_v62, %v781_v54  ;;  %v731_v12 = vmul.f32 %v8913_v16, %v707_v32  ;;  %v641_v47 = vadd.f32 %v629_v19, %v8914_v40  ;;  %v8916_v54 = vld [vmem:[#allocation80_spill] sm:$0xff] }
 0x255   : > { %v909_v8 = vmul.f32 %v5294_v35, %v876_v20  ;;  %v882_v24 = vsel %vm870_vm5, %v5514_v29, %v8909_v45  ;;  %v631_v10 = vmul.f32 %v8907_v36, %v607_v15  ;;  %v640_v34 = vadd.f32 %v628_v52, %v8915_v53  ;;  %v8917_v35 = vld [vmem:[#allocation19_spill] sm:$0xff]  ;;  %v8918_v45 = vld [vmem:[#allocation24_spill] sm:$0xff]  ;;  %v8919_v15 = vld [vmem:[#allocation62_spill] sm:$0xff] }
 0x256   : > { %v808_v11 = vmul.f32 %v8885_v13, %v775_v3  ;;  %v772_v32 = vsel %vm769_vm2, %v8911_v39, %v5576_v17  ;;  %v729_v19 = vmul.f32 %v8913_v16, %v705_v23  ;;  %v732_v20 = vmul.f32 %v8913_v16, %v708_v26  ;;  %v5858_v17 = vpop.permute.xlu1 %1151  ;;  %v8922_v13 = vld [vmem:[#allocation78_spill] sm:$0xff] }
 0x257   : > { %v642_v40 = vadd.f32 %v630_v60, %v8916_v54  ;;  %v831_v38 = vmul.f32 %v8917_v35, %v807_v33  ;;  %v932_v62 = vmul.f32 %v8918_v45, %v908_v28  ;;  %v907_v36 = vmul.f32 %v5313_v30, %v882_v24  ;;  %v8920_v60 = vld [vmem:[#allocation84_spill] sm:$0xff]  ;;  %v5872_v54 = vpop.permute.xlu0 %1266 }
 0x258   : > { %v977_v52 = vsel %vm971_vm6, %v5551_v63, %v8919_v15  ;;  %v830_v3 = vmul.f32 %v8917_v35, %v806_v4  ;;  %v933_v23 = vmul.f32 %v8918_v45, %v909_v8  ;;  %v873_v33 = vsel %vm870_vm5, %v8910_v57, %v5514_v29  ;;  %v8921_v24 = vld [vmem:[#allocation60_spill] sm:$0xff]  ;;  %v8923_v29 = vld [vmem:[#allocation67_spill] sm:$0xff] }
 0x259   : > { %v742_v26 = vadd.f32 %v730_v48, %v641_v47  ;;  %v809_v28 = vmul.f32 %v8912_v50, %v772_v32  ;;  %v643_v39 = vadd.f32 %v631_v10, %v8920_v60  ;;  %v832_v16 = vmul.f32 %v8917_v35, %v808_v11 }
 0x25a   : > { %v980_v4 = vsel %vm971_vm6, %v8921_v24, %v5551_v63  ;;  %v741_v53 = vadd.f32 %v729_v19, %v640_v34  ;;  %v1009_v30 = vmul.f32 %v5328_v58, %v977_v52  ;;  %v1078_v47 = vsel %vm1072_vm7, %v5627_v6, %v8922_v13 }
 0x25b   : > { %v843_v8 = vadd.f32 %v831_v38, %v742_v26  ;;  %v1081_v57 = vsel %vm1072_vm7, %v8923_v29, %v5627_v6  ;;  %v910_v63 = vmul.f32 %v8863_v42, %v873_v33  ;;  %v931_v48 = vmul.f32 %v8918_v45, %v907_v36  ;;  %v8926_v26 = vld [vmem:[#allocation22_spill] sm:$0xff] }
 0x25c   : > { %v743_v10 = vadd.f32 %v731_v12, %v642_v40  ;;  %v842_v38 = vadd.f32 %v830_v3, %v741_v53  ;;  %v1008_v34 = vmul.f32 %v5325_v61, %v980_v4  ;;  %v833_v11 = vmul.f32 %v8917_v35, %v809_v28  ;;  %v8924_v12 = vld [vmem:[#allocation102_spill] sm:$0xff]  ;;  %v8925_v35 = vld [vmem:[#allocation92_spill] sm:$0xff]  ;;  %v5908_v3 = vpop.permute.xlu0 %1320 }
 0x25d   : > { %v974_v32 = vsel %vm971_vm6, %v8919_v15, %v5586_v41  ;;  %v983_v6 = vsel %vm971_vm6, %v5586_v41, %v8921_v24  ;;  %v1109_v19 = vmul.f32 %v8834_v7, %v1081_v57  ;;  %v1110_v36 = vmul.f32 %v8842_v5, %v1078_v47  ;;  %v5906_v15 = vpop.permute.xlu1 %1163 }
 0x25e   : > { %v1179_v40 = vsel %vm1173_vm8, %v5747_v43, %v8924_v12  ;;  %v1182_v52 = vsel %vm1173_vm8, %v8925_v35, %v5747_v43  ;;  %v844_v33 = vadd.f32 %v832_v16, %v743_v10  ;;  %v944_v41 = vadd.f32 %v932_v62, %v843_v8  ;;  %v8927_v8 = vld [vmem:[#allocation23_spill] sm:$0xff] }
 0x25f   : > { %v1033_v28 = vmul.f32 %v8926_v26, %v1009_v30  ;;  %v744_v60 = vadd.f32 %v732_v20, %v643_v39  ;;  %v943_v24 = vadd.f32 %v931_v48, %v842_v38  ;;  %v1010_v4 = vmul.f32 %v5331_v46, %v974_v32  ;;  %v8928_v10 = vld [vmem:[#allocation103_spill] sm:$0xff] }
 0x260   : > { %v1075_v53 = vsel %vm1072_vm7, %v8922_v13, %v5667_v2  ;;  %v1084_v43 = vsel %vm1072_vm7, %v5667_v2, %v8923_v29  ;;  %v1011_v16 = vmul.f32 %v5334_v49, %v983_v6  ;;  %v1210_v62 = vmul.f32 %v5492_v21, %v1182_v52  ;;  %v8929_v2 = vld [vmem:[#allocation104_spill] sm:$0xff]  ;;  %v8930_v52 = vld [vmem:[#allocation26_spill] sm:$0xff] }
 0x261   : > { %v845_v47 = vadd.f32 %v833_v11, %v744_v60  ;;  %v1211_v30 = vmul.f32 %v5500_v51, %v1179_v40  ;;  %v934_v20 = vmul.f32 %v8918_v45, %v910_v63  ;;  %v1032_v39 = vmul.f32 %v8926_v26, %v1008_v34 }
 0x262   : > { %v1133_v57 = vmul.f32 %v8927_v8, %v1109_v19  ;;  %v1134_v13 = vmul.f32 %v8927_v8, %v1110_v36  ;;  %v5927_v48 = vpop.permute.xlu1 %1215  ;;  %v1111_v38 = vmul.f32 %v8928_v10, %v1075_v53  ;;  %v1112_v29 = vmul.f32 %v8929_v2, %v1084_v43  ;;  %v5940_v19 = vpop.permute.xlu0 %1161 }
 0x263   : > { %v1176_v11 = vsel %vm1173_vm8, %v8924_v12, %v5815_v22  ;;  %v1185_v45 = vsel %vm1173_vm8, %v5815_v22, %v8925_v35  ;;  %v1045_v63 = vadd.f32 %v1033_v28, %v944_v41  ;;  %v945_v34 = vadd.f32 %v933_v23, %v844_v33 }
 0x264   : > { %v1034_v32 = vmul.f32 %v8926_v26, %v1010_v4  ;;  %v1044_v6 = vadd.f32 %v1032_v39, %v943_v24  ;;  %v946_v36 = vadd.f32 %v934_v20, %v845_v47  ;;  %v1035_v40 = vmul.f32 %v8926_v26, %v1011_v16 }
 0x265   : > { %v1234_v60 = vmul.f32 %v8930_v52, %v1210_v62  ;;  %v1235_v53 = vmul.f32 %v8930_v52, %v1211_v30  ;;  %v1212_v43 = vmul.f32 %v5517_v9, %v1176_v11  ;;  %v1213_v61 = vmul.f32 %v5537_v59, %v1185_v45 }
 0x266   : > { %v1145_v12 = vadd.f32 %v1133_v57, %v1044_v6  ;;  %v1261_v22 = vpop.permute.xlu1 %1260  ;;  %v1146_v35 = vadd.f32 %v1134_v13, %v1045_v63  ;;  %v1135_v23 = vmul.f32 %v8927_v8, %v1111_v38  ;;  %v1136_v33 = vmul.f32 %v8927_v8, %v1112_v29  ;;  %v5963_v57 = vpop.permute.xlu0 %1252  ;;  %v8931_v13 = vld [vmem:[#allocation30_spill] sm:$0xff] }
 0x267   : > { %v1280_v41 = vsel %vm1274_vm9, %v1261_v22, %v5872_v54  ;;  %v1283_v26 = vsel %vm1274_vm9, %v5831_v25, %v1261_v22  ;;  %v826_v28 = vmul.f32 %v8899_v44, %v5787_v37  ;;  %v829_v24 = vmul.f32 %v8899_v44, %v5826_v27  ;;  %v8932_v6 = vld [vmem:[#allocation34_spill] sm:$0xff] }
 0x268   : > { %v1311_v4 = vmul.f32 %v5596_v18, %v1283_v26  ;;  %v1312_v47 = vmul.f32 %v5600_v14, %v1280_v41  ;;  %v1046_v16 = vadd.f32 %v1034_v32, %v945_v34  ;;  %v1047_v62 = vadd.f32 %v1035_v40, %v946_v36  ;;  %v8933_v40 = vld [vmem:[#allocation36_spill] sm:$0xff]  ;;  %v8938_v26 = vld [vmem:[#allocation74_spill] sm:$0xff] }
 0x269   : > { %v1246_v30 = vadd.f32 %v1234_v60, %v1145_v12  ;;  %v1247_v20 = vadd.f32 %v1235_v53, %v1146_v35  ;;  %v1236_v39 = vmul.f32 %v8930_v52, %v1212_v43  ;;  %v1237_v8 = vmul.f32 %v8930_v52, %v1213_v61  ;;  %v8934_v52 = vld [vmem:[#allocation20_spill] sm:$0xff]  ;;  %v8935_v53 = vld [vmem:[#allocation46_spill] sm:$0xff]  ;;  %v8936_v12 = vld [vmem:[#allocation45_spill] sm:$0xff] }
 0x26a   : > { %v1335_v38 = vmul.f32 %v8931_v13, %v1311_v4  ;;  %v1273_v37 = vpop.permute.xlu1 %1272  ;;  %v1336_v29 = vmul.f32 %v8931_v13, %v1312_v47  ;;  %v1147_v44 = vadd.f32 %v1135_v23, %v1046_v16  ;;  %v1148_v45 = vadd.f32 %v1136_v33, %v1047_v62  ;;  %v8937_v43 = vld [vmem:[#allocation43_spill] sm:$0xff]  ;;  %v8939_v4 = vld [vmem:[#allocation37_spill] sm:$0xff] }
 0x26b   : > { %v1277_v27 = vsel %vm1274_vm9, %v5872_v54, %v1273_v37  ;;  %v1286_v11 = vsel %vm1274_vm9, %v1273_v37, %v5831_v25  ;;  %v740_v36 = vadd.f32 %v5741_v31, %v8932_v6  ;;  %v839_v60 = vadd.f32 %v8934_v52, %v8933_v40  ;;  %v8940_v16 = vld [vmem:[#allocation55_spill] sm:$0xff]  ;;  %v8950_v52 = vld [vmem:[#allocation53_spill] sm:$0xff] }
 0x26c   : > { %v1313_v63 = vmul.f32 %v5655_v0, %v1277_v27  ;;  %v1314_v61 = vmul.f32 %v5670_v55, %v1286_v11  ;;  %v1348_v34 = vadd.f32 %v1336_v29, %v1247_v20  ;;  %v1347_v32 = vadd.f32 %v1335_v38, %v1246_v30  ;;  %v8942_v20 = vld [vmem:[#allocation50_spill] sm:$0xff]  ;;  %v6000_v38 = vpop.permute.xlu0 %1264  ;;  %v8945_v27 = vld [vmem:[#allocation27_spill] sm:$0xff] }
 0x26d   : > { %v840_v54 = vadd.f32 %v8936_v12, %v8935_v53  ;;  %v838_v22 = vadd.f32 %v826_v28, %v8937_v43  ;;  %v1248_v35 = vadd.f32 %v1236_v39, %v1147_v44  ;;  %v1249_v33 = vadd.f32 %v1237_v8, %v1148_v45  ;;  %v8941_v28 = vld [vmem:[#allocation49_spill] sm:$0xff]  ;;  %v8943_v8 = vld [vmem:[#allocation47_spill] sm:$0xff]  ;;  %v8946_v45 = vld [vmem:[#allocation52_spill] sm:$0xff] }
 0x26e   : > { %v1337_v25 = vmul.f32 %v8931_v13, %v1313_v63  ;;  %v5983_v23 = vpop.permute.xlu1 %1149  ;;  %1394 = vmatprep.subr.mxu0 %v1348_v34  ;;  %v1338_v41 = vmul.f32 %v8931_v13, %v1314_v61  ;;  %v1005_v31 = vmul.f32 %v5328_v58, %v8938_v26  ;;  %v1006_v47 = vmul.f32 %v5331_v46, %v8939_v4  ;;  %v8944_v44 = vld [vmem:[#allocation25_spill] sm:$0xff]  ;;  %v8947_v61 = vld [vmem:[#allocation71_spill] sm:$0xff] }
 0x26f   : > { %v1007_v62 = vmul.f32 %v5334_v49, %v8940_v16  ;;  %v841_v30 = vadd.f32 %v829_v24, %v740_v36  ;;  %1395 = vmatpush1.msra.mxu0 %v1347_v32  ;;  %v1077_v39 = vsel %vm1072_vm7, %v8942_v20, %v8941_v28  ;;  %v1080_v13 = vsel %vm1072_vm7, %v8943_v8, %v8942_v20  ;;  %v8948_v32 = vld [vmem:[#allocation44_spill] sm:$0xff] }
 0x270   : > { %v1350_v37 = vadd.f32 %v1338_v41, %v1249_v33  ;;  %v1349_v29 = vadd.f32 %v1337_v25, %v1248_v35  ;;  %v1028_v11 = vmul.f32 %v8945_v27, %v8944_v44  ;;  %v1074_v24 = vsel %vm1072_vm7, %v8941_v28, %v8946_v45  ;;  %v8949_v36 = vld [vmem:[#allocation72_spill] sm:$0xff]  ;;  %v8951_v25 = vld [vmem:[#allocation73_spill] sm:$0xff]  ;;  %v8953_v28 = vld [vmem:[#allocation42_spill] sm:$0xff] }
 0x271   : > { %v1083_v63 = vsel %vm1072_vm7, %v8946_v45, %v8943_v8  ;;  %v941_v34 = vadd.f32 %v8947_v61, %v840_v54  ;;  %v940_v6 = vadd.f32 %v8948_v32, %v839_v60  ;;  %v939_v40 = vadd.f32 %v8949_v36, %v838_v22  ;;  %v8952_v16 = vld [vmem:[#allocation32_spill] sm:$0xff]  ;;  %v8956_v45 = vld [vmem:[#allocation109_spill] sm:$0xff] }
 0x272   : > { %v1181_v53 = vsel %vm1173_vm8, %v5858_v17, %v8950_v52  ;;  %v1178_v12 = vsel %vm1173_vm8, %v8950_v52, %v5906_v15  ;;  %v1156_v43 = vpop.permute.xlu1 %1155  ;;  %1471 = vmatprep.subr.mxu1 %v1350_v37  ;;  %v1030_v35 = vmul.f32 %v8945_v27, %v1006_v47  ;;  %v1105_v54 = vmul.f32 %v8834_v7, %v1080_v13  ;;  %v8954_v13 = vld [vmem:[#allocation106_spill] sm:$0xff]  ;;  %v6045_v37 = vpop.permute.xlu0 %1316  ;;  %v8958_v36 = vld [vmem:[#allocation33_spill] sm:$0xff]  ;;  %v8959_v52 = vld [vmem:[#allocation31_spill] sm:$0xff] }
 0x273   : > { %v1106_v60 = vmul.f32 %v8842_v5, %v1077_v39  ;;  %v942_v22 = vadd.f32 %v8951_v25, %v841_v30  ;;  %1472 = vmatpush1.msra.mxu1 %v1349_v29  ;;  %v1029_v33 = vmul.f32 %v8945_v27, %v1005_v31  ;;  %v1031_v41 = vmul.f32 %v8945_v27, %v1007_v62  ;;  %v8955_v27 = vld [vmem:[#allocation117_spill] sm:$0xff]  ;;  %v9041_v5 = vld [vmem:[#allocation96_spill] sm:$0xff] }
 0x274   : > { %v1107_v26 = vmul.f32 %v8928_v10, %v1074_v24  ;;  %v1108_v4 = vmul.f32 %v8929_v2, %v1083_v63  ;;  %v1082_v47 = vsel %vm1072_vm7, %v8953_v28, %v8952_v16  ;;  %v1206_v20 = vmul.f32 %v5492_v21, %v1181_v53  ;;  %v8957_v63 = vld [vmem:[#allocation29_spill] sm:$0xff] }
 0x275   : > { %v1042_v8 = vadd.f32 %v1030_v35, %v941_v34  ;;  %v1207_v39 = vmul.f32 %v5500_v51, %v1178_v12  ;;  %v1040_v30 = vadd.f32 %v1028_v11, %v939_v40  ;;  %v1184_v31 = vsel %vm1173_vm8, %v8954_v13, %v5858_v17 }
 0x276   : > { %v1175_v62 = vsel %vm1173_vm8, %v5906_v15, %v8954_v13  ;;  %v1168_v29 = vpop.permute.xlu1 %1167  ;;  %v1041_v44 = vadd.f32 %v1029_v33, %v940_v6  ;;  %v6049_v24 = vadd.f32 %v8956_v45, %v8955_v27  ;;  %v1129_v11 = vmul.f32 %v8957_v63, %v1105_v54  ;;  %v8960_v33 = vld [vmem:[#allocation39_spill] sm:$0xff] }
 0x277   : > { %v1130_v61 = vmul.f32 %v8957_v63, %v1106_v60  ;;  %v1043_v34 = vadd.f32 %v1031_v41, %v942_v22  ;;  %v1131_v17 = vmul.f32 %v8957_v63, %v1107_v26  ;;  %v1132_v32 = vmul.f32 %v8957_v63, %v1108_v4  ;;  %v8961_v41 = vld [vmem:[#allocation111_spill] sm:$0xff] }
 0x278   : > { %v1073_v15 = vsel %vm1072_vm7, %v8958_v36, %v8953_v28  ;;  %v1104_v6 = vmul.f32 %v8929_v2, %v1082_v47  ;;  %v1209_v40 = vmul.f32 %v5537_v59, %v1184_v31  ;;  %v1230_v53 = vmul.f32 %v8959_v52, %v1206_v20 }
 0x279   : > { %v1208_v12 = vmul.f32 %v5517_v9, %v1175_v62  ;;  %v1231_v35 = vmul.f32 %v8959_v52, %v1207_v39  ;;  %v1141_v54 = vadd.f32 %v1129_v11, %v1040_v30  ;;  %v1143_v60 = vadd.f32 %v1131_v17, %v1042_v8  ;;  %v8962_v8 = vld [vmem:[#allocation28_spill] sm:$0xff]  ;;  %v1257_v30 = vpop.permute.xlu0 %1256 }
 0x27a   : > { %v1259_v25 = vpop.permute.xlu1 %1258  ;;  %v1142_v22 = vadd.f32 %v1130_v61, %v1041_v44  ;;  %v938_v26 = vadd.f32 %v8961_v41, %v8960_v33  ;;  %v1183_v4 = vsel %vm1173_vm8, %v1168_v29, %v5983_v23  ;;  %v1144_v47 = vadd.f32 %v1132_v32, %v1043_v34 }
 0x27b   : > { %v1279_v16 = vsel %vm1274_vm9, %v1259_v25, %v6000_v38  ;;  %v1282_v28 = vsel %vm1274_vm9, %v5963_v57, %v1259_v25  ;;  %v1103_v20 = vmul.f32 %v8928_v10, %v1073_v15  ;;  %v1128_v39 = vmul.f32 %v8962_v8, %v1104_v6  ;;  %v6582_v10 = vld [vmem:[#allocation8 + $0x10] sm:$0xff] }
 0x27c   : > { %v1307_v13 = vmul.f32 %v5596_v18, %v1282_v28  ;;  %v1308_v31 = vmul.f32 %v5600_v14, %v1279_v16  ;;  %v1233_v62 = vmul.f32 %v8959_v52, %v1209_v40  ;;  %v1242_v44 = vadd.f32 %v1230_v53, %v1141_v54  ;;  %v8963_v54 = vld [vmem:[#allocation38_spill] sm:$0xff]  ;;  %9020 = vst [vmem:[#allocation37_spill] sm:$0xff] %v6582_v10 }
 0x27d   : > { %v1232_v27 = vmul.f32 %v8959_v52, %v1208_v12  ;;  %v1243_v45 = vadd.f32 %v1231_v35, %v1142_v22  ;;  %v1177_v63 = vsel %vm1173_vm8, %v1156_v43, %v5940_v19  ;;  %v1205_v11 = vmul.f32 %v5537_v59, %v1183_v4 }
 0x27e   : > { %v1331_v61 = vmul.f32 %v5908_v3, %v1307_v13  ;;  %v1271_v34 = vpop.permute.xlu1 %1270  ;;  %v1332_v17 = vmul.f32 %v5908_v3, %v1308_v31  ;;  %v1180_v32 = vsel %vm1173_vm8, %v5983_v23, %v1156_v43  ;;  %v1174_v36 = vsel %vm1173_vm8, %v5940_v19, %v1168_v29  ;;  %v1269_v29 = vpop.permute.xlu0 %1268  ;;  %v8964_v31 = vld [vmem:[#allocation40_spill] sm:$0xff] }
 0x27f   : > { %v1276_v15 = vsel %vm1274_vm9, %v6000_v38, %v1271_v34  ;;  %v1285_v6 = vsel %vm1274_vm9, %v1271_v34, %v5963_v57  ;;  %v1244_v35 = vadd.f32 %v1232_v27, %v1143_v60  ;;  %v1203_v23 = vmul.f32 %v5500_v51, %v1177_v63  ;;  %v8967_v27 = vld [vmem:[#allocation114_spill] sm:$0xff] }
 0x280   : > { %v1309_v40 = vmul.f32 %v5655_v0, %v1276_v15  ;;  %v1310_v52 = vmul.f32 %v5670_v55, %v1285_v6  ;;  %v1344_v53 = vadd.f32 %v1332_v17, %v1243_v45  ;;  %v1343_v12 = vadd.f32 %v1331_v61, %v1242_v44  ;;  %v8966_v44 = vld [vmem:[#allocation64_spill] sm:$0xff] }
 0x281   : > { %v1245_v43 = vadd.f32 %v1233_v62, %v1144_v47  ;;  %v1039_v19 = vadd.f32 %v8963_v54, %v938_v26  ;;  %v1204_v25 = vmul.f32 %v5517_v9, %v1174_v36  ;;  %v1229_v38 = vmul.f32 %v5927_v48, %v1205_v11 }
 0x282   : > { %v1333_v22 = vmul.f32 %v5908_v3, %v1309_v40  ;;  %v1251_v57 = vpop.permute.xlu1 %1250  ;;  %1396 = vmatprep.subr.mxu0 %v1344_v53  ;;  %v1334_v33 = vmul.f32 %v5908_v3, %v1310_v52  ;;  %v1127_v41 = vmul.f32 %v8962_v8, %v1103_v20  ;;  %v1202_v60 = vmul.f32 %v5492_v21, %v1180_v32  ;;  %v8965_v3 = vld [vmem:[#allocation16_spill] sm:$0xff] }
 0x283   : > { %v1281_v4 = vsel %vm1274_vm9, %v1251_v57, %v1257_v30  ;;  %v1284_v26 = vsel %vm1274_vm9, %v1269_v29, %v1251_v57  ;;  %1397 = vmatpush1.msra.mxu0 %v1343_v12  ;;  %v1140_v13 = vadd.f32 %v1128_v39, %v1039_v19  ;;  %v1126_v62 = vmul.f32 %v8962_v8, %v8964_v31  ;;  %v8969_v12 = vld [vmem:[#allocation69_spill] sm:$0xff] }
 0x284   : > { %v1306_v16 = vmul.f32 %v5670_v55, %v1284_v26  ;;  %v1346_v28 = vadd.f32 %v1334_v33, %v1245_v43  ;;  %v1345_v47 = vadd.f32 %v1333_v22, %v1244_v35  ;;  %v1038_v20 = vadd.f32 %v8966_v44, %v8965_v3  ;;  %v4305_v22 = vld [vmem:[#allocation8] sm:$0xff]  ;;  %v4306_v33 = vld [vmem:[#allocation8 + $0x8] sm:$0xf] }
 0x285   : > { %v1036_v45 = vadd.f32 %v8967_v27, %v6049_v24  ;;  %v1303_v63 = vmul.f32 %v5596_v18, %v1281_v4  ;;  %v1227_v11 = vmul.f32 %v5927_v48, %v1203_v23  ;;  %v1228_v61 = vmul.f32 %v5927_v48, %v1204_v25  ;;  %v8968_v24 = vld [vmem:[#allocation41_spill] sm:$0xff]  ;;  %v6150_v4 = vld [vmem:[#allocation7 + $0x28] sm:$0xff]  ;;  %v1356_v27 = vpop.permute.xlu0 %1355 }
 0x286   : > { %v1263_v34 = vpop.permute.xlu1 %1262  ;;  %1473 = vmatprep.subr.mxu1 %v1346_v28  ;;  %v1241_v17 = vadd.f32 %v1229_v38, %v1140_v13  ;;  %v1330_v39 = vmul.f32 %v6045_v37, %v1306_v16  ;;  %v1226_v32 = vmul.f32 %v5927_v48, %v1202_v60  ;;  %v1138_v15 = vadd.f32 %v1126_v62, %v8968_v24 }
 0x287   : > { %v1275_v8 = vsel %vm1274_vm9, %v1263_v34, %v1269_v29  ;;  %v1278_v36 = vsel %vm1274_vm9, %v1257_v30, %v1263_v34  ;;  %1474 = vmatpush1.msra.mxu1 %v1345_v47  ;;  %v1139_v6 = vadd.f32 %v1127_v41, %v1038_v20  ;;  %v1137_v35 = vadd.f32 %v8969_v12, %v1036_v45  ;;  %v6147_v41 = vld [vmem:[#allocation7 + $0x20] sm:$0xff] }
 0x288   : > { %v1304_v40 = vmul.f32 %v5600_v14, %v1278_v36  ;;  %v1305_v52 = vmul.f32 %v5655_v0, %v1275_v8  ;;  %v1342_v53 = vadd.f32 %v1330_v39, %v1241_v17  ;;  %v1327_v23 = vmul.f32 %v6045_v37, %v1303_v63  ;;  %1554 = vperm.xlu1 %4247, %v6150_v4  }
 0x289   : > { %v1240_v48 = vadd.f32 %v1228_v61, %v1139_v6  ;;  %v1239_v54 = vadd.f32 %v1227_v11, %v1138_v15  ;;  %v1238_v19 = vadd.f32 %v1226_v32, %v1137_v35  ;;  %v8970_v57 = vmov 0.0  }
 0x28a   : > { %v1329_v43 = vmul.f32 %v6045_v37, %v1305_v52  ;;  %1475 = vmatprep.subr.mxu1 %v1342_v53  ;;  %v1328_v30 = vmul.f32 %v6045_v37, %v1304_v40  ;;  %v6144_v37 = vld [vmem:[#allocation7 + $0x18] sm:$0xff]  ;;  %v8971_v60 = vmov 16   ;;  %v8972_v26 = vmov 12   ;;  %v1361_v11 = vpop.permute.xlu1 %1360 }
 0x28b   : > { %v1339_v38 = vadd.f32 %v1327_v23, %v1238_v19  ;;  %1544 = vperm.xlu0 %4248, %v6144_v37   ;;  %v8973_v16 = vmov 13   ;;  %v8974_v28 = vmov 14   ;;  %v8975_v47 = vmov 15  }
 0x28c   : > { %v1340_v29 = vadd.f32 %v1328_v30, %v1239_v54  ;;  %v1341_v25 = vadd.f32 %v1329_v43, %v1240_v48  ;;  %1549 = vperm.xlu1 %4247, %v6147_v41   ;;  %v8976_v13 = vmov 17   ;;  %v8977_v31 = vmov 18  }
 0x28d   : > { %v8978_v62 = vmov 19   ;;  %v8979_v3 = vmov 20   ;;  %v8980_v44 = vmov 24  }
 0x28e   : > { %1398 = vmatprep.subr.mxu0 %v1340_v29  ;;  %1476 = vmatpush1.msra.mxu1 %v1341_v25 }
 0x28f   : > { %1399 = vmatpush1.msra.mxu0 %v1339_v38  ;;  %4062 = vmatmul.mubr.msk.f32.vlgmr.msra.gmra.mxu1 %vm1363_vm10, %v4305_v22 }
 0x290   : > { %4060 = vmatmul.mubr.msk.f32.vlgmr.msra.gmra.mxu0 %vm1363_vm10, %v4305_v22  ;;  %1515 = vmatprep.mubr.f32.mxu1 %v8970_v57 }
 0x291   : > { %1438 = vmatprep.mubr.f32.mxu0 %v8970_v57  ;;  %4251 = vset.pattern.permute.xlu0 %v8971_v60 }
 0x292   : > { %1746 = vperm.xlu0 %4251, %v6147_v41   ;;  %4249 = vset.pattern.permute.xlu1 %v8971_v60 }
 0x293   : > { %4063 = vmatmul.mubr.msk.f32.gmra.mxu1 %vm1363_vm10, %v4306_v33  ;;  %1750 = vperm.xlu1 %4249, %v6150_v4  }
 0x294   : > { %4061 = vmatmul.mubr.msk.f32.gmra.mxu0 %vm1363_vm10, %v4306_v33  ;;  %1722 = vmatprep.mubr.f32.mxu1 %v8970_v57 }
 0x295   : > { %1639 = vmatprep.mubr.f32.mxu0 %v8970_v57 }
 0x296   : > { %4252 = vset.pattern.permute.xlu0 %v8972_v26 }
 0x297   : > { %1818 = vperm.xlu0 %4252, %v6147_v41   ;;  %4250 = vset.pattern.permute.xlu1 %v8972_v26 }
 0x298   : > { %1822 = vperm.xlu1 %4250, %v6150_v4  }
 0x29b   : > { %1814 = vperm.xlu0 %4252, %v6144_v37  }
 0x29c   : > { %4253 = vset.pattern.permute.xlu1 %v8973_v16 }
 0x29d   : > { %1906 = vperm.xlu1 %4253, %v6150_v4  }
 0x29f   : > { %4256 = vset.pattern.permute.xlu0 %v8973_v16 }
 0x2a0   : > { %1898 = vperm.xlu0 %4256, %v6144_v37  }
 0x2a1   : > { %4254 = vset.pattern.permute.xlu1 %v8971_v60 }
 0x2a2   : > { %1742 = vperm.xlu1 %4254, %v6144_v37  }
 0x2a4   : > { %4257 = vset.pattern.permute.xlu0 %v8974_v28 }
 0x2a5   : > { %1990 = vperm.xlu0 %4257, %v6150_v4  }
 0x2a6   : > { %4255 = vset.pattern.permute.xlu1 %v8973_v16 }
 0x2a7   : > { %1902 = vperm.xlu1 %4255, %v6147_v41  }
 0x2a9   : > { %1986 = vperm.xlu0 %4257, %v6147_v41  }
 0x2ab   : > { %4258 = vset.pattern.permute.xlu1 %v8975_v47 }
 0x2ac   : > { %2074 = vperm.xlu1 %4258, %v6150_v4  }
 0x2ad   : > { %4260 = vset.pattern.permute.xlu0 %v8975_v47 }
 0x2ae   : > { %2070 = vperm.xlu0 %4260, %v6147_v41  }
 0x2b0   : > { %4259 = vset.pattern.permute.xlu1 %v8974_v28 }
 0x2b1   : > { %1982 = vperm.xlu1 %4259, %v6144_v37  }
 0x2b2   : > { %4263 = vset.pattern.permute.xlu0 %v8976_v13 }
 0x2b3   : > { %2154 = vperm.xlu0 %4263, %v6147_v41  }
 0x2b5   : > { %4261 = vset.pattern.permute.xlu1 %v8976_v13 }
 0x2b6   : > { %2158 = vperm.xlu1 %4261, %v6150_v4  }
 0x2b7   : > { %4266 = vset.pattern.permute.xlu0 %v8977_v31 }
 0x2b8   : > { %2238 = vperm.xlu0 %4266, %v6147_v41  }
 0x2ba   : > { %4262 = vset.pattern.permute.xlu1 %v8975_v47 }
 0x2bb   : > { %2066 = vperm.xlu1 %4262, %v6144_v37  }
 0x2bc   : > { %4269 = vset.pattern.permute.xlu0 %v8978_v62 }
 0x2bd   : > { %2322 = vperm.xlu0 %4269, %v6147_v41  }
 0x2bf   : > { %4264 = vset.pattern.permute.xlu1 %v8977_v31 }
 0x2c0   : > { %2242 = vperm.xlu1 %4264, %v6150_v4  }
 0x2c1   : > { %4272 = vset.pattern.permute.xlu0 %v8979_v3 }
 0x2c2   : > { %2406 = vperm.xlu0 %4272, %v6147_v41  }
 0x2c4   : > { %4265 = vset.pattern.permute.xlu1 %v8976_v13 }
 0x2c5   : > { %2150 = vperm.xlu1 %4265, %v6144_v37  }
 0x2c9   : > { %4267 = vset.pattern.permute.xlu1 %v8978_v62 }
 0x2ca   : > { %2326 = vperm.xlu1 %4267, %v6150_v4  }
 0x2ce   : > { %4268 = vset.pattern.permute.xlu1 %v8977_v31 }
 0x2cf   : > { %2234 = vperm.xlu1 %4268, %v6144_v37  }
 0x2d3   : > { %4270 = vset.pattern.permute.xlu1 %v8979_v3 }
 0x2d4   : > { %2410 = vperm.xlu1 %4270, %v6150_v4  }
 0x2d8   : > { %4271 = vset.pattern.permute.xlu1 %v8978_v62 }
 0x2d9   : > { %2318 = vperm.xlu1 %4271, %v6144_v37  }
 0x2dd   : > { %4273 = vset.pattern.permute.xlu1 %v8980_v44 }
 0x34f   : > { %v1511_v20 = vpop.f32.mrf.mxu1 }
 0x350   : > { %v1434_v45 = vpop.f32.mrf.mxu0  ;;  %v1512_v8 = vadd.f32 %v1511_v20, %v1356_v27 }
 0x351   : > { %v1513_v63 = vpop.f32.mrf.mxu1  ;;  %v1435_v6 = vadd.f32 %v1434_v45, %v1356_v27 }
 0x352   : > { %v1514_v61 = vadd.f32 %v1513_v63, %v1356_v27  ;;  %v1436_v34 = vpop.f32.mrf.mxu0  ;;  %v1524_v30 = vmul.f32 0.2, %v1512_v8  ;;  %v1545_v63 = vpop.permute.xlu0 %1544 }
 0x353   : > { %v1517_v17 = vpop.f32.mrf.mxu1  ;;  %v1437_v36 = vadd.f32 %v1436_v34, %v1356_v27  ;;  %v1522_v19 = vmul.f32 0.2, %v1435_v6 }
 0x354   : > { %v1518_v39 = vadd.f32 %v1517_v17, %v1361_v11  ;;  %v1440_v32 = vpop.f32.mrf.mxu0  ;;  %v1525_v40 = vmul.f32 0.2, %v1514_v61  ;;  %v1532_v27 = vmax.f32 %v1512_v8, %v1524_v30  ;;  %v6250_v8 = vpop.permute.xlu1 %1554 }
 0x355   : > { %v1441_v24 = vadd.f32 %v1440_v32, %v1361_v11  ;;  %v1519_v15 = vpop.f32.mrf.mxu1  ;;  %v1523_v43 = vmul.f32 0.2, %v1437_v36  ;;  %v1530_v45 = vmax.f32 %v1435_v6, %v1522_v19 }
 0x356   : > { %v1520_v52 = vadd.f32 %v1519_v15, %v1361_v11  ;;  %v1442_v53 = vpop.f32.mrf.mxu0  ;;  %v1528_v12 = vmul.f32 0.2, %v1518_v39  ;;  %v1533_v29 = vmax.f32 %v1514_v61, %v1525_v40 }
 0x357   : > { %v1443_v35 = vadd.f32 %v1442_v53, %v1361_v11  ;;  %v1526_v23 = vmul.f32 0.2, %v1441_v24  ;;  %v1531_v20 = vmax.f32 %v1437_v36, %v1523_v43 }
 0x358   : > { %v1529_v48 = vmul.f32 0.2, %v1520_v52  ;;  %v1536_v38 = vmax.f32 %v1518_v39, %v1528_v12  ;;  %v1550_v36 = vpop.permute.xlu1 %1549 }
 0x359   : > { %v1527_v54 = vmul.f32 0.2, %v1443_v35  ;;  %v1534_v33 = vmax.f32 %v1441_v24, %v1526_v23 }
 0x35a   : > { %v1537_v25 = vmax.f32 %v1520_v52, %v1529_v48  ;;  %v6302_v48 = vpop.permute.xlu0 %1746 }
 0x35b   : > { %v1535_v22 = vmax.f32 %v1443_v35, %v1527_v54 }
 0x35c   : > { %4069 = vmatprep.subr.msk.mxu1 %vm338_vm0, %v1537_v25  ;;  %v6264_v24 = vpop.permute.xlu1 %1750 }
 0x35d   : > { %4064 = vmatprep.subr.msk.mxu0 %vm338_vm0, %v1535_v22  ;;  %4070 = vmatpush1.msk.msra.mxu1 %vm338_vm0, %v1536_v38 }
 0x35e   : > { %4065 = vmatpush1.msk.msra.mxu0 %vm338_vm0, %v1534_v33  ;;  %1688 = vmatprep.subr.mxu1 %v1533_v29  ;;  %v6308_v43 = vpop.permute.xlu0 %1818 }
 0x35f   : > { %1605 = vmatprep.subr.mxu0 %v1531_v20  ;;  %1689 = vmatpush1.msra.mxu1 %v1532_v27  ;;  %8984 = vst [vmem:[#allocation57_spill] sm:$0xff] %v6308_v43 }
 0x360   : > { %1606 = vmatpush1.msra.mxu0 %v1530_v45  ;;  %4071 = vmatmul.mubr.msk.f32.vlgmr.msra.gmra.mxu1 %vm331_vm1, %v6144_v37  ;;  %v6272_v15 = vpop.permute.xlu1 %1822 }
 0x361   : > { %4066 = vmatmul.mubr.msk.f32.vlgmr.msra.gmra.mxu0 %vm331_vm1, %v6144_v37  ;;  %1728 = vmatprep.mubr.f32.mxu1 %v8970_v57  ;;  %8981 = vst [vmem:[#allocation59_spill] sm:$0xff] %v6272_v15 }
 0x362   : > { %1645 = vmatprep.mubr.f32.mxu0 %v8970_v57  ;;  %v6318_v30 = vpop.permute.xlu0 %1814 }
 0x364   : > { %4072 = vmatmul.mubr.msk.f32.gmra.mxu1 %vm331_vm1, %v6147_v41  ;;  %v6280_v6 = vpop.permute.xlu1 %1906 }
 0x365   : > { %4067 = vmatmul.mubr.msk.f32.gmra.mxu0 %vm331_vm1, %v6147_v41  ;;  %1734 = vmatprep.mubr.f32.mxu1 %v8970_v57  ;;  %8982 = vst [vmem:[#allocation48_spill] sm:$0xff] %v6280_v6 }
 0x366   : > { %1651 = vmatprep.mubr.f32.mxu0 %v8970_v57  ;;  %v6328_v29 = vpop.permute.xlu0 %1898 }
 0x368   : > { %4073 = vmatmul.mubr.msk.f32.gmra.mxu1 %vm331_vm1, %v6150_v4  ;;  %v6288_v40 = vpop.permute.xlu1 %1742 }
 0x369   : > { %4068 = vmatmul.mubr.msk.f32.gmra.mxu0 %vm331_vm1, %v6150_v4  ;;  %2595 = vmatprep.mubr.f32.mxu1 %v8970_v57 }
 0x36a   : > { %2518 = vmatprep.mubr.f32.mxu0 %v8970_v57  ;;  %v6340_v33 = vpop.permute.xlu0 %1990 }
 0x36b   : > { %8987 = vst [vmem:[#allocation21_spill] sm:$0xff] %v6340_v33 }
 0x36c   : > { %v6298_v35 = vpop.permute.xlu1 %1902 }
 0x36d   : > { %8983 = vst [vmem:[#allocation61_spill] sm:$0xff] %v6298_v35 }
 0x370   : > { %v6310_v54 = vpop.permute.xlu1 %2074 }
 0x371   : > { %8985 = vst [vmem:[#allocation99_spill] sm:$0xff] %v6310_v54 }
 0x374   : > { %v6322_v19 = vpop.permute.xlu1 %1982 }
 0x378   : > { %v6330_v25 = vpop.permute.xlu1 %2158 }
 0x379   : > { %8986 = vst [vmem:[#allocation54_spill] sm:$0xff] %v6330_v25 }
 0x37c   : > { %v6344_v27 = vpop.permute.xlu1 %2066 }
 0x420   : > { %v1724_v11 = vpop.f32.mrf.mxu1 }
 0x421   : > { %v6226_v61 = vadd.f32 %v1724_v11, %v1545_v63  ;;  %v1641_v34 = vpop.f32.mrf.mxu0  ;;  %v6354_v11 = vpop.permute.xlu1 %2242 }
 0x422   : > { %v6228_v41 = vadd.f32 %v1641_v34, %v1545_v63  ;;  %v1726_v39 = vpop.f32.mrf.mxu1  ;;  %8989 = vst [vmem:[#allocation105_spill] sm:$0xff] %v6354_v11 }
 0x423   : > { %1777 = vrot.lane.b32.xlu0 %v6226_v61, %s4543_s26  ;;  %v1643_v17 = vpop.f32.mrf.mxu0  ;;  %v6244_v32 = vadd.f32 %v1726_v39, %v1545_v63 }
 0x424   : > { %1765 = vrot.lane.b32.xlu1 %v6228_v41, %s4543_s26  ;;  %v6238_v4 = vadd.f32 %v1643_v17, %v1545_v63  ;;  %v1730_v12 = vpop.f32.mrf.mxu1  ;;  %v6352_v63 = vpop.permute.xlu0 %1986 }
 0x425   : > { %v1647_v52 = vpop.f32.mrf.mxu0  ;;  %v6300_v23 = vadd.f32 %v1730_v12, %v1550_v36  ;;  %8988 = vst [vmem:[#allocation56_spill] sm:$0xff] %v6352_v63  ;;  %v6366_v17 = vpop.permute.xlu1 %2150 }
 0x426   : > { %v6292_v53 = vadd.f32 %v1647_v52, %v1550_v36  ;;  %v1732_v20 = vpop.f32.mrf.mxu1 }
 0x427   : > { %2281 = vrot.lane.b32.xlu0 %v6226_v61, %s4548_s14  ;;  %v1649_v38 = vpop.f32.mrf.mxu0  ;;  %v6346_v45 = vadd.f32 %v1732_v20, %v1550_v36 }
 0x428   : > { %1849 = vrot.lane.b32.xlu1 %v6228_v41, %s4542_s24  ;;  %v6336_v22 = vadd.f32 %v1649_v38, %v1550_v36  ;;  %v6362_v34 = vpop.permute.xlu0 %2070  ;;  %v1736_v62 = vpop.f32.mrf.mxu1 }
 0x429   : > { %8990 = vst [vmem:[#allocation63_spill] sm:$0xff] %v6362_v34  ;;  %v6374_v36 = vpop.permute.xlu1 %2326  ;;  %v6409_v13 = vadd.f32 %v1736_v62, %v6250_v8  ;;  %v1653_v16 = vpop.f32.mrf.mxu0 }
 0x42a   : > { %8992 = vst [vmem:[#allocation107_spill] sm:$0xff] %v6374_v36  ;;  %v6424_v62 = vadd.f32 %v1653_v16, %v6250_v8 }
 0x42b   : > { %1855 = vrot.lane.b32.xlu0 %v6238_v4, %s4542_s24  ;;  %v1655_v55 = vpop.f32.mrf.mxu0 }
 0x42c   : > { %1861 = vrot.lane.b32.xlu1 %v6226_v61, %s4542_s24  ;;  %v6372_v39 = vpop.permute.xlu0 %2154 }
 0x42d   : > { %8991 = vst [vmem:[#allocation17_spill] sm:$0xff] %v6372_v39  ;;  %v6386_v12 = vpop.permute.xlu1 %2234 }
 0x42e   : > { %8994 = vst [vmem:[#allocation58_spill] sm:$0xff] %v6386_v12 }
 0x42f   : > { %1867 = vrot.lane.b32.xlu0 %v6244_v32, %s4542_s24 }
 0x430   : > { %1933 = vrot.lane.b32.xlu1 %v6228_v41, %s4544_s23  ;;  %v6382_v52 = vpop.permute.xlu0 %2238 }
 0x431   : > { %8993 = vst [vmem:[#allocation89_spill] sm:$0xff] %v6382_v52  ;;  %v6394_v20 = vpop.permute.xlu1 %2410 }
 0x432   : > { %8996 = vst [vmem:[#allocation18_spill] sm:$0xff] %v6394_v20 }
 0x433   : > { %1939 = vrot.lane.b32.xlu0 %v6238_v4, %s4544_s23 }
 0x434   : > { %1945 = vrot.lane.b32.xlu1 %v6226_v61, %s4544_s23  ;;  %v6392_v38 = vpop.permute.xlu0 %2322 }
 0x435   : > { %8995 = vst [vmem:[#allocation75_spill] sm:$0xff] %v6392_v38  ;;  %v6406_v31 = vpop.permute.xlu1 %2318  ;;  %v1738_v38 = vpop.f32.mrf.mxu1 }
 0x436   : > { %8998 = vst [vmem:[#allocation81_spill] sm:$0xff] %v6406_v31  ;;  %v6488_v52 = vadd.f32 %v1738_v38, %v6250_v8 }
 0x437   : > { %1951 = vrot.lane.b32.xlu0 %v6244_v32, %s4544_s23 }
 0x438   : > { %2017 = vrot.lane.b32.xlu1 %v6228_v41, %s4545_s28  ;;  %v6402_v3 = vpop.permute.xlu0 %2406 }
 0x439   : > { %8997 = vst [vmem:[#allocation79_spill] sm:$0xff] %v6402_v3  ;;  %v6477_v3 = vadd.f32 %v1655_v55, %v6250_v8 }
 0x43b   : > { %2023 = vrot.lane.b32.xlu0 %v6238_v4, %s4545_s28 }
 0x43c   : > { %2029 = vrot.lane.b32.xlu1 %v6226_v61, %s4545_s28 }
 0x43f   : > { %2035 = vrot.lane.b32.xlu0 %v6244_v32, %s4545_s28 }
 0x440   : > { %2101 = vrot.lane.b32.xlu1 %v6228_v41, %s4546_s30 }
 0x443   : > { %2107 = vrot.lane.b32.xlu0 %v6238_v4, %s4546_s30 }
 0x444   : > { %2113 = vrot.lane.b32.xlu1 %v6226_v61, %s4546_s30 }
 0x447   : > { %2119 = vrot.lane.b32.xlu0 %v6244_v32, %s4546_s30 }
 0x448   : > { %2185 = vrot.lane.b32.xlu1 %v6228_v41, %s4547_s6 }
 0x44b   : > { %2191 = vrot.lane.b32.xlu0 %v6238_v4, %s4547_s6 }
 0x44c   : > { %2197 = vrot.lane.b32.xlu1 %v6226_v61, %s4547_s6 }
 0x44f   : > { %2203 = vrot.lane.b32.xlu0 %v6244_v32, %s4547_s6 }
 0x450   : > { %2269 = vrot.lane.b32.xlu1 %v6228_v41, %s4548_s14 }
 0x453   : > { %1767 = vrot.lane.b32.xlu0 %v6292_v53, %s4543_s26 }
 0x454   : > { %1771 = vrot.lane.b32.xlu1 %v6238_v4, %s4543_s26 }
 0x457   : > { %1779 = vrot.lane.b32.xlu0 %v6300_v23, %s4543_s26 }
 0x458   : > { %1783 = vrot.lane.b32.xlu1 %v6244_v32, %s4543_s26 }
 0x45b   : > { %1851 = vrot.lane.b32.xlu0 %v6292_v53, %s4542_s24 }
 0x45c   : > { %2275 = vrot.lane.b32.xlu1 %v6238_v4, %s4548_s14 }
 0x45f   : > { %1863 = vrot.lane.b32.xlu0 %v6300_v23, %s4542_s24 }
 0x460   : > { %2287 = vrot.lane.b32.xlu1 %v6244_v32, %s4548_s14 }
 0x463   : > { %2355 = vrot.lane.b32.xlu0 %v6292_v53, %s4549_s17 }
 0x464   : > { %1935 = vrot.lane.b32.xlu1 %v6292_v53, %s4544_s23 }
 0x467   : > { %2367 = vrot.lane.b32.xlu0 %v6300_v23, %s4549_s17 }
 0x468   : > { %1947 = vrot.lane.b32.xlu1 %v6300_v23, %s4544_s23 }
 0x46b   : > { %1941 = vrot.lane.b32.xlu0 %v6336_v22, %s4544_s23 }
 0x46c   : > { %2019 = vrot.lane.b32.xlu1 %v6292_v53, %s4545_s28 }
 0x46f   : > { %1953 = vrot.lane.b32.xlu0 %v6346_v45, %s4544_s23 }
 0x470   : > { %2031 = vrot.lane.b32.xlu1 %v6300_v23, %s4545_s28 }
 0x473   : > { %2025 = vrot.lane.b32.xlu0 %v6336_v22, %s4545_s28 }
 0x474   : > { %2103 = vrot.lane.b32.xlu1 %v6292_v53, %s4546_s30 }
 0x477   : > { %2037 = vrot.lane.b32.xlu0 %v6346_v45, %s4545_s28 }
 0x478   : > { %2115 = vrot.lane.b32.xlu1 %v6300_v23, %s4546_s30 }
 0x47b   : > { %2109 = vrot.lane.b32.xlu0 %v6336_v22, %s4546_s30 }
 0x47c   : > { %2187 = vrot.lane.b32.xlu1 %v6292_v53, %s4547_s6 }
 0x47f   : > { %2121 = vrot.lane.b32.xlu0 %v6346_v45, %s4546_s30 }
 0x480   : > { %2199 = vrot.lane.b32.xlu1 %v6300_v23, %s4547_s6 }
 0x483   : > { %2193 = vrot.lane.b32.xlu0 %v6336_v22, %s4547_s6 }
 0x484   : > { %2271 = vrot.lane.b32.xlu1 %v6292_v53, %s4548_s14 }
 0x487   : > { %2205 = vrot.lane.b32.xlu0 %v6346_v45, %s4547_s6 }
 0x488   : > { %2283 = vrot.lane.b32.xlu1 %v6300_v23, %s4548_s14 }
 0x48b   : > { %2277 = vrot.lane.b32.xlu0 %v6336_v22, %s4548_s14 }
 0x48c   : > { %1773 = vrot.lane.b32.xlu1 %v6336_v22, %s4543_s26 }
 0x48f   : > { %2289 = vrot.lane.b32.xlu0 %v6346_v45, %s4548_s14 }
 0x490   : > { %1785 = vrot.lane.b32.xlu1 %v6346_v45, %s4543_s26 }
 0x493   : > { %1781 = vrot.lane.b32.xlu0 %v6409_v13, %s4543_s26 }
 0x494   : > { %1857 = vrot.lane.b32.xlu1 %v6336_v22, %s4542_s24 }
 0x495   : > { %v6415_v47 = vpop.permute.xlu0 %1777 }
 0x496   : > { %v6417_v28 = vpop.permute.xlu1 %1765 }
 0x497   : > { %1949 = vrot.lane.b32.xlu0 %v6409_v13, %s4544_s23 }
 0x498   : > { %1869 = vrot.lane.b32.xlu1 %v6346_v45, %s4542_s24 }
 0x499   : > { %v6426_v26 = vpop.permute.xlu0 %2281 }
 0x49a   : > { %8999 = vst [vmem:[#allocation80_spill] sm:$0xff] %v6426_v26  ;;  %v6428_v60 = vpop.permute.xlu1 %1849 }
 0x49b   : > { %2021 = vrot.lane.b32.xlu0 %v6424_v62, %s4545_s28 }
 0x49c   : > { %2361 = vrot.lane.b32.xlu1 %v6336_v22, %s4549_s17 }
 0x49d   : > { %v6434_v57 = vpop.permute.xlu0 %1855 }
 0x49e   : > { %v6436_v20 = vpop.permute.xlu1 %1861 }
 0x49f   : > { %2033 = vrot.lane.b32.xlu0 %v6409_v13, %s4545_s28 }
 0x4a0   : > { %2373 = vrot.lane.b32.xlu1 %v6346_v45, %s4549_s17 }
 0x4a1   : > { %v6442_v16 = vpop.permute.xlu0 %1867 }
 0x4a2   : > { %v6444_v36 = vpop.permute.xlu1 %1933 }
 0x4a3   : > { %2105 = vrot.lane.b32.xlu0 %v6424_v62, %s4546_s30 }
 0x4a4   : > { %1769 = vrot.lane.b32.xlu1 %v6424_v62, %s4543_s26 }
 0x4a5   : > { %v6450_v11 = vpop.permute.xlu0 %1939 }
 0x4a6   : > { %v6452_v25 = vpop.permute.xlu1 %1945 }
 0x4a7   : > { %2117 = vrot.lane.b32.xlu0 %v6409_v13, %s4546_s30 }
 0x4a8   : > { %1853 = vrot.lane.b32.xlu1 %v6424_v62, %s4542_s24 }
 0x4a9   : > { %v6458_v54 = vpop.permute.xlu0 %1951 }
 0x4aa   : > { %v6460_v33 = vpop.permute.xlu1 %2017 }
 0x4ab   : > { %2189 = vrot.lane.b32.xlu0 %v6424_v62, %s4547_s6 }
 0x4ac   : > { %1865 = vrot.lane.b32.xlu1 %v6409_v13, %s4542_s24 }
 0x4ad   : > { %v6466_v6 = vpop.permute.xlu0 %2023 }
 0x4ae   : > { %v6468_v15 = vpop.permute.xlu1 %2029 }
 0x4af   : > { %2201 = vrot.lane.b32.xlu0 %v6409_v13, %s4547_s6 }
 0x4b0   : > { %1937 = vrot.lane.b32.xlu1 %v6424_v62, %s4544_s23 }
 0x4b1   : > { %v6474_v0 = vpop.permute.xlu0 %2035 }
 0x4b2   : > { %v6479_v14 = vpop.permute.xlu1 %2101 }
 0x4b3   : > { %2273 = vrot.lane.b32.xlu0 %v6424_v62, %s4548_s14 }
 0x4b4   : > { %1775 = vrot.lane.b32.xlu1 %v6477_v3, %s4543_s26 }
 0x4b5   : > { %v6485_v18 = vpop.permute.xlu0 %2107 }
 0x4b6   : > { %v6490_v39 = vpop.permute.xlu1 %2113 }
 0x4b7   : > { %2285 = vrot.lane.b32.xlu0 %v6409_v13, %s4548_s14 }
 0x4b8   : > { %1787 = vrot.lane.b32.xlu1 %v6488_v52, %s4543_s26 }
 0x4b9   : > { %v6496_v55 = vpop.permute.xlu0 %2119 }
 0x4ba   : > { %v6498_v35 = vpop.permute.xlu1 %2185 }
 0x4bb   : > { %2357 = vrot.lane.b32.xlu0 %v6424_v62, %s4549_s17 }
 0x4bc   : > { %2353 = vrot.lane.b32.xlu1 %v6228_v41, %s4549_s17 }
 0x4bd   : > { %v6504_v8 = vpop.permute.xlu0 %2191 }
 0x4be   : > { %v6506_v38 = vpop.permute.xlu1 %2197 }
 0x4bf   : > { %2369 = vrot.lane.b32.xlu0 %v6409_v13, %s4549_s17 }
 0x4c0   : > { %1943 = vrot.lane.b32.xlu1 %v6477_v3, %s4544_s23 }
 0x4c1   : > { %v6512_v34 = vpop.permute.xlu0 %2203 }
 0x4c2   : > { %9000 = vst [vmem:[#allocation19_spill] sm:$0xff] %v6512_v34  ;;  %v6514_v43 = vpop.permute.xlu1 %2269 }
 0x4c3   : > { %9001 = vst [vmem:[#allocation24_spill] sm:$0xff] %v6514_v43  ;;  %1859 = vrot.lane.b32.xlu0 %v6477_v3, %s4542_s24 }
 0x4c4   : > { %1955 = vrot.lane.b32.xlu1 %v6488_v52, %s4544_s23 }
 0x4c5   : > { %v6520_v63 = vpop.permute.xlu0 %1767 }
 0x4c6   : > { %9002 = vst [vmem:[#allocation62_spill] sm:$0xff] %v6520_v63  ;;  %v1772_v31 = vpop.permute.xlu1 %1771 }
 0x4c7   : > { %1871 = vrot.lane.b32.xlu0 %v6488_v52, %s4542_s24 }
 0x4c8   : > { %2027 = vrot.lane.b32.xlu1 %v6477_v3, %s4545_s28 }
 0x4c9   : > { %v6526_v21 = vpop.permute.xlu0 %1779 }
 0x4ca   : > { %9003 = vst [vmem:[#allocation84_spill] sm:$0xff] %v6526_v21  ;;  %v1784_v12 = vpop.permute.xlu1 %1783 }
 0x4cb   : > { %2402 = vperm.xlu0 %4272, %v6144_v37  }
 0x4cc   : > { %2039 = vrot.lane.b32.xlu1 %v6488_v52, %s4545_s28 }
 0x4cd   : > { %v6531_v59 = vpop.permute.xlu0 %1851 }
 0x4ce   : > { %9004 = vst [vmem:[#allocation60_spill] sm:$0xff] %v6531_v59  ;;  %v6533_v9 = vpop.permute.xlu1 %2275 }
 0x4cf   : > { %9005 = vst [vmem:[#allocation78_spill] sm:$0xff] %v6533_v9  ;;  %2359 = vrot.lane.b32.xlu0 %v6238_v4, %s4549_s17 }
 0x4d0   : > { %2111 = vrot.lane.b32.xlu1 %v6477_v3, %s4546_s30  ;;  %4274 = vset.pattern.permute.xlu0 %v8980_v44 }
 0x4d1   : > { %v6539_v63 = vpop.permute.xlu0 %1863 }
 0x4d2   : > { %9006 = vst [vmem:[#allocation67_spill] sm:$0xff] %v6539_v63  ;;  %v6542_v21 = vpop.permute.xlu1 %2287 }
 0x4d3   : > { %9007 = vst [vmem:[#allocation102_spill] sm:$0xff] %v6542_v21  ;;  %2371 = vrot.lane.b32.xlu0 %v6244_v32, %s4549_s17 }
 0x4d4   : > { %2123 = vrot.lane.b32.xlu1 %v6488_v52, %s4546_s30 }
 0x4d5   : > { %v6548_v37 = vpop.permute.xlu0 %2355 }
 0x4d6   : > { %9008 = vst [vmem:[#allocation92_spill] sm:$0xff] %v6548_v37  ;;  %v6550_v59 = vpop.permute.xlu1 %1935 }
 0x4d7   : > { %9009 = vst [vmem:[#allocation22_spill] sm:$0xff] %v6550_v59  ;;  %2442 = vperm.xlu0 %4274, %v6582_v10  }
 0x4d8   : > { %2195 = vrot.lane.b32.xlu1 %v6477_v3, %s4547_s6 }
 0x4d9   : > { %v6554_v51 = vpop.permute.xlu0 %2367 }
 0x4da   : > { %9010 = vst [vmem:[#allocation23_spill] sm:$0xff] %v6554_v51  ;;  %v6556_v63 = vpop.permute.xlu1 %1947 }
 0x4db   : > { %9011 = vst [vmem:[#allocation26_spill] sm:$0xff] %v6556_v63 }
 0x4dc   : > { %2207 = vrot.lane.b32.xlu1 %v6488_v52, %s4547_s6 }
 0x4dd   : > { %v6560_v44 = vpop.permute.xlu0 %1941 }
 0x4de   : > { %9012 = vst [vmem:[#allocation30_spill] sm:$0xff] %v6560_v44  ;;  %v6562_v2 = vpop.permute.xlu1 %2019 }
 0x4df   : > { %9013 = vst [vmem:[#allocation34_spill] sm:$0xff] %v6562_v2 }
 0x4e0   : > { %2279 = vrot.lane.b32.xlu1 %v6477_v3, %s4548_s14 }
 0x4e1   : > { %v6566_v37 = vpop.permute.xlu0 %1953 }
 0x4e2   : > { %9014 = vst [vmem:[#allocation36_spill] sm:$0xff] %v6566_v37  ;;  %v6568_v59 = vpop.permute.xlu1 %2031 }
 0x4e3   : > { %9015 = vst [vmem:[#allocation20_spill] sm:$0xff] %v6568_v59 }
 0x4e4   : > { %2291 = vrot.lane.b32.xlu1 %v6488_v52, %s4548_s14 }
 0x4e5   : > { %v6572_v51 = vpop.permute.xlu0 %2025 }
 0x4e6   : > { %9016 = vst [vmem:[#allocation46_spill] sm:$0xff] %v6572_v51  ;;  %v6574_v63 = vpop.permute.xlu1 %2103 }
 0x4e7   : > { %9017 = vst [vmem:[#allocation45_spill] sm:$0xff] %v6574_v63  ;;  %v9023_v63 = vmov 21  }
 0x4e8   : > { %2363 = vrot.lane.b32.xlu1 %v6477_v3, %s4549_s17  ;;  %4276 = vset.pattern.permute.xlu0 %v9023_v63 }
 0x4e9   : > { %v6578_v44 = vpop.permute.xlu0 %2037 }
 0x4ea   : > { %9018 = vst [vmem:[#allocation43_spill] sm:$0xff] %v6578_v44  ;;  %v6580_v2 = vpop.permute.xlu1 %2115 }
 0x4eb   : > { %9019 = vst [vmem:[#allocation74_spill] sm:$0xff] %v6580_v2  ;;  %v6598_v2 = vld [vmem:[#allocation8 + $0x18] sm:$0xf] }
 0x4ec   : > { %2375 = vrot.lane.b32.xlu1 %v6488_v52, %s4549_s17  ;;  %9026 = vst [vmem:[#allocation25_spill] sm:$0xff] %v6598_v2 }
 0x4ed   : > { %v6587_v59 = vpop.permute.xlu0 %2109 }
 0x4ee   : > { %9021 = vst [vmem:[#allocation55_spill] sm:$0xff] %v6587_v59  ;;  %v6589_v37 = vpop.permute.xlu1 %2187 }
 0x4ef   : > { %9022 = vst [vmem:[#allocation49_spill] sm:$0xff] %v6589_v37 }
 0x4f0   : > { %2365 = vrot.lane.b32.xlu1 %v6226_v61, %s4549_s17 }
 0x4f1   : > { %v6594_v51 = vpop.permute.xlu0 %2121 }
 0x4f2   : > { %9024 = vst [vmem:[#allocation50_spill] sm:$0xff] %v6594_v51  ;;  %v6596_v44 = vpop.permute.xlu1 %2199 }
 0x4f3   : > { %9025 = vst [vmem:[#allocation47_spill] sm:$0xff] %v6596_v44 }
 0x4f4   : > { %2447 = vperm.xlu1 %4273, %v6598_v2   ;;  %v1792_v2 = vsel %vm567_vm3, %v1772_v31, %v6415_v47 }
 0x4f5   : > { %v6601_v43 = vpop.permute.xlu0 %2193 }
 0x4f6   : > { %9027 = vst [vmem:[#allocation27_spill] sm:$0xff] %v6601_v43  ;;  %v6603_v10 = vpop.permute.xlu1 %2271 }
 0x4f7   : > { %9028 = vst [vmem:[#allocation52_spill] sm:$0xff] %v6603_v10 }
 0x4f8   : > { %4275 = vset.pattern.permute.xlu1 %v9023_v63  ;;  %v1795_v63 = vsel %vm567_vm3, %v6417_v28, %v1772_v31  ;;  %v1753_v31 = vmul.f32 %v6288_v40, %v6228_v41 }
 0x4f9   : > { %v6606_v37 = vpop.permute.xlu0 %2205 }
 0x4fa   : > { %9029 = vst [vmem:[#allocation71_spill] sm:$0xff] %v6606_v37  ;;  %v6608_v59 = vpop.permute.xlu1 %2283  ;;  %v1789_v37 = vsel %vm567_vm3, %v6415_v47, %v1784_v12  ;;  %v1882_v47 = vsel %vm668_vm4, %v6442_v16, %v6428_v60 }
 0x4fb   : > { %9030 = vst [vmem:[#allocation44_spill] sm:$0xff] %v6608_v59  ;;  %v1798_v59 = vsel %vm567_vm3, %v1784_v12, %v6417_v28  ;;  %v1756_v28 = vmul.f32 %v6288_v40, %v6244_v32  ;;  %v1754_v12 = vmul.f32 %v6288_v40, %v6238_v4  ;;  %v6659_v32 = vmul.f32 %v6302_v48, %v6292_v53 }
 0x4fc   : > { %v1804_v34 = vmul.f32 %v1789_v37, %v9041_v5  ;;  %v6671_v4 = vmul.f32 %v6302_v48, %v6336_v22  ;;  %v9046_v37 = vld [vmem:[#allocation100_spill] sm:$0xff] }
 0x4fd   : > { %v6610_v21 = vpop.permute.xlu0 %2277  ;;  %v1885_v22 = vmul.f32 %v1882_v47, %v9046_v37  ;;  %v1960_v47 = vsel %vm769_vm2, %v6450_v11, %v6452_v25 }
 0x4fe   : > { %9031 = vst [vmem:[#allocation72_spill] sm:$0xff] %v6610_v21  ;;  %v6612_v9 = vpop.permute.xlu1 %1773  ;;  %v1755_v21 = vmul.f32 %v6288_v40, %v6226_v61  ;;  %v1876_v61 = vsel %vm668_vm4, %v6434_v57, %v6436_v20  ;;  %v9044_v40 = vld [vmem:[#allocation98_spill] sm:$0xff] }
 0x4ff   : > { %9032 = vst [vmem:[#allocation53_spill] sm:$0xff] %v6612_v9  ;;  %v9039_v9 = vld [vmem:[#allocation95_spill] sm:$0xff]  ;;  %v1887_v53 = vmul.f32 %v1876_v61, %v9044_v40 }
 0x500   : > { %v1801_v26 = vmul.f32 %v1798_v59, %v9039_v9  ;;  %v6675_v59 = vmul.f32 %v6302_v48, %v6346_v45 }
 0x501   : > { %v6614_v51 = vpop.permute.xlu0 %2289 }
 0x502   : > { %9033 = vst [vmem:[#allocation73_spill] sm:$0xff] %v6614_v51  ;;  %v6616_v44 = vpop.permute.xlu1 %1785  ;;  %v1879_v51 = vsel %vm668_vm4, %v6428_v60, %v6434_v57  ;;  %v6663_v57 = vmul.f32 %v6302_v48, %v6300_v23  ;;  %9043 = vst [vmem:[#allocation109_spill] sm:$0xff] %v6675_v59  ;;  %v6682_v23 = vmul.f32 %v6264_v24, %v6409_v13 }
 0x503   : > { %9034 = vst [vmem:[#allocation32_spill] sm:$0xff] %v6616_v44  ;;  %v1963_v48 = vsel %vm769_vm2, %v6444_v36, %v6450_v11  ;;  %v6698_v13 = vmul.f32 %v6264_v24, %v6424_v62  ;;  %v9051_v62 = vld [vmem:[#allocation101_spill] sm:$0xff] }
 0x504   : > { %9045 = vst [vmem:[#allocation29_spill] sm:$0xff] %v6682_v23 }
 0x505   : > { %v6627_v10 = vpop.permute.xlu0 %1781  ;;  %9047 = vst [vmem:[#allocation33_spill] sm:$0xff] %v6698_v13 }
 0x506   : > { %9035 = vst [vmem:[#allocation42_spill] sm:$0xff] %v6627_v10  ;;  %v6638_v43 = vpop.permute.xlu1 %1857  ;;  %v9037_v10 = vld [vmem:[#allocation91_spill] sm:$0xff] }
 0x507   : > { %9036 = vst [vmem:[#allocation106_spill] sm:$0xff] %v6638_v43  ;;  %v1803_v44 = vmul.f32 %v1792_v2, %v9037_v10  ;;  %v9038_v43 = vld [vmem:[#allocation90_spill] sm:$0xff]  ;;  %v9040_v2 = vld [vmem:[#allocation97_spill] sm:$0xff] }
 0x508   : > { %v1802_v41 = vmul.f32 %v1795_v63, %v9038_v43  ;;  %v1886_v10 = vmul.f32 %v1879_v51, %v9040_v2  ;;  %v1873_v51 = vsel %vm668_vm4, %v6436_v20, %v6442_v16  ;;  %v6702_v20 = vmul.f32 %v6264_v24, %v6488_v52 }
 0x509   : > { %v6667_v60 = vpop.permute.xlu0 %1949  ;;  %v1827_v45 = vmul.f32 %v6318_v30, %v1803_v44  ;;  %v1828_v44 = vmul.f32 %v6318_v30, %v1804_v34  ;;  %v1888_v13 = vmul.f32 %v1873_v51, %v9051_v62  ;;  %v1970_v52 = vmul.f32 %v1963_v48, %v8884_v1  ;;  %v9053_v48 = vld [vmem:[#allocation66_spill] sm:$0xff] }
 0x50a   : > { %9042 = vst [vmem:[#allocation117_spill] sm:$0xff] %v6667_v60  ;;  %v6678_v63 = vpop.permute.xlu1 %1869  ;;  %v1826_v61 = vmul.f32 %v6318_v30, %v1802_v41  ;;  %v1825_v60 = vmul.f32 %v6318_v30, %v1801_v26  ;;  %9048 = vst [vmem:[#allocation31_spill] sm:$0xff] %v6702_v20  ;;  %v1910_v16 = vmul.f32 %v6328_v29, %v1886_v10 }
 0x50b   : > { %v6714_v26 = vmul.f32 %v6264_v24, %v6477_v3  ;;  %v1957_v10 = vsel %vm769_vm2, %v6452_v25, %v6458_v54  ;;  %v1966_v30 = vsel %vm769_vm2, %v6458_v54, %v6444_v36  ;;  %v1911_v34 = vmul.f32 %v6328_v29, %v1887_v53 }
 0x50c   : > { %v1909_v3 = vmul.f32 %v6328_v29, %v1885_v22  ;;  %v2047_v24 = vsel %vm870_vm5, %v6460_v33, %v6466_v6  ;;  %v1839_v51 = vadd.f32 %v1827_v45, %v1755_v21  ;;  %v1971_v20 = vmul.f32 %v1960_v47, %v9053_v48 }
 0x50d   : > { %v6710_v41 = vpop.permute.xlu0 %2021  ;;  %9050 = vst [vmem:[#allocation111_spill] sm:$0xff] %v6714_v26  ;;  %v2044_v25 = vsel %vm870_vm5, %v6466_v6, %v6468_v15  ;;  %v1838_v54 = vadd.f32 %v1826_v61, %v1754_v12  ;;  %v1837_v36 = vadd.f32 %v1825_v60, %v1753_v31  ;;  %v1972_v53 = vmul.f32 %v1957_v10, %v8912_v50  ;;  %v9058_v60 = vld [vmem:[#allocation77_spill] sm:$0xff] }
 0x50e   : > { %9049 = vst [vmem:[#allocation39_spill] sm:$0xff] %v6710_v41  ;;  %v6726_v11 = vpop.permute.xlu1 %2361  ;;  %v9054_v41 = vld [vmem:[#allocation68_spill] sm:$0xff]  ;;  %v2050_v22 = vsel %vm870_vm5, %v6474_v0, %v6460_v33  ;;  %v1840_v26 = vadd.f32 %v1828_v44, %v1756_v28  ;;  %v1912_v45 = vmul.f32 %v6328_v29, %v1888_v13  ;;  %v1994_v47 = vmul.f32 %v6322_v19, %v1970_v52  ;;  %v9059_v44 = vld [vmem:[#allocation82_spill] sm:$0xff] }
 0x50f   : > { %9052 = vst [vmem:[#allocation28_spill] sm:$0xff] %v6726_v11  ;;  %v1969_v23 = vmul.f32 %v1966_v30, %v9054_v41  ;;  %v9056_v11 = vld [vmem:[#allocation76_spill] sm:$0xff]  ;;  %v2041_v31 = vsel %vm870_vm5, %v6468_v15, %v6474_v0  ;;  %v2055_v61 = vmul.f32 %v2044_v25, %v9058_v60  ;;  %v2131_v33 = vsel %vm971_vm6, %v6479_v14, %v6485_v18 }
 0x510   : > { %v2054_v6 = vmul.f32 %v2047_v24, %v9056_v11  ;;  %v2128_v29 = vsel %vm971_vm6, %v6485_v18, %v6490_v39  ;;  %v1923_v28 = vadd.f32 %v1911_v34, %v1839_v51  ;;  %v1995_v13 = vmul.f32 %v6322_v19, %v1971_v20 }
 0x511   : > { %v6745_v21 = vpop.permute.xlu0 %2033  ;;  %v2053_v52 = vmul.f32 %v2050_v22, %v9059_v44  ;;  %v1922_v0 = vadd.f32 %v1910_v16, %v1838_v54  ;;  %v1921_v15 = vadd.f32 %v1909_v3, %v1837_v36  ;;  %v1993_v10 = vmul.f32 %v6322_v19, %v1969_v23 }
 0x512   : > { %9055 = vst [vmem:[#allocation38_spill] sm:$0xff] %v6745_v21  ;;  %v6754_v12 = vpop.permute.xlu1 %2373  ;;  %v1996_v30 = vmul.f32 %v6322_v19, %v1972_v53  ;;  %v2056_v24 = vmul.f32 %v2041_v31, %v8863_v42  ;;  %v1924_v25 = vadd.f32 %v1912_v45, %v1840_v26  ;;  %v2138_v18 = vmul.f32 %v2128_v29, %v5328_v58 }
 0x513   : > { %9057 = vst [vmem:[#allocation40_spill] sm:$0xff] %v6754_v12  ;;  %v9061_v12 = vld [vmem:[#allocation85_spill] sm:$0xff]  ;;  %v2125_v20 = vsel %vm971_vm6, %v6490_v39, %v6496_v55  ;;  %v2134_v23 = vsel %vm971_vm6, %v6496_v55, %v6479_v14  ;;  %v2078_v16 = vmul.f32 %v6344_v27, %v2054_v6  ;;  %v2079_v26 = vmul.f32 %v6344_v27, %v2055_v61 }
 0x514   : > { %v2137_v59 = vmul.f32 %v2131_v33, %v9061_v12  ;;  %v2215_v34 = vsel %vm1072_vm7, %v6498_v35, %v6504_v8  ;;  %v2007_v3 = vadd.f32 %v1995_v13, %v1923_v28  ;;  %v2077_v51 = vmul.f32 %v6344_v27, %v2053_v52  ;;  %v9064_v33 = vld [vmem:[#allocation19_spill] sm:$0xff]  ;;  %v9067_v13 = vld [vmem:[#allocation80_spill] sm:$0xff] }
 0x515   : > { %v6770_v21 = vpop.permute.xlu0 %2105  ;;  %v2212_v39 = vsel %vm1072_vm7, %v6504_v8, %v6506_v38  ;;  %v2006_v14 = vadd.f32 %v1994_v47, %v1922_v0  ;;  %v2005_v55 = vadd.f32 %v1993_v10, %v1921_v15  ;;  %v2080_v54 = vmul.f32 %v6344_v27, %v2056_v24  ;;  %v9066_v27 = vld [vmem:[#allocation94_spill] sm:$0xff] }
 0x516   : > { %9060 = vst [vmem:[#allocation16_spill] sm:$0xff] %v6770_v21  ;;  %v6782_v19 = vpop.permute.xlu1 %1769  ;;  %v2139_v36 = vmul.f32 %v2125_v20, %v5331_v46  ;;  %v2140_v53 = vmul.f32 %v2134_v23, %v5334_v49  ;;  %v2008_v22 = vadd.f32 %v1996_v30, %v1924_v25  ;;  %v2161_v6 = vmul.f32 %v6366_v17, %v2137_v59  ;;  %v9068_v59 = vld [vmem:[#allocation78_spill] sm:$0xff]  ;;  %v9070_v30 = vld [vmem:[#allocation24_spill] sm:$0xff]  ;;  %v9071_v20 = vld [vmem:[#allocation103_spill] sm:$0xff] }
 0x517   : > { %9062 = vst [vmem:[#allocation64_spill] sm:$0xff] %v6782_v19  ;;  %v2162_v31 = vmul.f32 %v6366_v17, %v2138_v18  ;;  %v2221_v61 = vmul.f32 %v2215_v34, %v8834_v7  ;;  %v2209_v8 = vsel %vm1072_vm7, %v6506_v38, %v9064_v33  ;;  %v2222_v29 = vmul.f32 %v2212_v39, %v9066_v27  ;;  %v9069_v10 = vld [vmem:[#allocation102_spill] sm:$0xff] }
 0x518   : > { %v2218_v28 = vsel %vm1072_vm7, %v9064_v33, %v6498_v35  ;;  %v2296_v52 = vsel %vm1173_vm8, %v9068_v59, %v9067_v13  ;;  %v2091_v0 = vadd.f32 %v2079_v26, %v2007_v3  ;;  %v2089_v15 = vadd.f32 %v2077_v51, %v2005_v55  ;;  %v9073_v3 = vld [vmem:[#allocation104_spill] sm:$0xff]  ;;  %v9074_v39 = vld [vmem:[#allocation110_spill] sm:$0xff] }
 0x519   : > { %v6798_v45 = vpop.permute.xlu0 %2117  ;;  %v2293_v38 = vsel %vm1173_vm8, %v9067_v13, %v9069_v10  ;;  %v2302_v24 = vsel %vm1173_vm8, %v9069_v10, %v9070_v30  ;;  %v2090_v25 = vadd.f32 %v2078_v16, %v2006_v14  ;;  %v2163_v35 = vmul.f32 %v6366_v17, %v2139_v36  ;;  %v9075_v33 = vld [vmem:[#allocation26_spill] sm:$0xff] }
 0x51a   : > { %9063 = vst [vmem:[#allocation114_spill] sm:$0xff] %v6798_v45  ;;  %v6807_v47 = vpop.permute.xlu1 %1853  ;;  %v2164_v18 = vmul.f32 %v6366_v17, %v2140_v53  ;;  %v2223_v23 = vmul.f32 %v2209_v8, %v9071_v20  ;;  %v2092_v26 = vadd.f32 %v2080_v54, %v2008_v22  ;;  %v2224_v51 = vmul.f32 %v2218_v28, %v9073_v3  ;;  %v9076_v13 = vld [vmem:[#allocation30_spill] sm:$0xff]  ;;  %v9079_v53 = vld [vmem:[#allocation112_spill] sm:$0xff]  ;;  %v9080_v8 = vld [vmem:[#allocation113_spill] sm:$0xff] }
 0x51b   : > { %9065 = vst [vmem:[#allocation41_spill] sm:$0xff] %v6807_v47  ;;  %v2306_v55 = vmul.f32 %v2296_v52, %v9074_v39  ;;  %v1961_v45 = vsel %vm769_vm2, %v9076_v13, %v9075_v33  ;;  %v9077_v16 = vld [vmem:[#allocation22_spill] sm:$0xff]  ;;  %v2299_v54 = vsel %vm1173_vm8, %v9070_v30, %v9068_v59  ;;  %v2175_v36 = vadd.f32 %v2163_v35, %v2091_v0 }
 0x51c   : > { %v1964_v14 = vsel %vm769_vm2, %v9077_v16, %v9076_v13  ;;  %v2307_v22 = vmul.f32 %v2293_v38, %v9079_v53  ;;  %v2308_v28 = vmul.f32 %v2302_v24, %v9080_v8  ;;  %v9081_v52 = vld [vmem:[#allocation58_spill] sm:$0xff]  ;;  %v2173_v21 = vadd.f32 %v2161_v6, %v2089_v15  ;;  %v9083_v38 = vld [vmem:[#allocation108_spill] sm:$0xff]  ;;  %v9085_v24 = vld [vmem:[#allocation81_spill] sm:$0xff] }
 0x51d   : > { %v6829_v34 = vpop.permute.xlu0 %2189  ;;  %v2245_v10 = vmul.f32 %v9081_v52, %v2221_v61  ;;  %v2174_v47 = vadd.f32 %v2162_v31, %v2090_v25  ;;  %v2247_v13 = vmul.f32 %v9081_v52, %v2223_v23  ;;  %v1975_v19 = vmul.f32 %v1961_v45, %v9053_v48  ;;  %v9087_v6 = vld [vmem:[#allocation36_spill] sm:$0xff]  ;;  %v9092_v23 = vld [vmem:[#allocation46_spill] sm:$0xff] }
 0x51e   : > { %9072 = vst [vmem:[#allocation69_spill] sm:$0xff] %v6829_v34  ;;  %v6841_v17 = vpop.permute.xlu1 %1865  ;;  %v2246_v34 = vmul.f32 %v9081_v52, %v2222_v29  ;;  %v2176_v59 = vadd.f32 %v2164_v18, %v2092_v26  ;;  %v2248_v0 = vmul.f32 %v9081_v52, %v2224_v51  ;;  %v6858_v30 = vmul.f32 %v2299_v54, %v9083_v38  ;;  %v9093_v26 = vld [vmem:[#allocation34_spill] sm:$0xff] }
 0x51f   : > { %9078 = vst [vmem:[#allocation19_spill] sm:$0xff] %v6841_v17  ;;  %v1974_v17 = vmul.f32 %v1964_v14, %v8884_v1  ;;  %v6861_v61 = vmul.f32 %v9085_v24, %v2306_v55  ;;  %v1967_v31 = vsel %vm769_vm2, %v9087_v6, %v9077_v16  ;;  %v6869_v15 = vadd.f32 %v2247_v13, %v2175_v36  ;;  %v9094_v55 = vld [vmem:[#allocation53_spill] sm:$0xff]  ;;  %v9095_v16 = vld [vmem:[#allocation62_spill] sm:$0xff]  ;;  %v9097_v36 = vld [vmem:[#allocation56_spill] sm:$0xff] }
 0x520   : > { %9084 = vst [vmem:[#allocation78_spill] sm:$0xff] %v6858_v30  ;;  %v6872_v45 = vmul.f32 %v9085_v24, %v2307_v22  ;;  %v6875_v25 = vmul.f32 %v9085_v24, %v2308_v28  ;;  %v1958_v35 = vsel %vm769_vm2, %v9075_v33, %v9087_v6  ;;  %v6881_v18 = vadd.f32 %v2245_v10, %v2173_v21  ;;  %v9100_v13 = vld [vmem:[#allocation84_spill] sm:$0xff] }
 0x521   : > { %v6854_v39 = vpop.permute.xlu0 %2201  ;;  %9086 = vst [vmem:[#allocation102_spill] sm:$0xff] %v6861_v61  ;;  %9088 = vst [vmem:[#allocation24_spill] sm:$0xff] %v6869_v15  ;;  %v2048_v51 = vsel %vm870_vm5, %v9093_v26, %v9092_v23  ;;  %v1796_v14 = vsel %vm567_vm3, %v9095_v16, %v9094_v55  ;;  %v6891_v54 = vadd.f32 %v2246_v34, %v2174_v47  ;;  %v9101_v34 = vld [vmem:[#allocation32_spill] sm:$0xff]  ;;  %v9106_v61 = vld [vmem:[#allocation55_spill] sm:$0xff] }
 0x522   : > { %9082 = vst [vmem:[#allocation80_spill] sm:$0xff] %v6854_v39  ;;  %v6867_v29 = vpop.permute.xlu1 %1937  ;;  %9089 = vst [vmem:[#allocation26_spill] sm:$0xff] %v6872_v45  ;;  %v6894_v22 = vmul.f32 %v9097_v36, %v1974_v17  ;;  %v6897_v28 = vmul.f32 %v9097_v36, %v1975_v19  ;;  %v1973_v21 = vmul.f32 %v1967_v31, %v9054_v41  ;;  %v9102_v19 = vld [vmem:[#allocation106_spill] sm:$0xff]  ;;  %v9103_v6 = vld [vmem:[#allocation60_spill] sm:$0xff] }
 0x523   : > { %9090 = vst [vmem:[#allocation30_spill] sm:$0xff] %v6875_v25  ;;  %9091 = vst [vmem:[#allocation22_spill] sm:$0xff] %v6881_v18  ;;  %v6902_v52 = vadd.f32 %v2248_v0, %v2176_v59  ;;  %v1976_v10 = vmul.f32 %v1958_v35, %v8912_v50  ;;  %v1793_v47 = vsel %vm567_vm3, %v9094_v55, %v9100_v13  ;;  %v9104_v59 = vld [vmem:[#allocation20_spill] sm:$0xff]  ;;  %v9105_v55 = vld [vmem:[#allocation43_spill] sm:$0xff] }
 0x524   : > { %9096 = vst [vmem:[#allocation58_spill] sm:$0xff] %v6891_v54  ;;  %v1799_v17 = vsel %vm567_vm3, %v9101_v34, %v9095_v16  ;;  %v1880_v31 = vsel %vm668_vm4, %v9103_v6, %v9102_v19  ;;  %v2045_v0 = vsel %vm870_vm5, %v9092_v23, %v9104_v59  ;;  %v2058_v35 = vmul.f32 %v2048_v51, %v9056_v11  ;;  %v9107_v54 = vld [vmem:[#allocation45_spill] sm:$0xff]  ;;  %v9108_v23 = vld [vmem:[#allocation67_spill] sm:$0xff] }
 0x525   : > { %v6900_v33 = vpop.permute.xlu0 %2273  ;;  %9099 = vst [vmem:[#allocation36_spill] sm:$0xff] %v6902_v52  ;;  %v2051_v25 = vsel %vm870_vm5, %v9105_v55, %v9093_v26  ;;  %v1806_v16 = vmul.f32 %v1796_v14, %v9038_v43  ;;  %v2042_v52 = vsel %vm870_vm5, %v9104_v59, %v9105_v55  ;;  %v2132_v45 = vsel %vm971_vm6, %v9107_v54, %v9106_v61  ;;  %v9109_v14 = vld [vmem:[#allocation91_spill] sm:$0xff]  ;;  %v9114_v50 = vld [vmem:[#allocation61_spill] sm:$0xff] }
 0x526   : > { %9098 = vst [vmem:[#allocation108_spill] sm:$0xff] %v6900_v33  ;;  %v6917_v18 = vpop.permute.xlu1 %1775  ;;  %v1877_v51 = vsel %vm668_vm4, %v9102_v19, %v9108_v23  ;;  %v1883_v26 = vsel %vm668_vm4, %v6678_v63, %v9103_v6  ;;  %v1807_v15 = vmul.f32 %v1793_v47, %v9109_v14  ;;  %v1790_v59 = vsel %vm567_vm3, %v9100_v13, %v9101_v34  ;;  %v9111_v6 = vld [vmem:[#allocation74_spill] sm:$0xff]  ;;  %v9112_v13 = vld [vmem:[#allocation57_spill] sm:$0xff] }
 0x527   : > { %v1805_v55 = vmul.f32 %v1799_v17, %v9039_v9  ;;  %v1890_v24 = vmul.f32 %v1880_v31, %v9040_v2  ;;  %v1997_v19 = vmul.f32 %v9097_v36, %v1973_v21  ;;  %v2059_v33 = vmul.f32 %v2045_v0, %v9058_v60 }
 0x528   : > { %v2057_v39 = vmul.f32 %v2051_v25, %v9059_v44  ;;  %v2129_v47 = vsel %vm971_vm6, %v9106_v61, %v9111_v6  ;;  %v1830_v34 = vmul.f32 %v9112_v13, %v1806_v16  ;;  %v1891_v17 = vmul.f32 %v1877_v51, %v9044_v40  ;;  %v9113_v44 = vld [vmem:[#allocation63_spill] sm:$0xff] }
 0x529   : > { %v6952_v30 = vpop.permute.xlu0 %2285  ;;  %v1874_v21 = vsel %vm668_vm4, %v9108_v23, %v6678_v63  ;;  %v1889_v31 = vmul.f32 %v1883_v26, %v9046_v37  ;;  %v6971_v25 = vmul.f32 %v9097_v36, %v1976_v10  ;;  %v2060_v0 = vmul.f32 %v2042_v52, %v8863_v42  ;;  %v9117_v26 = vld [vmem:[#allocation50_spill] sm:$0xff] }
 0x52a   : > { %9110 = vst [vmem:[#allocation46_spill] sm:$0xff] %v6952_v30  ;;  %v6961_v11 = vpop.permute.xlu1 %1787  ;;  %v2141_v61 = vmul.f32 %v2132_v45, %v9061_v12  ;;  %v1808_v30 = vmul.f32 %v1790_v59, %v9041_v5  ;;  %v2082_v16 = vmul.f32 %v9113_v44, %v2058_v35  ;;  %v1831_v51 = vmul.f32 %v9112_v13, %v1807_v15 }
 0x52b   : > { %v1829_v60 = vmul.f32 %v9112_v13, %v1805_v55  ;;  %v1914_v41 = vmul.f32 %v9114_v50, %v1890_v24  ;;  %v2083_v23 = vmul.f32 %v9113_v44, %v2059_v33  ;;  %v2081_v36 = vmul.f32 %v9113_v44, %v2057_v39  ;;  %v9118_v39 = vld [vmem:[#allocation17_spill] sm:$0xff] }
 0x52c   : > { %v2142_v52 = vmul.f32 %v2129_v47, %v5328_v58  ;;  %v1892_v45 = vmul.f32 %v1874_v21, %v9051_v62  ;;  %v2126_v15 = vsel %vm971_vm6, %v9111_v6, %v9117_v26  ;;  %v1842_v35 = vadd.f32 %v1830_v34, %v6671_v4  ;;  %v9119_v6 = vld [vmem:[#allocation27_spill] sm:$0xff] }
 0x52d   : > { %v6980_v63 = vpop.permute.xlu0 %2357  ;;  %v1915_v24 = vmul.f32 %v9114_v50, %v1891_v17  ;;  %v1913_v59 = vmul.f32 %v9114_v50, %v1889_v31  ;;  %v6996_v33 = vmul.f32 %v9113_v44, %v2060_v0  ;;  %v6999_v55 = vmul.f32 %v9118_v39, %v2141_v61  ;;  %v9121_v61 = vld [vmem:[#allocation47_spill] sm:$0xff] }
 0x52e   : > { %9115 = vst [vmem:[#allocation34_spill] sm:$0xff] %v6980_v63  ;;  %v6986_v10 = vpop.permute.xlu1 %2353  ;;  %v2135_v47 = vsel %vm971_vm6, %v9117_v26, %v9107_v54  ;;  %v1832_v21 = vmul.f32 %v9112_v13, %v1808_v30  ;;  %v9120_v63 = vld [vmem:[#allocation49_spill] sm:$0xff]  ;;  %v1843_v34 = vadd.f32 %v1831_v51, %v6663_v57  ;;  %v1841_v44 = vadd.f32 %v1829_v60, %v6659_v32  ;;  %v9122_v26 = vld [vmem:[#allocation71_spill] sm:$0xff] }
 0x52f   : > { %9116 = vst [vmem:[#allocation53_spill] sm:$0xff] %v6986_v10  ;;  %v2216_v4 = vsel %vm1072_vm7, %v9120_v63, %v9119_v6  ;;  %v1926_v17 = vadd.f32 %v1914_v41, %v1842_v35  ;;  %v2166_v31 = vmul.f32 %v9118_v39, %v2142_v52  ;;  %v2143_v0 = vmul.f32 %v2126_v15, %v5331_v46  ;;  %v9125_v15 = vld [vmem:[#allocation52_spill] sm:$0xff] }
 0x530   : > { %v2213_v54 = vsel %vm1072_vm7, %v9119_v6, %v9121_v61  ;;  %v1916_v30 = vmul.f32 %v9114_v50, %v1892_v45  ;;  %v2210_v57 = vsel %vm1072_vm7, %v9121_v61, %v9122_v26  ;;  %v2219_v32 = vsel %vm1072_vm7, %v9122_v26, %v9120_v63  ;;  %v9124_v45 = vld [vmem:[#allocation72_spill] sm:$0xff]  ;;  %v9126_v6 = vld [vmem:[#allocation109_spill] sm:$0xff] }
 0x531   : > { %v1927_v41 = vadd.f32 %v1915_v24, %v1843_v34  ;;  %v1925_v60 = vadd.f32 %v1913_v59, %v1841_v44  ;;  %v7029_v51 = vpop.permute.xlu0 %2369  ;;  %v2144_v52 = vmul.f32 %v2135_v47, %v5334_v49  ;;  %v2225_v50 = vmul.f32 %v2216_v4, %v8834_v7  ;;  %v9127_v46 = vld [vmem:[#allocation44_spill] sm:$0xff]  ;;  %v9128_v24 = vld [vmem:[#allocation73_spill] sm:$0xff] }
 0x532   : > { %v7019_v13 = vpop.permute.xlu1 %1943  ;;  %9123 = vst [vmem:[#allocation62_spill] sm:$0xff] %v7029_v51  ;;  %v2300_v35 = vsel %vm1173_vm8, %v9125_v15, %v9124_v45  ;;  %v1844_v61 = vadd.f32 %v1832_v21, %v9126_v6  ;;  %v2226_v10 = vmul.f32 %v2213_v54, %v9066_v27  ;;  %v2297_v63 = vsel %vm1173_vm8, %v9124_v45, %v9127_v46  ;;  %v9130_v51 = vld [vmem:[#allocation92_spill] sm:$0xff] }
 0x533   : > { %v2294_v59 = vsel %vm1173_vm8, %v9127_v46, %v9128_v24  ;;  %v2010_v47 = vadd.f32 %v6894_v22, %v1926_v17  ;;  %v2227_v4 = vmul.f32 %v2210_v57, %v9071_v20  ;;  %v2228_v34 = vmul.f32 %v2219_v32, %v9073_v3  ;;  %v9129_v46 = vld [vmem:[#allocation28_spill] sm:$0xff]  ;;  %v9131_v32 = vld [vmem:[#allocation110_spill] sm:$0xff] }
 0x534   : > { %v2303_v21 = vsel %vm1173_vm8, %v9128_v24, %v9125_v15  ;;  %v1928_v44 = vadd.f32 %v1916_v30, %v1844_v61  ;;  %v2309_v26 = vmul.f32 %v2300_v35, %v9083_v38  ;;  %v2011_v45 = vadd.f32 %v6897_v28, %v1927_v41  ;;  %v9132_v15 = vld [vmem:[#allocation89_spill] sm:$0xff]  ;;  %v9133_v24 = vld [vmem:[#allocation23_spill] sm:$0xff] }
 0x535   : > { %v2009_v6 = vadd.f32 %v1997_v19, %v1925_v60  ;;  %v2384_v22 = vsel %vm1274_vm9, %v9130_v51, %v9129_v46  ;;  %v2167_v17 = vmul.f32 %v9118_v39, %v2143_v0  ;;  %v2168_v57 = vmul.f32 %v9118_v39, %v2144_v52  ;;  %v1860_v19 = vpop.permute.xlu0 %1859  ;;  %v9134_v52 = vld [vmem:[#allocation115_spill] sm:$0xff] }
 0x536   : > { %v7054_v54 = vpop.permute.xlu1 %1955  ;;  %v2310_v3 = vmul.f32 %v2297_v63, %v9131_v32  ;;  %v2311_v30 = vmul.f32 %v2294_v59, %v9079_v53  ;;  %v2249_v61 = vmul.f32 %v9132_v15, %v2225_v50  ;;  %v2312_v35 = vmul.f32 %v2303_v21, %v9080_v8  ;;  %v9135_v21 = vld [vmem:[#allocation75_spill] sm:$0xff] }
 0x537   : > { %v2381_v28 = vsel %vm1274_vm9, %v9129_v46, %v9133_v24  ;;  %v2094_v41 = vadd.f32 %v2082_v16, %v2010_v47  ;;  %v2250_v60 = vmul.f32 %v9132_v15, %v2226_v10  ;;  %v2251_v0 = vmul.f32 %v9132_v15, %v2227_v4  ;;  %v9136_v10 = vld [vmem:[#allocation116_spill] sm:$0xff] }
 0x538   : > { %v2012_v39 = vadd.f32 %v6971_v25, %v1928_v44  ;;  %v2393_v63 = vmul.f32 %v2384_v22, %v9134_v52  ;;  %v2252_v50 = vmul.f32 %v9132_v15, %v2228_v34  ;;  %v2333_v8 = vmul.f32 %v9135_v21, %v2309_v26  ;;  %v9137_v4 = vld [vmem:[#allocation40_spill] sm:$0xff]  ;;  %v9138_v34 = vld [vmem:[#allocation42_spill] sm:$0xff] }
 0x539   : > { %v2095_v53 = vadd.f32 %v2083_v23, %v2011_v45  ;;  %v2093_v20 = vadd.f32 %v2081_v36, %v2009_v6  ;;  %v2334_v46 = vmul.f32 %v9135_v21, %v2310_v3  ;;  %v7082_v16 = vmul.f32 %v9135_v21, %v2311_v30  ;;  %v9139_v3 = vld [vmem:[#allocation64_spill] sm:$0xff]  ;;  %v9140_v45 = vld [vmem:[#allocation79_spill] sm:$0xff] }
 0x53a   : > { %v7076_v59 = vpop.permute.xlu1 %2027  ;;  %v2394_v47 = vmul.f32 %v2381_v28, %v9136_v10  ;;  %v2378_v25 = vsel %vm1274_vm9, %v9133_v24, %v9137_v4  ;;  %v7090_v44 = vmul.f32 %v9135_v21, %v2312_v35  ;;  %v1794_v23 = vsel %vm567_vm3, %v6917_v18, %v9138_v34  ;;  %v9142_v24 = vld [vmem:[#allocation35_spill] sm:$0xff] }
 0x53b   : > { %v1797_v36 = vsel %vm567_vm3, %v9139_v3, %v6917_v18  ;;  %v2178_v26 = vadd.f32 %v2166_v31, %v2094_v41  ;;  %v7101_v6 = vmul.f32 %v9140_v45, %v2393_v63  ;;  %v2387_v22 = vsel %vm1274_vm9, %v9137_v4, %v9130_v51  ;;  %v1872_v31 = vpop.permute.xlu0 %1871  ;;  %v9143_v4 = vld [vmem:[#allocation41_spill] sm:$0xff] }
 0x53c   : > { %v1800_v30 = vsel %vm567_vm3, %v6961_v11, %v9139_v3  ;;  %v2096_v35 = vadd.f32 %v6996_v33, %v2012_v39  ;;  %v2395_v28 = vmul.f32 %v2378_v25, %v9142_v24  ;;  %v1791_v18 = vsel %vm567_vm3, %v9138_v34, %v6961_v11  ;;  %v9144_v39 = vld [vmem:[#allocation51_spill] sm:$0xff] }
 0x53d   : > { %9141 = vst [vmem:[#allocation56_spill] sm:$0xff] %v7101_v6  ;;  %v2177_v41 = vadd.f32 %v6999_v55, %v2093_v20  ;;  %v2179_v63 = vadd.f32 %v2167_v17, %v2095_v53  ;;  %v1810_v51 = vmul.f32 %v1797_v36, %v9038_v43  ;;  %v1811_v21 = vmul.f32 %v1794_v23, %v9109_v14  ;;  %v9145_v11 = vld [vmem:[#allocation19_spill] sm:$0xff] }
 0x53e   : > { %v2040_v15 = vpop.permute.xlu1 %2039  ;;  %v1881_v3 = vsel %vm668_vm4, %v9143_v4, %v1860_v19  ;;  %v7124_v33 = vmul.f32 %v9140_v45, %v2394_v47  ;;  %v2396_v25 = vmul.f32 %v2387_v22, %v9144_v39  ;;  %v1809_v6 = vmul.f32 %v1800_v30, %v9039_v9 }
 0x53f   : > { %v1878_v20 = vsel %vm668_vm4, %v1860_v19, %v9145_v11  ;;  %v2262_v53 = vadd.f32 %v2250_v60, %v2178_v26  ;;  %v1812_v55 = vmul.f32 %v1791_v18, %v9041_v5  ;;  %v1875_v17 = vsel %vm668_vm4, %v9145_v11, %v1872_v31  ;;  %v9146_v60 = vld [vmem:[#allocation59_spill] sm:$0xff]  ;;  %v9158_v5 = vld [vmem:[#allocation76_spill] sm:$0xff] }
 0x540   : > { %v1884_v47 = vsel %vm668_vm4, %v1872_v31, %v9143_v4  ;;  %v2180_v23 = vadd.f32 %v2168_v57, %v2096_v35  ;;  %v7139_v36 = vmul.f32 %v9140_v45, %v2395_v28  ;;  %v1894_v22 = vmul.f32 %v1881_v3, %v9040_v2  ;;  %v9148_v3 = vld [vmem:[#allocation48_spill] sm:$0xff] }
 0x541   : > { %v2261_v30 = vadd.f32 %v2249_v61, %v2177_v41  ;;  %v7142_v19 = vadd.f32 %v2251_v0, %v2179_v63  ;;  %v1834_v26 = vmul.f32 %v9146_v60, %v1810_v51  ;;  %v1835_v18 = vmul.f32 %v9146_v60, %v1811_v21  ;;  %v9147_v41 = vld [vmem:[#allocation117_spill] sm:$0xff] }
 0x542   : > { %v2112_v34 = vpop.permute.xlu1 %2111  ;;  %v1965_v11 = vsel %vm769_vm2, %v6867_v29, %v7019_v13  ;;  %v1895_v31 = vmul.f32 %v1878_v20, %v9044_v40  ;;  %v1833_v57 = vmul.f32 %v9146_v60, %v1809_v6  ;;  %v1893_v35 = vmul.f32 %v1884_v47, %v9046_v37  ;;  %v9151_v47 = vld [vmem:[#allocation33_spill] sm:$0xff] }
 0x543   : > { %v1896_v28 = vmul.f32 %v1875_v17, %v9051_v62  ;;  %v7155_v61 = vmul.f32 %v9140_v45, %v2396_v25  ;;  %v1836_v0 = vmul.f32 %v9146_v60, %v1812_v55  ;;  %v1962_v63 = vsel %vm769_vm2, %v7019_v13, %v9147_v41  ;;  %v9149_v13 = vld [vmem:[#allocation111_spill] sm:$0xff] }
 0x544   : > { %v7162_v21 = vadd.f32 %v2334_v46, %v2262_v53  ;;  %v7164_v4 = vadd.f32 %v2252_v50, %v2180_v23  ;;  %v1978_v6 = vmul.f32 %v1965_v11, %v8884_v1  ;;  %v1918_v20 = vmul.f32 %v9148_v3, %v1894_v22  ;;  %v9150_v46 = vld [vmem:[#allocation29_spill] sm:$0xff]  ;;  %v9152_v11 = vld [vmem:[#allocation39_spill] sm:$0xff] }
 0x545   : > { %v1959_v45 = vsel %vm769_vm2, %v9147_v41, %v7054_v54  ;;  %v1968_v25 = vsel %vm769_vm2, %v7054_v54, %v6867_v29  ;;  %v1846_v55 = vadd.f32 %v1834_v26, %v9149_v13  ;;  %v1847_v53 = vadd.f32 %v1835_v18, %v9150_v46  ;;  %v9153_v54 = vld [vmem:[#allocation68_spill] sm:$0xff]  ;;  %v9154_v18 = vld [vmem:[#allocation70_spill] sm:$0xff] }
 0x546   : > { %v2124_v51 = vpop.permute.xlu1 %2123  ;;  %v1919_v50 = vmul.f32 %v9148_v3, %v1895_v31  ;;  %v7179_v17 = vadd.f32 %v2333_v8, %v2261_v30  ;;  %v1845_v23 = vadd.f32 %v1833_v57, %v9151_v47  ;;  %v1917_v22 = vmul.f32 %v9148_v3, %v1893_v35  ;;  %v9155_v31 = vld [vmem:[#allocation38_spill] sm:$0xff]  ;;  %v7195_v30 = vpop.permute.xlu0 %2402  ;;  %v9156_v35 = vld [vmem:[#allocation31_spill] sm:$0xff] }
 0x547   : > { %v1920_v60 = vmul.f32 %v9148_v3, %v1896_v28  ;;  %v2049_v41 = vsel %vm870_vm5, %v9152_v11, %v7076_v59  ;;  %v1979_v29 = vmul.f32 %v1962_v63, %v9053_v48  ;;  %v1977_v26 = vmul.f32 %v1968_v25, %v9153_v54  ;;  %v9157_v3 = vld [vmem:[#allocation21_spill] sm:$0xff] }
 0x548   : > { %v1980_v13 = vmul.f32 %v1959_v45, %v9154_v18  ;;  %v2046_v8 = vsel %vm870_vm5, %v7076_v59, %v9155_v31  ;;  %v1848_v28 = vadd.f32 %v1836_v0, %v9156_v35  ;;  %v2002_v46 = vmul.f32 %v9157_v3, %v1978_v6  ;;  %v9159_v59 = vld [vmem:[#allocation16_spill] sm:$0xff]  ;;  %v9160_v35 = vld [vmem:[#allocation77_spill] sm:$0xff] }
 0x549   : > { %v1930_v47 = vadd.f32 %v1918_v20, %v1846_v55  ;;  %v2052_v63 = vsel %vm870_vm5, %v2040_v15, %v9152_v11  ;;  %v1931_v25 = vadd.f32 %v1919_v50, %v1847_v53  ;;  %v2062_v45 = vmul.f32 %v2049_v41, %v9158_v5  ;;  %v9161_v20 = vld [vmem:[#allocation114_spill] sm:$0xff] }
 0x54a   : > { %v2196_v57 = vpop.permute.xlu1 %2195  ;;  %v2043_v9 = vsel %vm870_vm5, %v9155_v31, %v2040_v15  ;;  %v2133_v14 = vsel %vm971_vm6, %v9159_v59, %v2112_v34  ;;  %v1929_v43 = vadd.f32 %v1917_v22, %v1845_v23  ;;  %v1932_v0 = vadd.f32 %v1920_v60, %v1848_v28  ;;  %v9162_v41 = vld [vmem:[#allocation82_spill] sm:$0xff]  ;;  %v9163_v22 = vld [vmem:[#allocation80_spill] sm:$0xff] }
 0x54b   : > { %v2063_v6 = vmul.f32 %v2046_v8, %v9160_v35  ;;  %v2130_v55 = vsel %vm971_vm6, %v2112_v34, %v9161_v20  ;;  %v2003_v53 = vmul.f32 %v9157_v3, %v1979_v29  ;;  %v2001_v50 = vmul.f32 %v9157_v3, %v1977_v26  ;;  %v9164_v8 = vld [vmem:[#allocation69_spill] sm:$0xff]  ;;  %v9165_v26 = vld [vmem:[#allocation99_spill] sm:$0xff] }
 0x54c   : > { %v2004_v11 = vmul.f32 %v9157_v3, %v1980_v13  ;;  %v2061_v15 = vmul.f32 %v2052_v63, %v9162_v41  ;;  %v2064_v5 = vmul.f32 %v2043_v9, %v8863_v42  ;;  %v2145_v23 = vmul.f32 %v2133_v14, %v9061_v12  ;;  %v7227_v3 = vpop.permute.xlu0 %2359  ;;  %v9172_v41 = vld [vmem:[#allocation104_spill] sm:$0xff] }
 0x54d   : > { %v2214_v60 = vsel %vm1072_vm7, %v2196_v57, %v9163_v22  ;;  %v2217_v34 = vsel %vm1072_vm7, %v9164_v8, %v2196_v57  ;;  %v2014_v29 = vadd.f32 %v2002_v46, %v1930_v47  ;;  %v2015_v28 = vadd.f32 %v2003_v53, %v1931_v25 }
 0x54e   : > { %v2208_v31 = vpop.permute.xlu1 %2207  ;;  %v2086_v35 = vmul.f32 %v9165_v26, %v2062_v45  ;;  %v2146_v13 = vmul.f32 %v2130_v55, %v5328_v58  ;;  %v2087_v9 = vmul.f32 %v9165_v26, %v2063_v6  ;;  %v2013_v63 = vadd.f32 %v2001_v50, %v1929_v43  ;;  %v9166_v6 = vld [vmem:[#allocation54_spill] sm:$0xff] }
 0x54f   : > { %v2016_v14 = vadd.f32 %v2004_v11, %v1932_v0  ;;  %v2127_v12 = vsel %vm971_vm6, %v9161_v20, %v2124_v51  ;;  %v2085_v42 = vmul.f32 %v9165_v26, %v2061_v15  ;;  %v2136_v57 = vsel %vm971_vm6, %v2124_v51, %v9159_v59  ;;  %v9167_v0 = vld [vmem:[#allocation46_spill] sm:$0xff]  ;;  %v9168_v20 = vld [vmem:[#allocation108_spill] sm:$0xff]  ;;  %v9169_v51 = vld [vmem:[#allocation87_spill] sm:$0xff] }
 0x550   : > { %v2229_v46 = vmul.f32 %v2217_v34, %v8834_v7  ;;  %v2230_v47 = vmul.f32 %v2214_v60, %v9066_v27  ;;  %v2088_v45 = vmul.f32 %v9165_v26, %v2064_v5  ;;  %v2169_v43 = vmul.f32 %v9166_v6, %v2145_v23  ;;  %v2372_v7 = vpop.permute.xlu0 %2371 }
 0x551   : > { %v2170_v50 = vmul.f32 %v9166_v6, %v2146_v13  ;;  %v2147_v59 = vmul.f32 %v2127_v12, %v9169_v51  ;;  %v2211_v11 = vsel %vm1072_vm7, %v9163_v22, %v2208_v31  ;;  %v2220_v5 = vsel %vm1072_vm7, %v2208_v31, %v9164_v8  ;;  %v9170_v13 = vld [vmem:[#allocation105_spill] sm:$0xff]  ;;  %v9171_v22 = vld [vmem:[#allocation103_spill] sm:$0xff] }
 0x552   : > { %v2280_v25 = vpop.permute.xlu1 %2279  ;;  %v2098_v15 = vadd.f32 %v2086_v35, %v2014_v29  ;;  %v2148_v23 = vmul.f32 %v2136_v57, %v5334_v49  ;;  %v2099_v26 = vadd.f32 %v2087_v9, %v2015_v28  ;;  %v2253_v27 = vmul.f32 %v9170_v13, %v2229_v46  ;;  %v9174_v46 = vld [vmem:[#allocation107_spill] sm:$0xff] }
 0x553   : > { %v2298_v55 = vsel %vm1173_vm8, %v2280_v25, %v9167_v0  ;;  %v2301_v53 = vsel %vm1173_vm8, %v9168_v20, %v2280_v25  ;;  %v2097_v25 = vadd.f32 %v2085_v42, %v2013_v63  ;;  %v2254_v12 = vmul.f32 %v9170_v13, %v2230_v47  ;;  %v9173_v63 = vld [vmem:[#allocation53_spill] sm:$0xff] }
 0x554   : > { %v2313_v60 = vmul.f32 %v2301_v53, %v9083_v38  ;;  %v2314_v34 = vmul.f32 %v2298_v55, %v9131_v32  ;;  %v2231_v58 = vmul.f32 %v2211_v11, %v9171_v22  ;;  %v2232_v18 = vmul.f32 %v2220_v5, %v9172_v41  ;;  %v9175_v53 = vld [vmem:[#allocation112_spill] sm:$0xff]  ;;  %v9176_v5 = vld [vmem:[#allocation113_spill] sm:$0xff] }
 0x555   : > { %v2100_v8 = vadd.f32 %v2088_v45, %v2016_v14  ;;  %v2181_v42 = vadd.f32 %v2169_v43, %v2097_v25  ;;  %v2182_v29 = vadd.f32 %v2170_v50, %v2098_v15  ;;  %v2171_v28 = vmul.f32 %v9166_v6, %v2147_v59  ;;  %v9178_v59 = vld [vmem:[#allocation34_spill] sm:$0xff] }
 0x556   : > { %v2292_v51 = vpop.permute.xlu1 %2291  ;;  %v2172_v9 = vmul.f32 %v9166_v6, %v2148_v23  ;;  %v2386_v57 = vsel %vm1274_vm9, %v2372_v7, %v9173_v63  ;;  %v2337_v47 = vmul.f32 %v9174_v46, %v2313_v60  ;;  %v2338_v55 = vmul.f32 %v9174_v46, %v2314_v34  ;;  %v9177_v6 = vld [vmem:[#allocation62_spill] sm:$0xff] }
 0x557   : > { %v2295_v35 = vsel %vm1173_vm8, %v9167_v0, %v2292_v51  ;;  %v2304_v31 = vsel %vm1173_vm8, %v2292_v51, %v9168_v20  ;;  %v2265_v0 = vadd.f32 %v2253_v27, %v2181_v42  ;;  %v2266_v45 = vadd.f32 %v2254_v12, %v2182_v29 }
 0x558   : > { %v2315_v11 = vmul.f32 %v2295_v35, %v9175_v53  ;;  %v2316_v20 = vmul.f32 %v2304_v31, %v9176_v5  ;;  %v2255_v43 = vmul.f32 %v9170_v13, %v2231_v58  ;;  %v2256_v50 = vmul.f32 %v9170_v13, %v2232_v18  ;;  %v9179_v31 = vld [vmem:[#allocation18_spill] sm:$0xff] }
 0x559   : > { %v2183_v23 = vadd.f32 %v2171_v28, %v2099_v26  ;;  %v2383_v27 = vsel %vm1274_vm9, %v9173_v63, %v7227_v3  ;;  %v2184_v34 = vadd.f32 %v2172_v9, %v2100_v8  ;;  %v2392_v18 = vmul.f32 %v2386_v57, %v9144_v39 }
 0x55a   : > { %v2364_v14 = vpop.permute.xlu1 %2363  ;;  %v2349_v25 = vadd.f32 %v2337_v47, %v2265_v0  ;;  %v2350_v13 = vadd.f32 %v2338_v55, %v2266_v45  ;;  %v2339_v12 = vmul.f32 %v9174_v46, %v2315_v11  ;;  %v2340_v35 = vmul.f32 %v9174_v46, %v2316_v20 }
 0x55b   : > { %v2382_v51 = vsel %vm1274_vm9, %v2364_v14, %v9177_v6  ;;  %v2385_v15 = vsel %vm1274_vm9, %v9178_v59, %v2364_v14  ;;  %v2267_v28 = vadd.f32 %v2255_v43, %v2183_v23  ;;  %v2268_v9 = vadd.f32 %v2256_v50, %v2184_v34  ;;  %v9184_v34 = vld [vmem:[#allocation26_spill] sm:$0xff] }
 0x55c   : > { %v2397_v60 = vmul.f32 %v2385_v15, %v9134_v52  ;;  %v2398_v58 = vmul.f32 %v2382_v51, %v9136_v10  ;;  %v2389_v0 = vmul.f32 %v2383_v27, %v9134_v52  ;;  %v2430_v11 = vadd.f32 %v7124_v33, %v7162_v21  ;;  %v9181_v27 = vld [vmem:[#allocation78_spill] sm:$0xff] }
 0x55d   : > { %v2348_v20 = vadd.f32 %v7090_v44, %v7164_v4  ;;  %v2347_v14 = vadd.f32 %v7082_v16, %v7142_v19  ;;  %v2351_v45 = vadd.f32 %v2339_v12, %v2267_v28  ;;  %v9180_v44 = vld [vmem:[#allocation56_spill] sm:$0xff]  ;;  %v2416_v16 = vmul.f32 %v7195_v30, %v2392_v18  ;;  %v9189_v28 = vld [vmem:[#allocation22_spill] sm:$0xff] }
 0x55e   : > { %v2421_v26 = vmul.f32 %v9179_v31, %v2397_v60  ;;  %v2376_v42 = vpop.permute.xlu1 %2375  ;;  %v2422_v29 = vmul.f32 %v9179_v31, %v2398_v58  ;;  %v2429_v21 = vadd.f32 %v9180_v44, %v7179_v17  ;;  %v9182_v60 = vld [vmem:[#allocation81_spill] sm:$0xff]  ;;  %v9183_v58 = vld [vmem:[#allocation24_spill] sm:$0xff]  ;;  %v9186_v17 = vld [vmem:[#allocation102_spill] sm:$0xff]  ;;  %v9202_v44 = vmov 24  }
 0x55f   : > { %v2379_v63 = vsel %vm1274_vm9, %v9177_v6, %v2376_v42  ;;  %v2388_v8 = vsel %vm1274_vm9, %v2376_v42, %v9178_v59  ;;  %v2352_v6 = vadd.f32 %v2340_v35, %v2268_v9  ;;  %v2432_v35 = vadd.f32 %v7155_v61, %v2348_v20  ;;  %v9188_v42 = vld [vmem:[#allocation30_spill] sm:$0xff]  ;;  %v9190_v61 = vld [vmem:[#allocation37_spill] sm:$0xff]  ;;  %v7355_v20 = vld [vmem:[#allocation7 + $0x40] sm:$0xff] }
 0x560   : > { %v2399_v57 = vmul.f32 %v2379_v63, %v9142_v24  ;;  %v2400_v47 = vmul.f32 %v2388_v8, %v9144_v39  ;;  %v2434_v46 = vadd.f32 %v2422_v29, %v2350_v13  ;;  %v2433_v55 = vadd.f32 %v2421_v26, %v2349_v25  ;;  %v9185_v13 = vld [vmem:[#allocation58_spill] sm:$0xff]  ;;  %v9187_v26 = vld [vmem:[#allocation36_spill] sm:$0xff]  ;;  %2640 = vperm.xlu1 %4275, %v7355_v20  }
 0x561   : > { %v2343_v25 = vadd.f32 %v9184_v34, %v9183_v58  ;;  %v2342_v12 = vadd.f32 %v9186_v17, %v9185_v13  ;;  %v2344_v29 = vadd.f32 %v9188_v42, %v9187_v26  ;;  %v2431_v8 = vadd.f32 %v7139_v36, %v2347_v14  ;;  %v9192_v36 = vld [vmem:[#allocation25_spill] sm:$0xff] }
 0x562   : > { %v2423_v43 = vmul.f32 %v9179_v31, %v2399_v57  ;;  %2480 = vmatprep.subr.mxu0 %v2434_v46  ;;  %v2366_v50 = vpop.permute.xlu1 %2365  ;;  %v2424_v51 = vmul.f32 %v9179_v31, %v2400_v47  ;;  %v9194_v14 = vmov 12  }
 0x563   : > { %v2377_v59 = vsel %vm1274_vm9, %v2366_v50, %v2372_v7  ;;  %v2380_v33 = vsel %vm1274_vm9, %v7227_v3, %v2366_v50  ;;  %2481 = vmatpush1.msra.mxu0 %v2433_v55  ;;  %v2329_v7 = vmul.f32 %v9182_v60, %v9181_v27  ;;  %v2413_v3 = vmul.f32 %v7195_v30, %v2389_v0  ;;  %v7349_v55 = vld [vmem:[#allocation7 + $0x30] sm:$0xff]  ;;  %v7352_v0 = vld [vmem:[#allocation7 + $0x38] sm:$0xff] }
 0x564   : > { %v2390_v19 = vmul.f32 %v2380_v33, %v9136_v10  ;;  %v2391_v4 = vmul.f32 %v2377_v59, %v9142_v24  ;;  %2482 = vmatprep.subr.mxu0 %v2430_v11  ;;  %v2436_v15 = vadd.f32 %v2424_v51, %v2352_v6  ;;  %v2435_v23 = vadd.f32 %v2423_v43, %v2351_v45 }
 0x565   : > { %2483 = vmatpush1.msra.mxu0 %v2429_v21  ;;  %v2341_v63 = vadd.f32 %v2329_v7, %v9189_v28  ;;  %v2428_v57 = vadd.f32 %v2416_v16, %v2344_v29  ;;  %2630 = vperm.xlu0 %4276, %v7349_v55   ;;  %v9193_v11 = vmov 16   ;;  %v9195_v45 = vmov 13  }
 0x566   : > { %v2415_v18 = vmul.f32 %v7195_v30, %v2391_v4  ;;  %2557 = vmatprep.subr.mxu1 %v2436_v15  ;;  %v2414_v31 = vmul.f32 %v7195_v30, %v2390_v19  ;;  %v9191_v30 = vmov 0.0   ;;  %2635 = vperm.xlu1 %4275, %v7352_v0   ;;  %v9196_v43 = vmov 14   ;;  %v2443_v15 = vpop.permute.xlu0 %2442 }
 0x567   : > { %2558 = vmatpush1.msra.mxu1 %v2435_v23  ;;  %v2425_v46 = vadd.f32 %v2413_v3, %v2341_v63  ;;  %v9197_v50 = vmov 15   ;;  %v9198_v6 = vmov 17   ;;  %v9199_v51 = vmov 18  }
 0x568   : > { %2559 = vmatprep.subr.mxu1 %v2432_v35  ;;  %v2426_v9 = vadd.f32 %v2414_v31, %v2342_v12  ;;  %v2427_v47 = vadd.f32 %v2415_v18, %v2343_v25  ;;  %v9200_v59 = vmov 19   ;;  %v9201_v33 = vmov 20  }
 0x569   : > { %2560 = vmatpush1.msra.mxu1 %v2431_v8  ;;  %4279 = vset.pattern.permute.xlu0 %v9193_v11 }
 0x56a   : > { %2484 = vmatprep.subr.mxu0 %v2426_v9  ;;  %2561 = vmatprep.subr.mxu1 %v2428_v57 }
 0x56b   : > { %2485 = vmatpush1.msra.mxu0 %v2425_v46  ;;  %2562 = vmatpush1.msra.mxu1 %v2427_v47 }
 0x56c   : > { %4074 = vmatmul.mubr.msk.f32.vlgmr.msra.gmra.mxu0 %vm1363_vm10, %v9190_v61  ;;  %4076 = vmatmul.mubr.msk.f32.vlgmr.msra.gmra.mxu1 %vm1363_vm10, %v9190_v61 }
 0x56d   : > { %2524 = vmatprep.mubr.f32.mxu0 %v9191_v30  ;;  %2601 = vmatprep.mubr.f32.mxu1 %v9191_v30 }
 0x56e   : > { %2832 = vperm.xlu0 %4279, %v7352_v0   ;;  %4277 = vset.pattern.permute.xlu1 %v9193_v11 }
 0x56f   : > { %2836 = vperm.xlu1 %4277, %v7355_v20   ;;  %v2448_v23 = vpop.permute.xlu1 %2447 }
 0x570   : > { %4075 = vmatmul.mubr.msk.f32.gmra.mxu0 %vm1363_vm10, %v9192_v36  ;;  %4077 = vmatmul.mubr.msk.f32.gmra.mxu1 %vm1363_vm10, %v9192_v36 }
 0x571   : > { %2725 = vmatprep.mubr.f32.mxu0 %v9191_v30  ;;  %2808 = vmatprep.mubr.f32.mxu1 %v9191_v30 }
 0x572   : > { %4280 = vset.pattern.permute.xlu0 %v9194_v14 }
 0x573   : > { %2904 = vperm.xlu0 %4280, %v7352_v0   ;;  %4278 = vset.pattern.permute.xlu1 %v9194_v14 }
 0x574   : > { %2908 = vperm.xlu1 %4278, %v7355_v20  }
 0x577   : > { %2900 = vperm.xlu0 %4280, %v7349_v55  }
 0x578   : > { %4281 = vset.pattern.permute.xlu1 %v9195_v45 }
 0x579   : > { %2992 = vperm.xlu1 %4281, %v7355_v20  }
 0x57b   : > { %4284 = vset.pattern.permute.xlu0 %v9195_v45 }
 0x57c   : > { %2984 = vperm.xlu0 %4284, %v7349_v55  }
 0x57d   : > { %4282 = vset.pattern.permute.xlu1 %v9193_v11 }
 0x57e   : > { %2828 = vperm.xlu1 %4282, %v7349_v55  }
 0x580   : > { %4285 = vset.pattern.permute.xlu0 %v9196_v43 }
 0x581   : > { %3076 = vperm.xlu0 %4285, %v7355_v20  }
 0x582   : > { %4283 = vset.pattern.permute.xlu1 %v9195_v45 }
 0x583   : > { %2988 = vperm.xlu1 %4283, %v7352_v0  }
 0x585   : > { %3072 = vperm.xlu0 %4285, %v7352_v0  }
 0x587   : > { %4286 = vset.pattern.permute.xlu1 %v9197_v50 }
 0x588   : > { %3160 = vperm.xlu1 %4286, %v7355_v20  }
 0x589   : > { %4288 = vset.pattern.permute.xlu0 %v9197_v50 }
 0x58a   : > { %3156 = vperm.xlu0 %4288, %v7352_v0  }
 0x58c   : > { %4287 = vset.pattern.permute.xlu1 %v9196_v43 }
 0x58d   : > { %3068 = vperm.xlu1 %4287, %v7349_v55  }
 0x58e   : > { %4291 = vset.pattern.permute.xlu0 %v9198_v6 }
 0x58f   : > { %3240 = vperm.xlu0 %4291, %v7352_v0  }
 0x591   : > { %4289 = vset.pattern.permute.xlu1 %v9198_v6 }
 0x592   : > { %3244 = vperm.xlu1 %4289, %v7355_v20  }
 0x593   : > { %4294 = vset.pattern.permute.xlu0 %v9199_v51 }
 0x594   : > { %3324 = vperm.xlu0 %4294, %v7352_v0  }
 0x596   : > { %4290 = vset.pattern.permute.xlu1 %v9197_v50 }
 0x597   : > { %3152 = vperm.xlu1 %4290, %v7349_v55  }
 0x598   : > { %4297 = vset.pattern.permute.xlu0 %v9200_v59 }
 0x599   : > { %3408 = vperm.xlu0 %4297, %v7352_v0  }
 0x59b   : > { %4292 = vset.pattern.permute.xlu1 %v9199_v51 }
 0x59c   : > { %3328 = vperm.xlu1 %4292, %v7355_v20  }
 0x59d   : > { %4300 = vset.pattern.permute.xlu0 %v9201_v33 }
 0x59e   : > { %3492 = vperm.xlu0 %4300, %v7352_v0  }
 0x5a0   : > { %4293 = vset.pattern.permute.xlu1 %v9198_v6 }
 0x5a1   : > { %3236 = vperm.xlu1 %4293, %v7349_v55  }
 0x5a5   : > { %4295 = vset.pattern.permute.xlu1 %v9200_v59 }
 0x5a6   : > { %3412 = vperm.xlu1 %4295, %v7355_v20  }
 0x5aa   : > { %4296 = vset.pattern.permute.xlu1 %v9199_v51 }
 0x5ab   : > { %3320 = vperm.xlu1 %4296, %v7349_v55  }
 0x5af   : > { %4298 = vset.pattern.permute.xlu1 %v9201_v33 }
 0x5b0   : > { %3496 = vperm.xlu1 %4298, %v7355_v20  }
 0x5b4   : > { %4299 = vset.pattern.permute.xlu1 %v9200_v59 }
 0x5b5   : > { %3404 = vperm.xlu1 %4299, %v7349_v55  }
 0x5b9   : > { %4301 = vset.pattern.permute.xlu1 %v9202_v44 }
 0x5e0   : > { %v2631_v50 = vpop.permute.xlu0 %2630 }
 0x62c   : > { %v2520_v21 = vpop.f32.mrf.mxu0  ;;  %v2597_v16 = vpop.f32.mrf.mxu1 }
 0x62d   : > { %v2521_v34 = vadd.f32 %v2520_v21, %v2443_v15  ;;  %v2598_v25 = vadd.f32 %v2597_v16, %v2443_v15 }
 0x62e   : > { %v2522_v19 = vpop.f32.mrf.mxu0  ;;  %v2599_v4 = vpop.f32.mrf.mxu1 }
 0x62f   : > { %v2523_v27 = vadd.f32 %v2522_v19, %v2443_v15  ;;  %v2600_v58 = vadd.f32 %v2599_v4, %v2443_v15  ;;  %v2608_v8 = vmul.f32 0.2, %v2521_v34  ;;  %v2610_v9 = vmul.f32 0.2, %v2598_v25  ;;  %v7455_v19 = vpop.permute.xlu1 %2640 }
 0x630   : > { %v2603_v60 = vpop.f32.mrf.mxu1  ;;  %v2526_v7 = vpop.f32.mrf.mxu0 }
 0x631   : > { %v2604_v3 = vadd.f32 %v2603_v60, %v2448_v23  ;;  %v2527_v13 = vadd.f32 %v2526_v7, %v2448_v23  ;;  %v2609_v31 = vmul.f32 0.2, %v2523_v27  ;;  %v2611_v29 = vmul.f32 0.2, %v2600_v58 }
 0x632   : > { %v2528_v17 = vpop.f32.mrf.mxu0  ;;  %v2605_v12 = vpop.f32.mrf.mxu1  ;;  %v2616_v45 = vmax.f32 %v2521_v34, %v2608_v8  ;;  %v2618_v43 = vmax.f32 %v2598_v25, %v2610_v9 }
 0x633   : > { %v2529_v18 = vadd.f32 %v2528_v17, %v2448_v23  ;;  %v2606_v35 = vadd.f32 %v2605_v12, %v2448_v23  ;;  %v2614_v26 = vmul.f32 0.2, %v2604_v3  ;;  %v2612_v42 = vmul.f32 0.2, %v2527_v13  ;;  %v2636_v4 = vpop.permute.xlu1 %2635 }
 0x634   : > { %v2617_v36 = vmax.f32 %v2523_v27, %v2609_v31  ;;  %v2619_v11 = vmax.f32 %v2600_v58, %v2611_v29 }
 0x635   : > { %v2613_v28 = vmul.f32 0.2, %v2529_v18  ;;  %v2615_v63 = vmul.f32 0.2, %v2606_v35  ;;  %v2622_v46 = vmax.f32 %v2604_v3, %v2614_v26  ;;  %v2620_v61 = vmax.f32 %v2527_v13, %v2612_v42  ;;  %v7507_v13 = vpop.permute.xlu0 %2832 }
 0x636   : > { %9209 = vst [vmem:[#allocation55_spill] sm:$0xff] %v7507_v13 }
 0x637   : > { %v2621_v57 = vmax.f32 %v2529_v18, %v2613_v28  ;;  %v2623_v47 = vmax.f32 %v2606_v35, %v2615_v63  ;;  %v7469_v15 = vpop.permute.xlu1 %2836 }
 0x638   : > { %9203 = vst [vmem:[#allocation84_spill] sm:$0xff] %v7469_v15 }
 0x639   : > { %4078 = vmatprep.subr.msk.mxu0 %vm338_vm0, %v2621_v57  ;;  %4083 = vmatprep.subr.msk.mxu1 %vm338_vm0, %v2623_v47  ;;  %v7513_v17 = vpop.permute.xlu0 %2904 }
 0x63a   : > { %4079 = vmatpush1.msk.msra.mxu0 %vm338_vm0, %v2620_v61  ;;  %4084 = vmatpush1.msk.msra.mxu1 %vm338_vm0, %v2622_v46  ;;  %9210 = vst [vmem:[#allocation45_spill] sm:$0xff] %v7513_v17 }
 0x63b   : > { %2691 = vmatprep.subr.mxu0 %v2617_v36  ;;  %2774 = vmatprep.subr.mxu1 %v2619_v11  ;;  %v7477_v23 = vpop.permute.xlu1 %2908 }
 0x63c   : > { %2692 = vmatpush1.msra.mxu0 %v2616_v45  ;;  %2775 = vmatpush1.msra.mxu1 %v2618_v43  ;;  %9204 = vst [vmem:[#allocation32_spill] sm:$0xff] %v7477_v23 }
 0x63d   : > { %4080 = vmatmul.mubr.msk.f32.vlgmr.msra.gmra.mxu0 %vm331_vm1, %v7349_v55  ;;  %4085 = vmatmul.mubr.msk.f32.vlgmr.msra.gmra.mxu1 %vm331_vm1, %v7349_v55  ;;  %v7523_v18 = vpop.permute.xlu0 %2900 }
 0x63e   : > { %2731 = vmatprep.mubr.f32.mxu0 %v9191_v30  ;;  %2814 = vmatprep.mubr.f32.mxu1 %v9191_v30 }
 0x63f   : > { %v7485_v27 = vpop.permute.xlu1 %2992 }
 0x640   : > { %9205 = vst [vmem:[#allocation106_spill] sm:$0xff] %v7485_v27 }
 0x641   : > { %4081 = vmatmul.mubr.msk.f32.gmra.mxu0 %vm331_vm1, %v7352_v0  ;;  %4086 = vmatmul.mubr.msk.f32.gmra.mxu1 %vm331_vm1, %v7352_v0  ;;  %v7533_v31 = vpop.permute.xlu0 %2984 }
 0x642   : > { %2737 = vmatprep.mubr.f32.mxu0 %v9191_v30  ;;  %2820 = vmatprep.mubr.f32.mxu1 %v9191_v30 }
 0x643   : > { %v7493_v60 = vpop.permute.xlu1 %2828 }
 0x645   : > { %4082 = vmatmul.mubr.msk.f32.gmra.mxu0 %vm331_vm1, %v7355_v20  ;;  %4087 = vmatmul.mubr.msk.f32.gmra.mxu1 %vm331_vm1, %v7355_v20  ;;  %v7545_v28 = vpop.permute.xlu0 %3076 }
 0x646   : > { %3604 = vmatprep.mubr.f32.mxu0 %v9191_v30  ;;  %3681 = vmatprep.mubr.f32.mxu1 %v9191_v30  ;;  %9214 = vst [vmem:[#allocation63_spill] sm:$0xff] %v7545_v28 }
 0x647   : > { %v7503_v25 = vpop.permute.xlu1 %2988 }
 0x648   : > { %9207 = vst [vmem:[#allocation20_spill] sm:$0xff] %v7503_v25 }
 0x649   : > { %v7557_v57 = vpop.permute.xlu0 %3072 }
 0x64a   : > { %9216 = vst [vmem:[#allocation50_spill] sm:$0xff] %v7557_v57 }
 0x64b   : > { %v7515_v12 = vpop.permute.xlu1 %3160 }
 0x64c   : > { %9211 = vst [vmem:[#allocation67_spill] sm:$0xff] %v7515_v12 }
 0x64d   : > { %v7567_v46 = vpop.permute.xlu0 %3156 }
 0x64e   : > { %9218 = vst [vmem:[#allocation27_spill] sm:$0xff] %v7567_v46 }
 0x64f   : > { %v7527_v35 = vpop.permute.xlu1 %3068 }
 0x651   : > { %v7577_v36 = vpop.permute.xlu0 %3240 }
 0x652   : > { %9219 = vst [vmem:[#allocation49_spill] sm:$0xff] %v7577_v36 }
 0x653   : > { %v7535_v26 = vpop.permute.xlu1 %3244 }
 0x654   : > { %9212 = vst [vmem:[#allocation74_spill] sm:$0xff] %v7535_v26 }
 0x655   : > { %v7587_v45 = vpop.permute.xlu0 %3324 }
 0x656   : > { %9221 = vst [vmem:[#allocation71_spill] sm:$0xff] %v7587_v45 }
 0x657   : > { %v7549_v8 = vpop.permute.xlu1 %3152 }
 0x65b   : > { %v7559_v47 = vpop.permute.xlu1 %3328 }
 0x65c   : > { %9217 = vst [vmem:[#allocation17_spill] sm:$0xff] %v7559_v47 }
 0x65f   : > { %v7571_v61 = vpop.permute.xlu1 %3236 }
 0x663   : > { %v7579_v11 = vpop.permute.xlu1 %3412 }
 0x664   : > { %9220 = vst [vmem:[#allocation47_spill] sm:$0xff] %v7579_v11 }
 0x667   : > { %v7591_v43 = vpop.permute.xlu1 %3320 }
 0x6fd   : > { %v2727_v6 = vpop.f32.mrf.mxu0  ;;  %v2810_v51 = vpop.f32.mrf.mxu1 }
 0x6fe   : > { %v7431_v59 = vadd.f32 %v2727_v6, %v2631_v50  ;;  %v7433_v0 = vadd.f32 %v2810_v51, %v2631_v50  ;;  %v7599_v6 = vpop.permute.xlu1 %3496 }
 0x6ff   : > { %v2729_v33 = vpop.f32.mrf.mxu0  ;;  %v2812_v21 = vpop.f32.mrf.mxu1  ;;  %9223 = vst [vmem:[#allocation52_spill] sm:$0xff] %v7599_v6 }
 0x700   : > { %2863 = vrot.lane.b32.xlu0 %v7433_v0, %s4543_s26  ;;  %2851 = vrot.lane.b32.xlu1 %v7431_v59, %s4543_s26  ;;  %v7443_v20 = vadd.f32 %v2729_v33, %v2631_v50  ;;  %v7449_v16 = vadd.f32 %v2812_v21, %v2631_v50  ;;  %v7597_v50 = vpop.permute.xlu0 %3408 }
 0x701   : > { %v2733_v7 = vpop.f32.mrf.mxu0  ;;  %v2816_v34 = vpop.f32.mrf.mxu1  ;;  %9222 = vst [vmem:[#allocation72_spill] sm:$0xff] %v7597_v50 }
 0x702   : > { %v7497_v58 = vadd.f32 %v2733_v7, %v2636_v4  ;;  %v7505_v3 = vadd.f32 %v2816_v34, %v2636_v4  ;;  %v7611_v21 = vpop.permute.xlu1 %3404 }
 0x703   : > { %v2735_v42 = vpop.f32.mrf.mxu0  ;;  %v2818_v63 = vpop.f32.mrf.mxu1 }
 0x704   : > { %3367 = vrot.lane.b32.xlu0 %v7433_v0, %s4548_s14  ;;  %2935 = vrot.lane.b32.xlu1 %v7431_v59, %s4542_s24  ;;  %9206 = vst [vmem:[#allocation60_spill] sm:$0xff] %v7497_v58  ;;  %9208 = vst [vmem:[#allocation43_spill] sm:$0xff] %v7505_v3  ;;  %v7541_v29 = vadd.f32 %v2735_v42, %v2636_v4  ;;  %v7551_v9 = vadd.f32 %v2818_v63, %v2636_v4  ;;  %v7607_v51 = vpop.permute.xlu0 %3492 }
 0x705   : > { %9224 = vst [vmem:[#allocation109_spill] sm:$0xff] %v7607_v51  ;;  %v2822_v33 = vpop.f32.mrf.mxu1  ;;  %v2739_v42 = vpop.f32.mrf.mxu0 }
 0x706   : > { %9213 = vst [vmem:[#allocation57_spill] sm:$0xff] %v7541_v29  ;;  %9215 = vst [vmem:[#allocation61_spill] sm:$0xff] %v7551_v9  ;;  %v7614_v4 = vadd.f32 %v2822_v33, %v7455_v19  ;;  %v7629_v63 = vadd.f32 %v2739_v42, %v7455_v19 }
 0x707   : > { %v2741_v51 = vpop.f32.mrf.mxu0  ;;  %v2824_v45 = vpop.f32.mrf.mxu1 }
 0x708   : > { %2941 = vrot.lane.b32.xlu0 %v7443_v20, %s4542_s24  ;;  %2947 = vrot.lane.b32.xlu1 %v7433_v0, %s4542_s24  ;;  %9225 = vst [vmem:[#allocation44_spill] sm:$0xff] %v7614_v4  ;;  %9226 = vst [vmem:[#allocation73_spill] sm:$0xff] %v7629_v63  ;;  %v7662_v24 = vadd.f32 %v2741_v51, %v7455_v19  ;;  %v7673_v36 = vadd.f32 %v2824_v45, %v7455_v19 }
 0x70a   : > { %9227 = vst [vmem:[#allocation28_spill] sm:$0xff] %v7662_v24  ;;  %9228 = vst [vmem:[#allocation92_spill] sm:$0xff] %v7673_v36 }
 0x70c   : > { %2953 = vrot.lane.b32.xlu0 %v7449_v16, %s4542_s24  ;;  %3019 = vrot.lane.b32.xlu1 %v7431_v59, %s4544_s23 }
 0x710   : > { %3025 = vrot.lane.b32.xlu0 %v7443_v20, %s4544_s23  ;;  %3031 = vrot.lane.b32.xlu1 %v7433_v0, %s4544_s23 }
 0x714   : > { %3037 = vrot.lane.b32.xlu0 %v7449_v16, %s4544_s23  ;;  %3103 = vrot.lane.b32.xlu1 %v7431_v59, %s4545_s28 }
 0x718   : > { %3109 = vrot.lane.b32.xlu0 %v7443_v20, %s4545_s28  ;;  %3115 = vrot.lane.b32.xlu1 %v7433_v0, %s4545_s28 }
 0x71c   : > { %3121 = vrot.lane.b32.xlu0 %v7449_v16, %s4545_s28  ;;  %3187 = vrot.lane.b32.xlu1 %v7431_v59, %s4546_s30 }
 0x720   : > { %3193 = vrot.lane.b32.xlu0 %v7443_v20, %s4546_s30  ;;  %3199 = vrot.lane.b32.xlu1 %v7433_v0, %s4546_s30 }
 0x724   : > { %3205 = vrot.lane.b32.xlu0 %v7449_v16, %s4546_s30  ;;  %3271 = vrot.lane.b32.xlu1 %v7431_v59, %s4547_s6 }
 0x728   : > { %3277 = vrot.lane.b32.xlu0 %v7443_v20, %s4547_s6  ;;  %3283 = vrot.lane.b32.xlu1 %v7433_v0, %s4547_s6 }
 0x72c   : > { %3289 = vrot.lane.b32.xlu0 %v7449_v16, %s4547_s6  ;;  %3355 = vrot.lane.b32.xlu1 %v7431_v59, %s4548_s14 }
 0x730   : > { %2853 = vrot.lane.b32.xlu0 %v7497_v58, %s4543_s26  ;;  %2857 = vrot.lane.b32.xlu1 %v7443_v20, %s4543_s26 }
 0x734   : > { %2865 = vrot.lane.b32.xlu0 %v7505_v3, %s4543_s26  ;;  %2869 = vrot.lane.b32.xlu1 %v7449_v16, %s4543_s26 }
 0x738   : > { %2937 = vrot.lane.b32.xlu0 %v7497_v58, %s4542_s24  ;;  %3361 = vrot.lane.b32.xlu1 %v7443_v20, %s4548_s14 }
 0x73c   : > { %2949 = vrot.lane.b32.xlu0 %v7505_v3, %s4542_s24  ;;  %3373 = vrot.lane.b32.xlu1 %v7449_v16, %s4548_s14 }
 0x740   : > { %3441 = vrot.lane.b32.xlu0 %v7497_v58, %s4549_s17  ;;  %3021 = vrot.lane.b32.xlu1 %v7497_v58, %s4544_s23 }
 0x744   : > { %3453 = vrot.lane.b32.xlu0 %v7505_v3, %s4549_s17  ;;  %3033 = vrot.lane.b32.xlu1 %v7505_v3, %s4544_s23 }
 0x748   : > { %3027 = vrot.lane.b32.xlu0 %v7541_v29, %s4544_s23  ;;  %3105 = vrot.lane.b32.xlu1 %v7497_v58, %s4545_s28 }
 0x74c   : > { %3039 = vrot.lane.b32.xlu0 %v7551_v9, %s4544_s23  ;;  %3117 = vrot.lane.b32.xlu1 %v7505_v3, %s4545_s28 }
 0x750   : > { %3111 = vrot.lane.b32.xlu0 %v7541_v29, %s4545_s28  ;;  %3189 = vrot.lane.b32.xlu1 %v7497_v58, %s4546_s30 }
 0x754   : > { %3123 = vrot.lane.b32.xlu0 %v7551_v9, %s4545_s28  ;;  %3201 = vrot.lane.b32.xlu1 %v7505_v3, %s4546_s30 }
 0x758   : > { %3195 = vrot.lane.b32.xlu0 %v7541_v29, %s4546_s30  ;;  %3273 = vrot.lane.b32.xlu1 %v7497_v58, %s4547_s6 }
 0x75c   : > { %3207 = vrot.lane.b32.xlu0 %v7551_v9, %s4546_s30  ;;  %3285 = vrot.lane.b32.xlu1 %v7505_v3, %s4547_s6 }
 0x760   : > { %3279 = vrot.lane.b32.xlu0 %v7541_v29, %s4547_s6  ;;  %3357 = vrot.lane.b32.xlu1 %v7497_v58, %s4548_s14 }
 0x764   : > { %3291 = vrot.lane.b32.xlu0 %v7551_v9, %s4547_s6  ;;  %3369 = vrot.lane.b32.xlu1 %v7505_v3, %s4548_s14 }
 0x768   : > { %3363 = vrot.lane.b32.xlu0 %v7541_v29, %s4548_s14  ;;  %2859 = vrot.lane.b32.xlu1 %v7541_v29, %s4543_s26 }
 0x76c   : > { %3375 = vrot.lane.b32.xlu0 %v7551_v9, %s4548_s14  ;;  %2871 = vrot.lane.b32.xlu1 %v7551_v9, %s4543_s26 }
 0x770   : > { %2867 = vrot.lane.b32.xlu0 %v7614_v4, %s4543_s26  ;;  %2943 = vrot.lane.b32.xlu1 %v7541_v29, %s4542_s24 }
 0x772   : > { %v7620_v7 = vpop.permute.xlu0 %2863  ;;  %v7622_v34 = vpop.permute.xlu1 %2851 }
 0x774   : > { %3035 = vrot.lane.b32.xlu0 %v7614_v4, %s4544_s23  ;;  %2955 = vrot.lane.b32.xlu1 %v7551_v9, %s4542_s24 }
 0x776   : > { %v7631_v33 = vpop.permute.xlu0 %3367  ;;  %v2936_v30 = vpop.permute.xlu1 %2935 }
 0x778   : > { %3107 = vrot.lane.b32.xlu0 %v7629_v63, %s4545_s28  ;;  %3447 = vrot.lane.b32.xlu1 %v7541_v29, %s4549_s17 }
 0x77a   : > { %v2942_v6 = vpop.permute.xlu0 %2941  ;;  %v2948_v11 = vpop.permute.xlu1 %2947 }
 0x77b   : > { %v2962_v29 = vsel %vm668_vm4, %v2942_v6, %v2948_v11 }
 0x77c   : > { %3119 = vrot.lane.b32.xlu0 %v7614_v4, %s4545_s28  ;;  %3459 = vrot.lane.b32.xlu1 %v7551_v9, %s4549_s17  ;;  %v2973_v13 = vmul.f32 %v2962_v29, %v9044_v40  ;;  %v2840_v40 = vmul.f32 %v7493_v60, %v7443_v20 }
 0x77e   : > { %v2954_v47 = vpop.permute.xlu0 %2953  ;;  %v3020_v42 = vpop.permute.xlu1 %3019 }
 0x780   : > { %3191 = vrot.lane.b32.xlu0 %v7629_v63, %s4546_s30  ;;  %2855 = vrot.lane.b32.xlu1 %v7629_v63, %s4543_s26 }
 0x782   : > { %v3026_v26 = vpop.permute.xlu0 %3025  ;;  %v3032_v12 = vpop.permute.xlu1 %3031 }
 0x784   : > { %3203 = vrot.lane.b32.xlu0 %v7614_v4, %s4546_s30  ;;  %2939 = vrot.lane.b32.xlu1 %v7629_v63, %s4542_s24 }
 0x786   : > { %v3038_v28 = vpop.permute.xlu0 %3037  ;;  %v3104_v27 = vpop.permute.xlu1 %3103 }
 0x788   : > { %3275 = vrot.lane.b32.xlu0 %v7629_v63, %s4547_s6  ;;  %2951 = vrot.lane.b32.xlu1 %v7614_v4, %s4542_s24 }
 0x78a   : > { %v3110_v15 = vpop.permute.xlu0 %3109  ;;  %v3116_v23 = vpop.permute.xlu1 %3115 }
 0x78b   : > { %v7655_v39 = vsel %vm870_vm5, %v3110_v15, %v3116_v23 }
 0x78c   : > { %3287 = vrot.lane.b32.xlu0 %v7614_v4, %s4547_s6  ;;  %3023 = vrot.lane.b32.xlu1 %v7629_v63, %s4544_s23 }
 0x78e   : > { %v3122_v52 = vpop.permute.xlu0 %3121  ;;  %v3188_v50 = vpop.permute.xlu1 %3187 }
 0x78f   : > { %v7666_v10 = vsel %vm870_vm5, %v3116_v23, %v3122_v52 }
 0x790   : > { %3359 = vrot.lane.b32.xlu0 %v7629_v63, %s4548_s14  ;;  %2861 = vrot.lane.b32.xlu1 %v7662_v24, %s4543_s26 }
 0x792   : > { %v3194_v25 = vpop.permute.xlu0 %3193  ;;  %v3200_v17 = vpop.permute.xlu1 %3199 }
 0x793   : > { %v7677_v51 = vsel %vm971_vm6, %v3188_v50, %v3194_v25  ;;  %v7681_v23 = vsel %vm971_vm6, %v3194_v25, %v3200_v17  ;;  %v2965_v25 = vsel %vm668_vm4, %v2936_v30, %v2942_v6 }
 0x794   : > { %3371 = vrot.lane.b32.xlu0 %v7614_v4, %s4548_s14  ;;  %2873 = vrot.lane.b32.xlu1 %v7673_v36, %s4543_s26  ;;  %v2972_v6 = vmul.f32 %v2965_v25, %v9040_v2  ;;  %v3043_v25 = vsel %vm769_vm2, %v3032_v12, %v3038_v28  ;;  %s4551_s26 = smov [#allocation11]  }
 0x796   : > { %v3206_v46 = vpop.permute.xlu0 %3205  ;;  %v3272_v57 = vpop.permute.xlu1 %3271 }
 0x797   : > { %v7689_v19 = vsel %vm971_vm6, %v3200_v17, %v3206_v46  ;;  %v7693_v45 = vsel %vm971_vm6, %v3206_v46, %v3188_v50  ;;  %v2968_v17 = vsel %vm668_vm4, %v2954_v47, %v2936_v30  ;;  %v3049_v30 = vsel %vm769_vm2, %v3020_v42, %v3026_v26 }
 0x798   : > { %3443 = vrot.lane.b32.xlu0 %v7629_v63, %s4549_s17  ;;  %3439 = vrot.lane.b32.xlu1 %v7431_v59, %s4549_s17  ;;  %v2959_v63 = vsel %vm668_vm4, %v2948_v11, %v2954_v47  ;;  %v2971_v58 = vmul.f32 %v2968_v17, %v9046_v37  ;;  %v3046_v47 = vsel %vm769_vm2, %v3026_v26, %v3032_v12 }
 0x799   : > { %v7743_v26 = vmul.f32 %v7493_v60, %v7431_v59  ;;  %v3133_v12 = vsel %vm870_vm5, %v3104_v27, %v3110_v15  ;;  %v2997_v15 = vmul.f32 %v7533_v31, %v2973_v13  ;;  %v9233_v13 = vld [vmem:[#allocation82_spill] sm:$0xff] }
 0x79a   : > { %v3278_v9 = vpop.permute.xlu0 %3277  ;;  %v3284_v50 = vpop.permute.xlu1 %3283 }
 0x79b   : > { %v7707_v46 = vsel %vm1072_vm7, %v3272_v57, %v3278_v9  ;;  %v7713_v3 = vsel %vm1072_vm7, %v3278_v9, %v3284_v50  ;;  %v3052_v9 = vsel %vm769_vm2, %v3038_v28, %v3020_v42  ;;  %v3056_v42 = vmul.f32 %v3049_v30, %v8884_v1 }
 0x79c   : > { %3455 = vrot.lane.b32.xlu0 %v7614_v4, %s4549_s17  ;;  %3029 = vrot.lane.b32.xlu1 %v7662_v24, %s4544_s23  ;;  %v2974_v4 = vmul.f32 %v2959_v63, %v9051_v62  ;;  %v2841_v63 = vmul.f32 %v7493_v60, %v7433_v0  ;;  %v7754_v28 = vmul.f32 %v7493_v60, %v7449_v16 }
 0x79d   : > { %v3055_v59 = vmul.f32 %v3052_v9, %v9153_v54  ;;  %v2996_v30 = vmul.f32 %v7533_v31, %v2972_v6  ;;  %v9231_v54 = vld [vmem:[#allocation76_spill] sm:$0xff]  ;;  %v3080_v6 = vmul.f32 %v7527_v35, %v3056_v42  ;;  %v9235_v42 = vld [vmem:[#allocation91_spill] sm:$0xff] }
 0x79e   : > { %v3290_v11 = vpop.permute.xlu0 %3289  ;;  %v7739_v17 = vpop.permute.xlu1 %3355  ;;  %v2998_v9 = vmul.f32 %v7533_v31, %v2974_v4 }
 0x79f   : > { %v7733_v2 = vsel %vm1072_vm7, %v3284_v50, %v3290_v11  ;;  %v7737_v29 = vsel %vm1072_vm7, %v3290_v11, %v3272_v57  ;;  %v3057_v57 = vmul.f32 %v3046_v47, %v9053_v48  ;;  %v3136_v50 = vsel %vm870_vm5, %v3122_v52, %v3104_v27  ;;  %v9229_v11 = vld [vmem:[#allocation70_spill] sm:$0xff]  ;;  %v9232_v27 = vld [vmem:[#allocation77_spill] sm:$0xff] }
 0x7a0   : > { %2945 = vrot.lane.b32.xlu0 %v7662_v24, %s4542_s24  ;;  %3041 = vrot.lane.b32.xlu1 %v7673_v36, %s4544_s23  ;;  %v3058_v62 = vmul.f32 %v3043_v25, %v9229_v11  ;;  %v2995_v47 = vmul.f32 %v7533_v31, %v2971_v58  ;;  %v3140_v52 = vmul.f32 %v3133_v12, %v9231_v54  ;;  %v9234_v31 = vld [vmem:[#allocation90_spill] sm:$0xff]  ;;  %s4451_s23 = sshll.u32 %s4551_s26, 4  ;;  %s4452_s23 = int_to_ptr.vmem [resolvable:$false] %s4451_s23 }
 0x7a1   : > { %v3141_v48 = vmul.f32 %v7655_v39, %v9232_v27  ;;  %v3139_v14 = vmul.f32 %v3136_v50, %v9233_v13  ;;  %v3081_v58 = vmul.f32 %v7527_v35, %v3057_v57  ;;  %v3079_v39 = vmul.f32 %v7527_v35, %v3055_v59  ;;  %v9236_v13 = vld [vmem:[#allocation83_spill] sm:$0xff]  ;;  %v9238_v11 = vld [vmem:[#allocation86_spill] sm:$0xff]  ;;  %p4454_p6 = scmp.lt.s32.totalorder %s8351_s7, %s4452_s23 }
 0x7a2   : > { %v7765_v37 = vpop.permute.xlu0 %2853  ;;  %v2858_v1 = vpop.permute.xlu1 %2857  ;;  %v3082_v50 = vmul.f32 %v7527_v35, %v3058_v62  ;;  %v3142_v27 = vmul.f32 %v7666_v10, %v9236_v13  ;;  %v3224_v57 = vmul.f32 %v7681_v23, %v9238_v11  ;;  %v3164_v59 = vmul.f32 %v7549_v8, %v3140_v52  ;;  %v9239_v10 = vld [vmem:[#allocation87_spill] sm:$0xff]  ;;  %v9241_v11 = vld [vmem:[#allocation96_spill] sm:$0xff] }
 0x7a3   : > { %9230 = vst [vmem:[#allocation110_spill] sm:$0xff] %v7765_v37  ;;  %v2878_v25 = vsel %vm567_vm3, %v2858_v1, %v7620_v7  ;;  %v2881_v60 = vsel %vm567_vm3, %v7622_v34, %v2858_v1  ;;  %v9237_v1 = vld [vmem:[#allocation85_spill] sm:$0xff]  ;;  %v3163_v35 = vmul.f32 %v7549_v8, %v3139_v14 }
 0x7a4   : > { %2957 = vrot.lane.b32.xlu0 %v7673_v36, %s4542_s24  ;;  %v2888_v4 = vmul.f32 %v2881_v60, %v9234_v31  ;;  %v2889_v12 = vmul.f32 %v2878_v25, %v9235_v42  ;;  %3113 = vrot.lane.b32.xlu1 %v7662_v24, %s4545_s28  ;;  %v3223_v54 = vmul.f32 %v7677_v51, %v9237_v1  ;;  %s4447_s24 = scalar_lea.vmem %s8351_s7, 1024 }
 0x7a5   : > { %v3165_v25 = vmul.f32 %v7549_v8, %v3141_v48  ;;  %v3225_v31 = vmul.f32 %v7689_v19, %v9239_v10  ;;  %v3166_v14 = vmul.f32 %v7549_v8, %v3142_v27  ;;  %v3309_v8 = vmul.f32 %v7733_v2, %v9171_v22  ;;  %p4448_p12 = scmp.ne.s32.totalorder %s8351_s7, %s4447_s24 }
 0x7a6   : > { %v7797_v37 = vpop.permute.xlu0 %2865  ;;  %v2912_v60 = vmul.f32 %v7523_v18, %v2888_v4  ;;  %v2913_v42 = vmul.f32 %v7523_v18, %v2889_v12  ;;  %v2870_v62 = vpop.permute.xlu1 %2869  ;;  %v9240_v4 = vld [vmem:[#allocation95_spill] sm:$0xff]  ;;  %v3247_v19 = vmul.f32 %v7571_v61, %v3223_v54 }
 0x7a7   : > { %v2875_v51 = vsel %vm567_vm3, %v7620_v7, %v2870_v62  ;;  %v2884_v23 = vsel %vm567_vm3, %v2870_v62, %v7622_v34  ;;  %v3248_v7 = vmul.f32 %v7571_v61, %v3224_v57  ;;  %v3226_v34 = vmul.f32 %v7693_v45, %v5334_v49  ;;  %v9243_v57 = vld [vmem:[#allocation94_spill] sm:$0xff]  ;;  %p4449_p3 = pnand %p4448_p12, %p9318_p2 }
 0x7a8   : > { %3488 = vperm.xlu0 %4300, %v7349_v55   ;;  %v2924_v48 = vadd.f32 %v2912_v60, %v2840_v40  ;;  %v2925_v52 = vadd.f32 %v2913_v42, %v2841_v63  ;;  %v2887_v12 = vmul.f32 %v2884_v23, %v9240_v4  ;;  %v2890_v1 = vmul.f32 %v2875_v51, %v9241_v11 }
 0x7a9   : > { %3125 = vrot.lane.b32.xlu1 %v7673_v36, %s4545_s28  ;;  %v3249_v51 = vmul.f32 %v7571_v61, %v3225_v31  ;;  %v3250_v2 = vmul.f32 %v7571_v61, %v3226_v34  ;;  %v9242_v31 = vld [vmem:[#allocation93_spill] sm:$0xff]  ;;  %v3308_v23 = vmul.f32 %v7713_v3, %v9243_v57  ;;  %v3333_v61 = vmul.f32 %v7591_v43, %v3309_v8  ;;  %p4450_p5 = pneg %p4449_p3  ;;  %s4453_s28 = scalar_lea.vmem %s4452_s23, 2048 }
 0x7aa   : > { %v7822_v62 = vpop.permute.xlu0 %2937  ;;  %v3008_v40 = vadd.f32 %v2996_v30, %v2924_v48  ;;  %v3009_v55 = vadd.f32 %v2997_v15, %v2925_v52  ;;  %v2911_v63 = vmul.f32 %v7523_v18, %v2887_v12  ;;  %v2914_v42 = vmul.f32 %v7523_v18, %v2890_v1  ;;  %v3362_v60 = vpop.permute.xlu1 %3361  ;;  %p4455_p8 = scmp.lt.s32.totalorder %s4453_s28, %s4447_s24 }
 0x7ab   : > { %v3382_v54 = vsel %vm1173_vm8, %v3362_v60, %v7631_v33  ;;  %v3385_v45 = vsel %vm1173_vm8, %v7739_v17, %v3362_v60  ;;  %v3307_v1 = vmul.f32 %v7707_v46, %v9242_v31 }
 0x7ac   : > { %3445 = vrot.lane.b32.xlu0 %v7443_v20, %s4549_s17  ;;  %v3092_v30 = vadd.f32 %v3080_v6, %v3008_v40  ;;  %v3093_v15 = vadd.f32 %v3081_v58, %v3009_v55  ;;  %v2923_v18 = vadd.f32 %v2911_v63, %v7743_v26  ;;  %v2926_v27 = vadd.f32 %v2914_v42, %v7754_v28  ;;  %p4456_p7 = por %p4455_p8, %p4454_p6 }
 0x7ad   : > { %3197 = vrot.lane.b32.xlu1 %v7662_v24, %s4546_s30  ;;  %v3310_v20 = vmul.f32 %v7737_v29, %v9172_v41  ;;  %4302 = vset.pattern.permute.xlu0 %v9202_v44  ;;  %v3392_v12 = vmul.f32 %v3382_v54, %v9131_v32  ;;  %v3331_v63 = vmul.f32 %v7591_v43, %v3307_v1 }
 0x7ae   : > { %v7848_v6 = vpop.permute.xlu0 %2949  ;;  %v3007_v26 = vadd.f32 %v2995_v47, %v2923_v18  ;;  %v3010_v28 = vadd.f32 %v2998_v9, %v2926_v27  ;;  %v3177_v58 = vadd.f32 %v3165_v25, %v3093_v15  ;;  %v3374_v48 = vpop.permute.xlu1 %3373  ;;  %v3176_v52 = vadd.f32 %v3164_v59, %v3092_v30  ;;  %p4457_p13 = pnand %p4456_p7, %p4450_p5 }
 0x7af   : > { %v3379_v3 = vsel %vm1173_vm8, %v7631_v33, %v3374_v48  ;;  %v3388_v46 = vsel %vm1173_vm8, %v3374_v48, %v7739_v17  ;;  %v3332_v59 = vmul.f32 %v7591_v43, %v3308_v23  ;;  %v3391_v25 = vmul.f32 %v3385_v45, %v9083_v38 }
 0x7b0   : > { %3457 = vrot.lane.b32.xlu0 %v7449_v16, %s4549_s17  ;;  %v3091_v44 = vadd.f32 %v3079_v39, %v3007_v26  ;;  %v3094_v29 = vadd.f32 %v3082_v50, %v3010_v28  ;;  %v3261_v47 = vadd.f32 %v3249_v51, %v3177_v58  ;;  %v3393_v9 = vmul.f32 %v3379_v3, %v9175_v53 }
 0x7b1   : > { %3209 = vrot.lane.b32.xlu1 %v7673_v36, %s4546_s30  ;;  %v3394_v33 = vmul.f32 %v3388_v46, %v9176_v5  ;;  %v3260_v17 = vadd.f32 %v3248_v7, %v3176_v52  ;;  %v3416_v42 = vmul.f32 %v7611_v21, %v3392_v12  ;;  %v3334_v51 = vmul.f32 %v7591_v43, %v3310_v20 }
 0x7b2   : > { %v7867_v34 = vpop.permute.xlu0 %3441  ;;  %v3175_v40 = vadd.f32 %v3163_v35, %v3091_v44  ;;  %v3345_v55 = vadd.f32 %v3333_v61, %v3261_v47  ;;  %v3417_v16 = vmul.f32 %v7611_v21, %v3393_v9  ;;  %v3022_v39 = vpop.permute.xlu1 %3021  ;;  %v3178_v50 = vadd.f32 %v3166_v14, %v3094_v29  ;;  %v7911_v47 = vld [vmem:[#allocation8 + $0x20] sm:$0xff] }
 0x7b3   : > { %v3344_v60 = vadd.f32 %v3332_v59, %v3260_v17  ;;  %v3415_v14 = vmul.f32 %v7611_v21, %v3391_v25  ;;  %v3418_v15 = vmul.f32 %v7611_v21, %v3394_v33  ;;  %9248 = vst [vmem:[#allocation42_spill] sm:$0xff] %v7911_v47  ;;  %v9249_v17 = vmov 12  }
 0x7b4   : > { %v3259_v8 = vadd.f32 %v3247_v19, %v3175_v40  ;;  %v7873_v54 = vadd.f32 %v3417_v16, %v3345_v55  ;;  %v3262_v7 = vadd.f32 %v3250_v2, %v3178_v50  ;;  %3528 = vperm.xlu0 %4302, %v7911_v47   ;;  %v7927_v50 = vld [vmem:[#allocation8 + $0x28] sm:$0xf] }
 0x7b5   : > { %3281 = vrot.lane.b32.xlu1 %v7662_v24, %s4547_s6  ;;  %v7879_v45 = vadd.f32 %v3416_v42, %v3344_v60  ;;  %9250 = vst [vmem:[#allocation64_spill] sm:$0xff] %v7927_v50 }
 0x7b6   : > { %9244 = vst [vmem:[#allocation89_spill] sm:$0xff] %v7873_v54  ;;  %v7877_v35 = vpop.permute.xlu0 %3453  ;;  %v3343_v30 = vadd.f32 %v3331_v63, %v3259_v8  ;;  %v3034_v18 = vpop.permute.xlu1 %3033  ;;  %v3346_v27 = vadd.f32 %v3334_v51, %v3262_v7  ;;  %v9264_v54 = vld [vmem:[#allocation82_spill] sm:$0xff] }
 0x7b7   : > { %9245 = vst [vmem:[#allocation23_spill] sm:$0xff] %v7879_v45 }
 0x7b8   : > { %v7883_v1 = vadd.f32 %v3415_v14, %v3343_v30  ;;  %v7887_v43 = vadd.f32 %v3418_v15, %v3346_v27  ;;  %4304 = vset.pattern.permute.xlu0 %v9249_v17  ;;  %v9251_v14 = vld [vmem:[#allocation65_spill] sm:$0xff] }
 0x7b9   : > { %3293 = vrot.lane.b32.xlu1 %v7673_v36, %s4547_s6 }
 0x7ba   : > { %9246 = vst [vmem:[#allocation75_spill] sm:$0xff] %v7883_v1  ;;  %9247 = vst [vmem:[#allocation40_spill] sm:$0xff] %v7887_v43  ;;  %v3028_v19 = vpop.permute.xlu0 %3027  ;;  %v3106_v20 = vpop.permute.xlu1 %3105  ;;  %v9262_v1 = vld [vmem:[#allocation76_spill] sm:$0xff] }
 0x7bb   : > { %v3047_v2 = vsel %vm769_vm2, %v3028_v19, %v3034_v18  ;;  %v3050_v23 = vsel %vm769_vm2, %v3022_v39, %v3028_v19 }
 0x7bc   : > { %v3060_v15 = vmul.f32 %v3050_v23, %v9251_v14  ;;  %v9256_v23 = vld [vmem:[#allocation57_spill] sm:$0xff]  ;;  %v9265_v14 = vld [vmem:[#allocation90_spill] sm:$0xff] }
 0x7bd   : > { %3365 = vrot.lane.b32.xlu1 %v7662_v24, %s4548_s14  ;;  %v9311_v56 = vld [vmem:[#allocation89_spill] sm:$0xff] }
 0x7be   : > { %v3040_v21 = vpop.permute.xlu0 %3039  ;;  %v3118_v58 = vpop.permute.xlu1 %3117 }
 0x7bf   : > { %v3044_v26 = vsel %vm769_vm2, %v3034_v18, %v3040_v21  ;;  %v3053_v28 = vsel %vm769_vm2, %v3040_v21, %v3022_v39  ;;  %v9252_v18 = vld [vmem:[#allocation66_spill] sm:$0xff]  ;;  %v9254_v21 = vld [vmem:[#allocation55_spill] sm:$0xff] }
 0x7c0   : > { %v3061_v27 = vmul.f32 %v3047_v2, %v9252_v18  ;;  %v2844_v2 = vmul.f32 %v9254_v21, %v9256_v23 }
 0x7c1   : > { %3377 = vrot.lane.b32.xlu1 %v7673_v36, %s4548_s14 }
 0x7c2   : > { %v3112_v48 = vpop.permute.xlu0 %3111  ;;  %v3190_v12 = vpop.permute.xlu1 %3189 }
 0x7c3   : > { %v3131_v52 = vsel %vm870_vm5, %v3112_v48, %v3118_v58  ;;  %v3134_v61 = vsel %vm870_vm5, %v3106_v20, %v3112_v48  ;;  %v9255_v48 = vld [vmem:[#allocation43_spill] sm:$0xff] }
 0x7c4   : > { %v3144_v43 = vmul.f32 %v3134_v61, %v9262_v1  ;;  %v9275_v1 = vld [vmem:[#allocation71_spill] sm:$0xff] }
 0x7c5   : > { %3449 = vrot.lane.b32.xlu1 %v7662_v24, %s4549_s17  ;;  %v9266_v24 = vld [vmem:[#allocation91_spill] sm:$0xff] }
 0x7c6   : > { %v3124_v3 = vpop.permute.xlu0 %3123  ;;  %v3202_v29 = vpop.permute.xlu1 %3201 }
 0x7c7   : > { %v3128_v46 = vsel %vm870_vm5, %v3118_v58, %v3124_v3  ;;  %v3137_v44 = vsel %vm870_vm5, %v3124_v3, %v3106_v20  ;;  %v9253_v20 = vld [vmem:[#allocation60_spill] sm:$0xff] }
 0x7c8   : > { %v7947_v58 = vmul.f32 %v9254_v21, %v9253_v20  ;;  %v3146_v18 = vmul.f32 %v3128_v46, %v9236_v13 }
 0x7c9   : > { %3461 = vrot.lane.b32.xlu1 %v7673_v36, %s4549_s17 }
 0x7ca   : > { %v3196_v9 = vpop.permute.xlu0 %3195  ;;  %v3274_v33 = vpop.permute.xlu1 %3273 }
 0x7cb   : > { %v3215_v59 = vsel %vm971_vm6, %v3196_v9, %v3202_v29  ;;  %v3218_v25 = vsel %vm971_vm6, %v3190_v12, %v3196_v9 }
 0x7cd   : > { %3451 = vrot.lane.b32.xlu1 %v7433_v0, %s4549_s17 }
 0x7ce   : > { %v3208_v40 = vpop.permute.xlu0 %3207  ;;  %v3286_v39 = vpop.permute.xlu1 %3285 }
 0x7cf   : > { %v3212_v55 = vsel %vm971_vm6, %v3202_v29, %v3208_v40  ;;  %v3221_v16 = vsel %vm971_vm6, %v3208_v40, %v3190_v12  ;;  %v2845_v12 = vmul.f32 %v9254_v21, %v9255_v48  ;;  %v9260_v48 = vld [vmem:[#allocation50_spill] sm:$0xff] }
 0x7d0   : > { %v3085_v23 = vmul.f32 %v9260_v48, %v3061_v27 }
 0x7d1   : > { %3533 = vperm.xlu1 %4301, %v7927_v50   ;;  %v9261_v50 = vld [vmem:[#allocation70_spill] sm:$0xff] }
 0x7d2   : > { %v3280_v63 = vpop.permute.xlu0 %3279  ;;  %v3358_v60 = vpop.permute.xlu1 %3357  ;;  %v3062_v47 = vmul.f32 %v3044_v26, %v9261_v50 }
 0x7d3   : > { %v3299_v42 = vsel %vm1072_vm7, %v3280_v63, %v3286_v39  ;;  %v3302_v0 = vsel %vm1072_vm7, %v3274_v33, %v3280_v63 }
 0x7d5   : > { %4303 = vset.pattern.permute.xlu1 %v9249_v17 }
 0x7d6   : > { %v3292_v51 = vpop.permute.xlu0 %3291  ;;  %v3370_v30 = vpop.permute.xlu1 %3369 }
 0x7d7   : > { %v7937_v8 = vsel %vm1072_vm7, %v3286_v39, %v3292_v51  ;;  %v7941_v7 = vsel %vm1072_vm7, %v3292_v51, %v3274_v33  ;;  %v9257_v33 = vld [vmem:[#allocation68_spill] sm:$0xff]  ;;  %v9258_v39 = vld [vmem:[#allocation110_spill] sm:$0xff]  ;;  %v9259_v51 = vld [vmem:[#allocation61_spill] sm:$0xff] }
 0x7d8   : > { %v3059_v17 = vmul.f32 %v3053_v28, %v9257_v33  ;;  %v2846_v20 = vmul.f32 %v9254_v21, %v9259_v51  ;;  %v9263_v28 = vld [vmem:[#allocation77_spill] sm:$0xff]  ;;  %v3143_v33 = vmul.f32 %v3137_v44, %v9264_v54 }
 0x7d9   : > { %v3145_v45 = vmul.f32 %v3131_v52, %v9263_v28  ;;  %v9267_v52 = vld [vmem:[#allocation85_spill] sm:$0xff] }
 0x7da   : > { %v3364_v19 = vpop.permute.xlu0 %3363  ;;  %v2860_v9 = vpop.permute.xlu1 %2859  ;;  %v7986_v27 = vmul.f32 %v9260_v48, %v3059_v17  ;;  %v3227_v44 = vmul.f32 %v3218_v25, %v9267_v52  ;;  %v3229_v17 = vmul.f32 %v3212_v55, %v9239_v10  ;;  %v3230_v25 = vmul.f32 %v3221_v16, %v5334_v49 }
 0x7db   : > { %v7953_v3 = vsel %vm1173_vm8, %v3364_v19, %v3370_v30  ;;  %v7957_v29 = vsel %vm1173_vm8, %v3358_v60, %v3364_v19  ;;  %v2879_v40 = vsel %vm567_vm3, %v2860_v9, %v7797_v37  ;;  %v2882_v63 = vsel %vm567_vm3, %v9258_v39, %v2860_v9 }
 0x7dc   : > { %v3084_v19 = vmul.f32 %v9260_v48, %v3060_v15  ;;  %v2892_v9 = vmul.f32 %v2882_v63, %v9265_v14  ;;  %v2893_v5 = vmul.f32 %v2879_v40, %v9266_v24  ;;  %v9268_v40 = vld [vmem:[#allocation27_spill] sm:$0xff]  ;;  %v3311_v16 = vmul.f32 %v3302_v0, %v9242_v31 }
 0x7dd   : > { %v3169_v51 = vmul.f32 %v9268_v40, %v3145_v45  ;;  %v9271_v45 = vld [vmem:[#allocation49_spill] sm:$0xff]  ;;  %v3312_v0 = vmul.f32 %v3299_v42, %v9243_v57 }
 0x7de   : > { %v3376_v36 = vpop.permute.xlu0 %3375  ;;  %v2872_v61 = vpop.permute.xlu1 %2871 }
 0x7df   : > { %v3380_v15 = vsel %vm1173_vm8, %v3370_v30, %v3376_v36  ;;  %v7983_v26 = vsel %vm1173_vm8, %v3376_v36, %v3358_v60  ;;  %v2876_v46 = vsel %vm567_vm3, %v7797_v37, %v2872_v61  ;;  %v2885_v21 = vsel %vm567_vm3, %v2872_v61, %v9258_v39  ;;  %v9269_v60 = vld [vmem:[#allocation86_spill] sm:$0xff] }
 0x7e0   : > { %v7996_v30 = vmul.f32 %v9260_v48, %v3062_v47  ;;  %v3168_v36 = vmul.f32 %v9268_v40, %v3144_v43  ;;  %v3228_v63 = vmul.f32 %v3215_v59, %v9269_v60  ;;  %v2891_v52 = vmul.f32 %v2885_v21, %v9240_v4  ;;  %v9270_v43 = vld [vmem:[#allocation45_spill] sm:$0xff] }
 0x7e1   : > { %v2894_v37 = vmul.f32 %v2876_v46, %v9241_v11  ;;  %v8008_v39 = vmul.f32 %v9268_v40, %v3143_v33  ;;  %v8011_v47 = vmul.f32 %v9268_v40, %v3146_v18  ;;  %v2916_v59 = vmul.f32 %v9270_v43, %v2892_v9  ;;  %v9272_v21 = vld [vmem:[#allocation97_spill] sm:$0xff]  ;;  %v9273_v40 = vld [vmem:[#allocation98_spill] sm:$0xff] }
 0x7e2   : > { %v8005_v13 = vpop.permute.xlu0 %2867  ;;  %v2917_v55 = vmul.f32 %v9270_v43, %v2893_v5  ;;  %v2944_v48 = vpop.permute.xlu1 %2943  ;;  %v8016_v61 = vmul.f32 %v9271_v45, %v3227_v44  ;;  %v3252_v18 = vmul.f32 %v9271_v45, %v3228_v63  ;;  %v3253_v9 = vmul.f32 %v9271_v45, %v3229_v17  ;;  %v9274_v63 = vld [vmem:[#allocation20_spill] sm:$0xff] }
 0x7e3   : > { %v2963_v46 = vsel %vm668_vm4, %v2944_v48, %v7848_v6  ;;  %v2966_v33 = vsel %vm668_vm4, %v7822_v62, %v2944_v48  ;;  %v8030_v44 = vmul.f32 %v9271_v45, %v3230_v25  ;;  %v2915_v10 = vmul.f32 %v9270_v43, %v2891_v52 }
 0x7e4   : > { %v2976_v5 = vmul.f32 %v2966_v33, %v9272_v21  ;;  %v2977_v49 = vmul.f32 %v2963_v46, %v9273_v40  ;;  %v2918_v31 = vmul.f32 %v9270_v43, %v2894_v37  ;;  %v2928_v48 = vadd.f32 %v2916_v59, %v2844_v2  ;;  %v9276_v37 = vld [vmem:[#allocation100_spill] sm:$0xff]  ;;  %v9277_v59 = vld [vmem:[#allocation101_spill] sm:$0xff] }
 0x7e5   : > { %v2929_v54 = vadd.f32 %v2917_v55, %v2845_v12  ;;  %v3335_v46 = vmul.f32 %v9275_v1, %v3311_v16  ;;  %v3313_v25 = vmul.f32 %v7937_v8, %v9171_v22  ;;  %v3336_v55 = vmul.f32 %v9275_v1, %v3312_v0 }
 0x7e6   : > { %v8035_v60 = vpop.permute.xlu0 %3035  ;;  %v3000_v28 = vmul.f32 %v9274_v63, %v2976_v5  ;;  %v3001_v17 = vmul.f32 %v9274_v63, %v2977_v49  ;;  %v2956_v33 = vpop.permute.xlu1 %2955  ;;  %v3314_v45 = vmul.f32 %v7941_v7, %v9172_v41  ;;  %v2927_v8 = vadd.f32 %v2915_v10, %v7947_v58 }
 0x7e7   : > { %v2960_v42 = vsel %vm668_vm4, %v7848_v6, %v2956_v33  ;;  %v2969_v52 = vsel %vm668_vm4, %v2956_v33, %v7822_v62  ;;  %v2930_v16 = vadd.f32 %v2918_v31, %v2846_v20  ;;  %v3395_v0 = vmul.f32 %v7957_v29, %v9083_v38 }
 0x7e8   : > { %v3012_v2 = vadd.f32 %v3000_v28, %v2928_v48  ;;  %v3013_v12 = vadd.f32 %v3001_v17, %v2929_v54  ;;  %v2975_v43 = vmul.f32 %v2969_v52, %v9276_v37  ;;  %v2978_v49 = vmul.f32 %v2960_v42, %v9277_v59 }
 0x7e9   : > { %v3337_v48 = vmul.f32 %v9275_v1, %v3313_v25  ;;  %v3397_v17 = vmul.f32 %v3380_v15, %v9175_v53  ;;  %v3396_v15 = vmul.f32 %v7953_v3, %v9131_v32 }
 0x7ea   : > { %v8054_v5 = vpop.permute.xlu0 %3107  ;;  %v3096_v6 = vadd.f32 %v3084_v19, %v3012_v2  ;;  %v3097_v22 = vadd.f32 %v3085_v23, %v3013_v12  ;;  %v2999_v62 = vmul.f32 %v9274_v63, %v2975_v43  ;;  %v3002_v54 = vmul.f32 %v9274_v63, %v2978_v49  ;;  %v3448_v28 = vpop.permute.xlu1 %3447  ;;  %v9278_v63 = vld [vmem:[#allocation113_spill] sm:$0xff]  ;;  %v9279_v2 = vld [vmem:[#allocation72_spill] sm:$0xff] }
 0x7eb   : > { %v3467_v7 = vsel %vm1274_vm9, %v3448_v28, %v7877_v35  ;;  %v3470_v10 = vsel %vm1274_vm9, %v7867_v34, %v3448_v28  ;;  %v3338_v23 = vmul.f32 %v9275_v1, %v3314_v45  ;;  %v3398_v33 = vmul.f32 %v7983_v26, %v9278_v63  ;;  %v9280_v12 = vld [vmem:[#allocation116_spill] sm:$0xff]  ;;  %v9282_v45 = vld [vmem:[#allocation115_spill] sm:$0xff] }
 0x7ec   : > { %v3180_v31 = vadd.f32 %v3168_v36, %v3096_v6  ;;  %v3181_v58 = vadd.f32 %v3169_v51, %v3097_v22  ;;  %v3011_v20 = vadd.f32 %v2999_v62, %v2927_v8  ;;  %v3014_v19 = vadd.f32 %v3002_v54, %v2930_v16  ;;  %v9283_v16 = vld [vmem:[#allocation51_spill] sm:$0xff] }
 0x7ed   : > { %v3421_v1 = vmul.f32 %v9279_v2, %v3397_v17  ;;  %v3480_v43 = vmul.f32 %v3467_v7, %v9280_v12  ;;  %v3479_v8 = vmul.f32 %v3470_v10, %v9282_v45  ;;  %v3422_v10 = vmul.f32 %v9279_v2, %v3398_v33 }
 0x7ee   : > { %v8073_v25 = vpop.permute.xlu0 %3119  ;;  %v3095_v42 = vadd.f32 %v7986_v27, %v3011_v20  ;;  %v3098_v36 = vadd.f32 %v7996_v30, %v3014_v19  ;;  %v3265_v22 = vadd.f32 %v3253_v9, %v3181_v58  ;;  %v3460_v51 = vpop.permute.xlu1 %3459  ;;  %v3264_v52 = vadd.f32 %v3252_v18, %v3180_v31  ;;  %v9281_v9 = vld [vmem:[#allocation35_spill] sm:$0xff] }
 0x7ef   : > { %v3464_v3 = vsel %vm1274_vm9, %v7877_v35, %v3460_v51  ;;  %v3473_v29 = vsel %vm1274_vm9, %v3460_v51, %v7867_v34  ;;  %v3420_v18 = vmul.f32 %v9279_v2, %v3396_v15  ;;  %v9284_v34 = vld [vmem:[#allocation109_spill] sm:$0xff] }
 0x7f0   : > { %v3179_v26 = vadd.f32 %v8008_v39, %v3095_v42  ;;  %v3182_v27 = vadd.f32 %v8011_v47, %v3098_v36  ;;  %v3349_v30 = vadd.f32 %v3337_v48, %v3265_v22  ;;  %v3481_v49 = vmul.f32 %v3464_v3, %v9281_v9 }
 0x7f1   : > { %v3482_v6 = vmul.f32 %v3473_v29, %v9283_v16  ;;  %v3348_v35 = vadd.f32 %v3336_v55, %v3264_v52  ;;  %v3419_v48 = vmul.f32 %v9279_v2, %v3395_v0  ;;  %v3504_v7 = vmul.f32 %v9284_v34, %v3480_v43 }
 0x7f2   : > { %v8091_v62 = vpop.permute.xlu0 %3191  ;;  %v3263_v54 = vadd.f32 %v8016_v61, %v3179_v26  ;;  %v3433_v28 = vadd.f32 %v3421_v1, %v3349_v30  ;;  %v3505_v17 = vmul.f32 %v9284_v34, %v3481_v49  ;;  %v2856_v39 = vpop.permute.xlu1 %2855  ;;  %v3266_v47 = vadd.f32 %v8030_v44, %v3182_v27 }
 0x7f3   : > { %v3432_v31 = vadd.f32 %v3420_v18, %v3348_v35  ;;  %v3503_v42 = vmul.f32 %v9284_v34, %v3479_v8  ;;  %v3506_v44 = vmul.f32 %v9284_v34, %v3482_v6 }
 0x7f4   : > { %v3347_v58 = vadd.f32 %v3335_v46, %v3263_v54  ;;  %v8099_v20 = vadd.f32 %v3505_v17, %v3433_v28  ;;  %v3350_v19 = vadd.f32 %v3338_v23, %v3266_v47 }
 0x7f5   : > { %v8103_v61 = vadd.f32 %v3504_v7, %v3432_v31 }
 0x7f6   : > { %v8101_v55 = vpop.permute.xlu0 %3203  ;;  %v3431_v15 = vadd.f32 %v3419_v48, %v3347_v58  ;;  %v2940_v36 = vpop.permute.xlu1 %2939  ;;  %v3434_v0 = vadd.f32 %v3422_v10, %v3350_v19 }
 0x7f8   : > { %v8107_v22 = vadd.f32 %v3503_v42, %v3431_v15  ;;  %v8109_v51 = vadd.f32 %v3506_v44, %v3434_v0  ;;  %v9286_v0 = vld [vmem:[#allocation44_spill] sm:$0xff] }
 0x7fa   : > { %v8111_v33 = vpop.permute.xlu0 %3275  ;;  %v2952_v46 = vpop.permute.xlu1 %2951 }
 0x7fe   : > { %v8113_v52 = vpop.permute.xlu0 %3287  ;;  %v3024_v23 = vpop.permute.xlu1 %3023 }
 0x802   : > { %v8115_v2 = vpop.permute.xlu0 %3359  ;;  %v2862_v1 = vpop.permute.xlu1 %2861 }
 0x803   : > { %v2880_v6 = vsel %vm567_vm3, %v2862_v1, %v8005_v13  ;;  %v2883_v35 = vsel %vm567_vm3, %v2856_v39, %v2862_v1 }
 0x804   : > { %v2896_v47 = vmul.f32 %v2883_v35, %v9265_v14  ;;  %v2897_v48 = vmul.f32 %v2880_v6, %v9266_v24  ;;  %v9285_v24 = vld [vmem:[#allocation32_spill] sm:$0xff]  ;;  %v9289_v6 = vld [vmem:[#allocation73_spill] sm:$0xff] }
 0x806   : > { %v8117_v43 = vpop.permute.xlu0 %3371  ;;  %v2874_v3 = vpop.permute.xlu1 %2873  ;;  %v2920_v15 = vmul.f32 %v9285_v24, %v2896_v47  ;;  %v2921_v42 = vmul.f32 %v9285_v24, %v2897_v48  ;;  %v9291_v48 = vld [vmem:[#allocation106_spill] sm:$0xff] }
 0x807   : > { %v2886_v54 = vsel %vm567_vm3, %v2874_v3, %v2856_v39  ;;  %v2877_v34 = vsel %vm567_vm3, %v8005_v13, %v2874_v3 }
 0x808   : > { %v2895_v31 = vmul.f32 %v2886_v54, %v9240_v4  ;;  %v2898_v39 = vmul.f32 %v2877_v34, %v9241_v11  ;;  %v9287_v11 = vld [vmem:[#allocation84_spill] sm:$0xff] }
 0x809   : > { %v2849_v1 = vmul.f32 %v9287_v11, %v9286_v0  ;;  %v2847_v35 = vmul.f32 %v9287_v11, %v9289_v6  ;;  %v9296_v6 = vld [vmem:[#allocation76_spill] sm:$0xff] }
 0x80a   : > { %v8119_v29 = vpop.permute.xlu0 %3443  ;;  %v8121_v26 = vpop.permute.xlu1 %3439  ;;  %v2922_v54 = vmul.f32 %v9285_v24, %v2898_v39 }
 0x80e   : > { %v3030_v27 = vpop.permute.xlu1 %3029  ;;  %v8123_v30 = vpop.permute.xlu0 %3455 }
 0x80f   : > { %v3051_v4 = vsel %vm769_vm2, %v3024_v23, %v3030_v27 }
 0x812   : > { %v3042_v49 = vpop.permute.xlu1 %3041  ;;  %v2946_v18 = vpop.permute.xlu0 %2945 }
 0x813   : > { %v2967_v7 = vsel %vm668_vm4, %v2940_v36, %v2946_v18  ;;  %v2964_v10 = vsel %vm668_vm4, %v2946_v18, %v2952_v46  ;;  %v9288_v18 = vld [vmem:[#allocation28_spill] sm:$0xff] }
 0x814   : > { %v2980_v14 = vmul.f32 %v2967_v7, %v9272_v21  ;;  %v2981_v44 = vmul.f32 %v2964_v10, %v9273_v40  ;;  %v2848_v21 = vmul.f32 %v9287_v11, %v9288_v18  ;;  %v3048_v40 = vsel %vm769_vm2, %v3030_v27, %v8035_v60  ;;  %v9294_v18 = vld [vmem:[#allocation68_spill] sm:$0xff] }
 0x815   : > { %v2933_v10 = vadd.f32 %v2921_v42, %v2849_v1  ;;  %v9295_v1 = vld [vmem:[#allocation63_spill] sm:$0xff] }
 0x816   : > { %v3114_v8 = vpop.permute.xlu1 %3113  ;;  %v2958_v17 = vpop.permute.xlu0 %2957  ;;  %v3004_v7 = vmul.f32 %v9291_v48, %v2980_v14 }
 0x817   : > { %v2961_v58 = vsel %vm668_vm4, %v2952_v46, %v2958_v17  ;;  %v2970_v13 = vsel %vm668_vm4, %v2958_v17, %v2940_v36  ;;  %v2919_v46 = vmul.f32 %v9285_v24, %v2895_v31  ;;  %v9290_v17 = vld [vmem:[#allocation65_spill] sm:$0xff]  ;;  %v2932_v31 = vadd.f32 %v2920_v15, %v2848_v21 }
 0x818   : > { %v2979_v3 = vmul.f32 %v2970_v13, %v9276_v37  ;;  %v2982_v36 = vmul.f32 %v2961_v58, %v9277_v59  ;;  %v3064_v47 = vmul.f32 %v3051_v4, %v9290_v17  ;;  %v3045_v37 = vsel %vm769_vm2, %v8035_v60, %v3042_v49  ;;  %v9292_v58 = vld [vmem:[#allocation92_spill] sm:$0xff]  ;;  %v9293_v60 = vld [vmem:[#allocation66_spill] sm:$0xff]  ;;  %v9297_v17 = vld [vmem:[#allocation77_spill] sm:$0xff] }
 0x819   : > { %v3054_v59 = vsel %vm769_vm2, %v3042_v49, %v3024_v23  ;;  %v2850_v39 = vmul.f32 %v9287_v11, %v9292_v58  ;;  %v3005_v13 = vmul.f32 %v9291_v48, %v2981_v44  ;;  %v2931_v27 = vadd.f32 %v2919_v46, %v2847_v35  ;;  %v9300_v58 = vld [vmem:[#allocation85_spill] sm:$0xff] }
 0x81a   : > { %v3003_v24 = vmul.f32 %v9291_v48, %v2979_v3  ;;  %v3006_v4 = vmul.f32 %v9291_v48, %v2982_v36  ;;  %v3135_v14 = vsel %vm870_vm5, %v8054_v5, %v3114_v8  ;;  %v3065_v0 = vmul.f32 %v3048_v40, %v9293_v60  ;;  %v9302_v60 = vld [vmem:[#allocation86_spill] sm:$0xff] }
 0x81b   : > { %v3126_v28 = vpop.permute.xlu1 %3125  ;;  %v3063_v23 = vmul.f32 %v3054_v59, %v9294_v18  ;;  %v3066_v49 = vmul.f32 %v3045_v37, %v9261_v50  ;;  %v3132_v15 = vsel %vm870_vm5, %v3114_v8, %v8073_v25  ;;  %v2934_v11 = vadd.f32 %v2922_v54, %v2850_v39  ;;  %v9298_v59 = vld [vmem:[#allocation82_spill] sm:$0xff] }
 0x81c   : > { %v3088_v46 = vmul.f32 %v9295_v1, %v3064_v47  ;;  %v3016_v3 = vadd.f32 %v3004_v7, %v2932_v31  ;;  %v3138_v36 = vsel %vm870_vm5, %v3126_v28, %v8054_v5  ;;  %v3017_v21 = vadd.f32 %v3005_v13, %v2933_v10  ;;  %v9299_v31 = vld [vmem:[#allocation83_spill] sm:$0xff] }
 0x81d   : > { %v3148_v35 = vmul.f32 %v3135_v14, %v9296_v6  ;;  %v3129_v50 = vsel %vm870_vm5, %v8073_v25, %v3126_v28  ;;  %v3015_v40 = vadd.f32 %v3003_v24, %v2931_v27  ;;  %v3018_v54 = vadd.f32 %v3006_v4, %v2934_v11  ;;  %v9301_v4 = vld [vmem:[#allocation67_spill] sm:$0xff] }
 0x81e   : > { %v3149_v47 = vmul.f32 %v3132_v15, %v9297_v17  ;;  %v3089_v5 = vmul.f32 %v9295_v1, %v3065_v0  ;;  %v3087_v7 = vmul.f32 %v9295_v1, %v3063_v23  ;;  %v3090_v37 = vmul.f32 %v9295_v1, %v3066_v49 }
 0x81f   : > { %v3198_v19 = vpop.permute.xlu1 %3197  ;;  %v3147_v25 = vmul.f32 %v3138_v36, %v9298_v59  ;;  %v3150_v10 = vmul.f32 %v3129_v50, %v9299_v31  ;;  %v3100_v27 = vadd.f32 %v3088_v46, %v3016_v3  ;;  %v3172_v14 = vmul.f32 %v9301_v4, %v3148_v35  ;;  %v9303_v46 = vld [vmem:[#allocation93_spill] sm:$0xff]  ;;  %v9304_v35 = vld [vmem:[#allocation74_spill] sm:$0xff] }
 0x820   : > { %v3219_v8 = vsel %vm971_vm6, %v8091_v62, %v3198_v19  ;;  %v3216_v48 = vsel %vm971_vm6, %v3198_v19, %v8101_v55  ;;  %v3101_v24 = vadd.f32 %v3089_v5, %v3017_v21  ;;  %v3173_v23 = vmul.f32 %v9301_v4, %v3149_v47  ;;  %v9306_v47 = vld [vmem:[#allocation88_spill] sm:$0xff] }
 0x821   : > { %v3231_v39 = vmul.f32 %v3219_v8, %v9300_v58  ;;  %v3232_v0 = vmul.f32 %v3216_v48, %v9302_v60  ;;  %v3099_v49 = vadd.f32 %v3087_v7, %v3015_v40  ;;  %v3102_v15 = vadd.f32 %v3090_v37, %v3018_v54 }
 0x822   : > { %v3171_v1 = vmul.f32 %v9301_v4, %v3147_v25  ;;  %v3174_v6 = vmul.f32 %v9301_v4, %v3150_v10  ;;  %v3184_v17 = vadd.f32 %v3172_v14, %v3100_v27  ;;  %v3185_v37 = vadd.f32 %v3173_v23, %v3101_v24  ;;  %v9307_v25 = vld [vmem:[#allocation17_spill] sm:$0xff] }
 0x823   : > { %v3210_v34 = vpop.permute.xlu1 %3209  ;;  %v8187_v42 = vpop.permute.xlu0 %3488  ;;  %v3255_v50 = vmul.f32 %v9304_v35, %v3231_v39  ;;  %v3256_v40 = vmul.f32 %v9304_v35, %v3232_v0 }
 0x824   : > { %v3213_v11 = vsel %vm971_vm6, %v8101_v55, %v3210_v34  ;;  %v3183_v59 = vadd.f32 %v3171_v1, %v3099_v49 }
 0x825   : > { %v3268_v27 = vadd.f32 %v3256_v40, %v3184_v17  ;;  %v9310_v40 = vld [vmem:[#allocation52_spill] sm:$0xff] }
 0x827   : > { %v3282_v44 = vpop.permute.xlu1 %3281  ;;  %v8218_v18 = vpop.permute.xlu0 %3445 }
 0x828   : > { %v3300_v13 = vsel %vm1072_vm7, %v3282_v44, %v8113_v52  ;;  %v3303_v19 = vsel %vm1072_vm7, %v8111_v33, %v3282_v44  ;;  %v3222_v44 = vsel %vm971_vm6, %v3210_v34, %v8091_v62  ;;  %v9305_v62 = vld [vmem:[#allocation87_spill] sm:$0xff] }
 0x829   : > { %v3315_v3 = vmul.f32 %v3303_v19, %v9303_v46  ;;  %v3316_v36 = vmul.f32 %v3300_v13, %v9243_v57  ;;  %v3233_v34 = vmul.f32 %v3213_v11, %v9305_v62  ;;  %v3234_v48 = vmul.f32 %v3222_v44, %v9306_v47 }
 0x82b   : > { %v3294_v28 = vpop.permute.xlu1 %3293  ;;  %v3339_v31 = vmul.f32 %v9307_v25, %v3315_v3  ;;  %v3340_v10 = vmul.f32 %v9307_v25, %v3316_v36  ;;  %v3458_v58 = vpop.permute.xlu0 %3457  ;;  %v3257_v24 = vmul.f32 %v9304_v35, %v3233_v34  ;;  %v3258_v4 = vmul.f32 %v9304_v35, %v3234_v48 }
 0x82c   : > { %v3297_v57 = vsel %vm1072_vm7, %v8113_v52, %v3294_v28  ;;  %v3306_v54 = vsel %vm1072_vm7, %v3294_v28, %v8111_v33  ;;  %v9308_v52 = vld [vmem:[#allocation103_spill] sm:$0xff]  ;;  %v3267_v28 = vadd.f32 %v3255_v50, %v3183_v59  ;;  %v3472_v14 = vsel %vm1274_vm9, %v3458_v58, %v8121_v26 }
 0x82d   : > { %v3317_v13 = vmul.f32 %v3297_v57, %v9308_v52  ;;  %v3318_v19 = vmul.f32 %v3306_v54, %v9172_v41  ;;  %v9309_v41 = vld [vmem:[#allocation47_spill] sm:$0xff]  ;;  %v3352_v23 = vadd.f32 %v3340_v10, %v3268_v27  ;;  %v3269_v3 = vadd.f32 %v3257_v24, %v3185_v37 }
 0x82f   : > { %v3366_v21 = vpop.permute.xlu1 %3365  ;;  %v3341_v11 = vmul.f32 %v9307_v25, %v3317_v13  ;;  %v3342_v1 = vmul.f32 %v9307_v25, %v3318_v19 }
 0x830   : > { %v3384_v8 = vsel %vm1173_vm8, %v3366_v21, %v8117_v43  ;;  %v3387_v55 = vsel %vm1173_vm8, %v8115_v2, %v3366_v21 }
 0x831   : > { %v3399_v5 = vmul.f32 %v3387_v55, %v9083_v38  ;;  %v3400_v7 = vmul.f32 %v3384_v8, %v9131_v32  ;;  %v3186_v32 = vadd.f32 %v3174_v6, %v3102_v15  ;;  %v3478_v6 = vmul.f32 %v3472_v14, %v9283_v16 }
 0x832   : > { %v3353_v54 = vadd.f32 %v3341_v11, %v3269_v3 }
 0x833   : > { %v3378_v39 = vpop.permute.xlu1 %3377  ;;  %v3423_v60 = vmul.f32 %v9309_v41, %v3399_v5  ;;  %v3424_v0 = vmul.f32 %v9309_v41, %v3400_v7  ;;  %v3270_v21 = vadd.f32 %v3258_v4, %v3186_v32  ;;  %v3502_v52 = vmul.f32 %v8187_v42, %v3478_v6  ;;  %v3711_v4 = vld [vmem:[#allocation10 + $0x8] sm:$0xf] }
 0x834   : > { %v3381_v33 = vsel %vm1173_vm8, %v8117_v43, %v3378_v39  ;;  %v3390_v38 = vsel %vm1173_vm8, %v3378_v39, %v8115_v2  ;;  %v3351_v43 = vadd.f32 %v3339_v31, %v3267_v28 }
 0x835   : > { %v3401_v49 = vmul.f32 %v3381_v33, %v9175_v53  ;;  %v3402_v2 = vmul.f32 %v3390_v38, %v9278_v63  ;;  %v3469_v53 = vsel %vm1274_vm9, %v8121_v26, %v8218_v18  ;;  %v3436_v50 = vadd.f32 %v3424_v0, %v3352_v23 }
 0x836   : > { %v3435_v35 = vadd.f32 %v3423_v60, %v3351_v43  ;;  %v3354_v26 = vadd.f32 %v3342_v1, %v3270_v21  ;;  %v3475_v59 = vmul.f32 %v3469_v53, %v9282_v45  ;;  %v3529_v43 = vpop.permute.xlu0 %3528 }
 0x837   : > { %v3450_v15 = vpop.permute.xlu1 %3449  ;;  %v3425_v8 = vmul.f32 %v9309_v41, %v3401_v49  ;;  %v3426_v55 = vmul.f32 %v9309_v41, %v3402_v2 }
 0x838   : > { %v3468_v44 = vsel %vm1274_vm9, %v3450_v15, %v8123_v30  ;;  %v3471_v46 = vsel %vm1274_vm9, %v8119_v29, %v3450_v15  ;;  %v3499_v38 = vmul.f32 %v8187_v42, %v3475_v59 }
 0x839   : > { %v3483_v63 = vmul.f32 %v3471_v46, %v9282_v45  ;;  %v3484_v36 = vmul.f32 %v3468_v44, %v9280_v12  ;;  %v3437_v25 = vadd.f32 %v3425_v8, %v3353_v54 }
 0x83b   : > { %v3507_v62 = vmul.f32 %v9310_v40, %v3483_v63  ;;  %v3508_v34 = vmul.f32 %v9310_v40, %v3484_v36  ;;  %v3462_v57 = vpop.permute.xlu1 %3461 }
 0x83c   : > { %v3465_v17 = vsel %vm1274_vm9, %v8123_v30, %v3462_v57  ;;  %v3474_v47 = vsel %vm1274_vm9, %v3462_v57, %v8119_v29  ;;  %v3438_v30 = vadd.f32 %v3426_v55, %v3354_v26 }
 0x83d   : > { %v3519_v48 = vadd.f32 %v3507_v62, %v3435_v35  ;;  %v3485_v5 = vmul.f32 %v3465_v17, %v9281_v9  ;;  %v3486_v7 = vmul.f32 %v3474_v47, %v9283_v16  ;;  %v3520_v37 = vadd.f32 %v3508_v34, %v3436_v50 }
 0x83f   : > { %v3509_v31 = vmul.f32 %v9310_v40, %v3485_v5  ;;  %v3510_v10 = vmul.f32 %v9310_v40, %v3486_v7  ;;  %3566 = vmatprep.subr.mxu0 %v3520_v37  ;;  %v3452_v39 = vpop.permute.xlu1 %3451 }
 0x840   : > { %v3463_v29 = vsel %vm1274_vm9, %v3452_v39, %v3458_v58  ;;  %v3466_v16 = vsel %vm1274_vm9, %v8218_v18, %v3452_v39  ;;  %3567 = vmatpush1.msra.mxu0 %v3519_v48 }
 0x841   : > { %v3521_v13 = vadd.f32 %v3509_v31, %v3437_v25  ;;  %v3476_v45 = vmul.f32 %v3466_v16, %v9280_v12  ;;  %v3477_v19 = vmul.f32 %v3463_v29, %v9281_v9  ;;  %3568 = vmatprep.subr.mxu0 %v8103_v61  ;;  %v3522_v33 = vadd.f32 %v3510_v10, %v3438_v30  ;;  %v9312_v12 = vld [vmem:[#allocation23_spill] sm:$0xff]  ;;  %v9313_v9 = vld [vmem:[#allocation40_spill] sm:$0xff] }
 0x842   : > { %3569 = vmatpush1.msra.mxu0 %v8107_v22  ;;  %v3514_v27 = vadd.f32 %v3502_v52, %v9313_v9  ;;  %v9314_v61 = vld [vmem:[#allocation75_spill] sm:$0xff]  ;;  %v9315_v22 = vld [vmem:[#allocation42_spill] sm:$0xff] }
 0x843   : > { %v3500_v32 = vmul.f32 %v8187_v42, %v3476_v45  ;;  %v3501_v58 = vmul.f32 %v8187_v42, %v3477_v19  ;;  %3643 = vmatprep.subr.mxu1 %v3522_v33  ;;  %v3511_v24 = vadd.f32 %v3499_v38, %v9314_v61  ;;  %v9316_v42 = vmov 0.0   ;;  %v4307_v29 = vld [vmem:[%s4734_s15] sm:$0xff] }
 0x844   : > { %3644 = vmatpush1.msra.mxu1 %v3521_v13  ;;  %v4308_v13 = vld [vmem:[%s4734_s15 + $0x10] sm:$0xff] }
 0x845   : > { %v3513_v18 = vadd.f32 %v3501_v58, %v9311_v56  ;;  %3645 = vmatprep.subr.mxu1 %v8109_v51  ;;  %v3512_v28 = vadd.f32 %v3500_v32, %v9312_v12  ;;  %v9317_v51 = vld [vmem:[#allocation64_spill] sm:$0xff]  ;;  %v4309_v58 = vld [vmem:[%s4734_s15 + $0x18] sm:$0xff] }
 0x846   : > { %3646 = vmatpush1.msra.mxu1 %v8099_v20  ;;  %v3710_v20 = vld [vmem:[#allocation10] sm:$0xff] }
 0x847   : > { %3570 = vmatprep.subr.mxu0 %v3512_v28  ;;  %3647 = vmatprep.subr.mxu1 %v3514_v27 }
 0x848   : > { %3571 = vmatpush1.msra.mxu0 %v3511_v24  ;;  %3648 = vmatpush1.msra.mxu1 %v3513_v18  ;;  %v4310_v18 = vld [vmem:[%s4734_s15 + $0x8] sm:$0xff] }
 0x849   : > { %4088 = vmatmul.mubr.msk.f32.vlgmr.msra.gmra.mxu0 %vm1363_vm10, %v9315_v22  ;;  %4090 = vmatmul.mubr.msk.f32.vlgmr.msra.gmra.mxu1 %vm1363_vm10, %v9315_v22  ;;  %v4311_v22 = vld [vmem:[%s4734_s15 + $0x20] sm:$0xf] }
 0x84a   : > { %3610 = vmatprep.mubr.f32.mxu0 %v9316_v42  ;;  %3687 = vmatprep.mubr.f32.mxu1 %v9316_v42 }
 0x84b   : > { %3714 = vperm.xlu1 %4303, %v3710_v20  }
 0x84c   : > { %v3534_v23 = vpop.permute.xlu1 %3533 }
 0x84d   : > { %4089 = vmatmul.mubr.msk.f32.gmra.mxu0 %vm1363_vm10, %v9317_v51  ;;  %4091 = vmatmul.mubr.msk.f32.gmra.mxu1 %vm1363_vm10, %v9317_v51  ;;  %v4312_v51 = vld [vmem:[%s4734_s15 + $0x30] sm:$0xf] }
 0x84e   : > { %3802 = vmatprep.mubr.f32.mxu0 %v9316_v42  ;;  %3879 = vmatprep.mubr.f32.mxu1 %v9316_v42 }
 0x84f   : > { %3719 = vperm.xlu1 %4303, %v3711_v4  }
 0x8c6   : > { %v3715_v37 = vpop.permute.xlu1 %3714 }
 0x8ca   : > { %v3720_v33 = vpop.permute.xlu1 %3719 }
 0x909   : > { %v3606_v14 = vpop.f32.mrf.mxu0  ;;  %v3683_v41 = vpop.f32.mrf.mxu1 }
 0x90a   : > { %v3607_v1 = vadd.f32 %v3606_v14, %v3529_v43  ;;  %v3684_v44 = vadd.f32 %v3683_v41, %v3529_v43  ;;  %v4313_v14 = vld [vmem:[%s4734_s15 + $0x38] sm:$0xf] }
 0x90b   : > { %v3608_v60 = vpop.f32.mrf.mxu0  ;;  %v3685_v0 = vpop.f32.mrf.mxu1 }
 0x90c   : > { %v3609_v49 = vadd.f32 %v3608_v60, %v3529_v43  ;;  %v3686_v11 = vadd.f32 %v3685_v0, %v3529_v43  ;;  %v3694_v62 = vmul.f32 0.2, %v3607_v1  ;;  %v3696_v34 = vmul.f32 0.2, %v3684_v44  ;;  %v4314_v60 = vld [vmem:[%s4734_s15 + $0x28] sm:$0xf] }
 0x90d   : > { %v3689_v2 = vpop.f32.mrf.mxu1  ;;  %v3612_v15 = vpop.f32.mrf.mxu0 }
 0x90e   : > { %v3690_v46 = vadd.f32 %v3689_v2, %v3534_v23  ;;  %v3613_v3 = vadd.f32 %v3612_v15, %v3534_v23  ;;  %v3695_v6 = vmul.f32 0.2, %v3609_v49  ;;  %v3697_v8 = vmul.f32 0.2, %v3686_v11 }
 0x90f   : > { %v3614_v53 = vpop.f32.mrf.mxu0  ;;  %v3691_v63 = vpop.f32.mrf.mxu1  ;;  %v3702_v5 = vmax.f32 %v3607_v1, %v3694_v62  ;;  %v3704_v7 = vmax.f32 %v3684_v44, %v3696_v34 }
 0x910   : > { %v3615_v36 = vadd.f32 %v3614_v53, %v3534_v23  ;;  %v3692_v21 = vadd.f32 %v3691_v63, %v3534_v23  ;;  %v3700_v35 = vmul.f32 0.2, %v3690_v46  ;;  %v3698_v50 = vmul.f32 0.2, %v3613_v3 }
 0x911   : > { %v3703_v47 = vmax.f32 %v3609_v49, %v3695_v6  ;;  %v3705_v48 = vmax.f32 %v3686_v11, %v3697_v8 }
 0x912   : > { %v3699_v55 = vmul.f32 0.2, %v3615_v36  ;;  %v3701_v40 = vmul.f32 0.2, %v3692_v21  ;;  %v3708_v26 = vmax.f32 %v3690_v46, %v3700_v35  ;;  %v3706_v17 = vmax.f32 %v3613_v3, %v3698_v50 }
 0x914   : > { %v3707_v57 = vmax.f32 %v3615_v36, %v3699_v55  ;;  %v3709_v54 = vmax.f32 %v3692_v21, %v3701_v40 }
 0x916   : > { %4092 = vmatprep.subr.msk.mxu0 %vm338_vm0, %v3707_v57  ;;  %4096 = vmatprep.subr.msk.mxu1 %vm338_vm0, %v3709_v54 }
 0x917   : > { %4093 = vmatpush1.msk.msra.mxu0 %vm338_vm0, %v3706_v17  ;;  %4097 = vmatpush1.msk.msra.mxu1 %vm338_vm0, %v3708_v26 }
 0x918   : > { %3768 = vmatprep.subr.mxu0 %v3703_v47  ;;  %3845 = vmatprep.subr.mxu1 %v3705_v48 }
 0x919   : > { %3769 = vmatpush1.msra.mxu0 %v3702_v5  ;;  %3846 = vmatpush1.msra.mxu1 %v3704_v7 }
 0x91a   : > { %4094 = vmatmul.mubr.msk.f32.vlgmr.msra.gmra.mxu0 %vm331_vm1, %v3710_v20  ;;  %4098 = vmatmul.mubr.msk.f32.vlgmr.msra.gmra.mxu1 %vm331_vm1, %v3710_v20 }
 0x91b   : > { %3808 = vmatprep.mubr.f32.mxu0 %v9316_v42  ;;  %3885 = vmatprep.mubr.f32.mxu1 %v9316_v42 }
 0x91e   : > { %4095 = vmatmul.mubr.msk.f32.gmra.mxu0 %vm331_vm1, %v3711_v4  ;;  %4099 = vmatmul.mubr.msk.f32.gmra.mxu1 %vm331_vm1, %v3711_v4 }
 0x9da   : > { %v3804_v59 = vpop.f32.mrf.mxu0  ;;  %v3881_v25 = vpop.f32.mrf.mxu1 }
 0x9db   : > { %v3805_v31 = vadd.f32 %v3804_v59, %v3715_v37  ;;  %v3882_v10 = vadd.f32 %v3881_v25, %v3715_v37 }
 0x9dc   : > { %v3883_v39 = vpop.f32.mrf.mxu1  ;;  %v3806_v30 = vpop.f32.mrf.mxu0 }
 0x9dd   : > { %v3884_v52 = vadd.f32 %v3883_v39, %v3715_v37  ;;  %v3892_v16 = vadd.f32 %v4307_v29, %v3805_v31  ;;  %v3894_v45 = vadd.f32 %v4308_v13, %v3882_v10  ;;  %v3807_v19 = vadd.f32 %v3806_v30, %v3715_v37 }
 0x9de   : > { %v3810_v38 = vpop.f32.mrf.mxu0  ;;  %v3887_v32 = vpop.f32.mrf.mxu1 }
 0x9df   : > { %v3895_v56 = vadd.f32 %v4309_v58, %v3884_v52  ;;  %3900 = vst [vmem:[%s8343_s27] sm:$0xff] %v3892_v16  ;;  %3902 = vst [vmem:[%s8343_s27 + $0x10] sm:$0xff] %v3894_v45  ;;  %v3893_v12 = vadd.f32 %v4310_v18, %v3807_v19  ;;  %v3811_v28 = vadd.f32 %v3810_v38, %v3720_v33 }
 0x9e0   : > { %v3888_v9 = vadd.f32 %v3887_v32, %v3720_v33  ;;  %v3889_v27 = vpop.f32.mrf.mxu1  ;;  %v3812_v61 = vpop.f32.mrf.mxu0 }
 0x9e1   : > { %3903 = vst [vmem:[%s8343_s27 + $0x18] sm:$0xff] %v3895_v56  ;;  %3901 = vst [vmem:[%s8343_s27 + $0x8] sm:$0xff] %v3893_v12  ;;  %v3890_v24 = vadd.f32 %v3889_v27, %v3720_v33  ;;  %v3896_v42 = vadd.f32 %v4311_v22, %v3811_v28  ;;  %v3813_v4 = vadd.f32 %v3812_v61, %v3720_v33 }
 0x9e2   : > { %v3898_v20 = vadd.f32 %v4312_v51, %v3888_v9 }
 0x9e3   : > { %v3899_v41 = vadd.f32 %v4313_v14, %v3890_v24  ;;  %3904 = vst [vmem:[%s8343_s27 + $0x20] sm:$0xf] %v3896_v42  ;;  %v3897_v0 = vadd.f32 %v4314_v60, %v3813_v4 }
 0x9e4   : > { %3906 = vst [vmem:[%s8343_s27 + $0x30] sm:$0xf] %v3898_v20 }
 0x9e5   : > { %3907 = vst [vmem:[%s8343_s27 + $0x38] sm:$0xf] %v3899_v41  ;;  %3905 = vst [vmem:[%s8343_s27 + $0x28] sm:$0xf] %v3897_v0 }
 0x9e6   : > { %4460 = shalt.err (!%p4457_p13)
}
 0x9e7   : > { %s4461_s15 = scalar_lea.hbm %s8360_s16, 1024  ;;  %s4465_s14 = scalar_lea.hbm %s8414_s5, 2048 }
 0x9e8   : > { %p4462_p10 = scmp.ne.s32.totalorder %s8360_s16, %s4461_s15  ;;  %p4466_p0 = scmp.lt.s32.totalorder %s8360_s16, %s8414_s5 }
 0x9e9   : > { %p4467_p9 = scmp.lt.s32.totalorder %s4465_s14, %s4461_s15 }
 0x9ea   : > { %p4463_p4 = pnand %p4462_p10, %p9318_p2 }
 0x9eb   : > { %p4468_p1 = por %p4467_p9, %p4466_p0 }
 0x9ec   : > { %p4464_p11 = pneg %p4463_p4 }
 0x9ee   : > { %p4469_p12 = pnand %p4468_p1, %p4464_p11 }
 0x9f0   : > { %4472 = shalt.err (!%p4469_p12)
}
 0x9f1   : > { %s4552_s9 = smov 512   ;;  %s4553_s22 = smov 1024  }
 0x9f2   : > { %s4554_s10 = smov 32  }
 0x9f3   : > { %4125 = dma.vmem_to_hbm [thread:$0]  (%p9318_p2), %s8351_s7, 1024, %s8360_s16, %s3909_s13, %s4552_s9, %s4553_s22, %s4554_s10  }
 0x9f4 PF: > { %s3937_s24 = sand.u32 1, %s4507_s18   ;;  %p9319_p3 = scmp.ne.s32.totalorder %s8722_s25, 0 }
 0x9f5   : > { %p9320_p5 = scmp.ge.s32.totalorder %s4519_s21, 2  ;;  %s3938_s26 = scalar_lea.sflag [#allocation4], %s3937_s24 }
 0x9f7   : > { %p4145_p6 = pnand %p9320_p5, %p9319_p3 }
 0x9f9   : > { %p4146_p8 = pneg %p4145_p6 }
 0x9fb   : > { %4502 = dma.done.wait (%p4146_p8), %s3938_s26, 1024  }
 0x9fc   : > { %4504 = vsyncadd (%p4146_p8), %s3938_s26, 4294966272  ;;  %p20_p7 = scmp.ge.s32.totalorder %s4673_s8, 4   ;;  %s9321_s18 = smov %s4511_s19 }
 0x9fd   : > { %s9322_s19 = smov %s4515_s20  ;;  %s9323_s20 = smov %s4689_s12 }
 0x9fe   : > { %s9324_s21 = smov %s4673_s8  ;;  %22 = sbr.rel (!%p20_p7) target bundleno = 7 (0x7), region = 105 }
 0xa03   :  { %3943 = vsyncpa [#allocation3], 1 }
 0xa04   :  { %3945 = vsyncpa [#allocation3 + $0x1], 1 }
 0xa05   :  { %3946 = vsyncpa [#allocation6], 1 }
 0xa06   :  { %3947 = vsyncpa [#allocation9], 1 }
 0xa07   :  { %3948 = vsyncpa [#allocation4], 1 }
 0xa08   :  { %3950 = vsyncpa [#allocation4 + $0x1], 1 }

</bundles_post_ra>
